<compile_context>
chip_gen: v7x
topology: tpu7x:2x2x1
jax: 0.10.0
libtpu: 0.0.40
codegen_flags: <defaults>
</compile_context>

<pallas_src>
import functools

import jax
import jax.numpy as jnp
from jax.experimental import pallas as pl
from jax.experimental.pallas import tpu as pltpu


def _make_conv_bn_relu_kernel(TR, W, KH, KW, Cin):
    """Fused (im2col -> single matmul -> BN-affine -> ReLU) over one (image, row-tile)."""
    m = TR * W
    K = KH * KW * Cin

    def kernel(x_ref, w_ref, scale_ref, bias_ref, o_ref, patch_ref):
        # x_ref:     (1, Hp, Wp, Cin)   whole zero-padded image (bf16), resident in VMEM
        # w_ref:     (K, Cout_p)        unscaled conv weights, K = KH*KW*Cin (bf16)
        # scale_ref: (1, Cout_p)        BN scale = gamma / sqrt(var + eps)  (f32)
        # bias_ref:  (1, Cout_p)        folded bias = beta + (b - mean) * scale  (f32)
        # o_ref:     (1, TR, W, Cout_p) output row tile (bf16, lane-dense channels)
        # patch_ref: (m, K)             bf16 im2col scratch for this row tile
        row0 = pl.program_id(1) * TR          # first output row of this tile

        # Build the im2col patch: one shifted (TR, W, Cin) slab per tap, statically unrolled.
        for dh in range(KH):
            for dw in range(KW):
                t = dh * KW + dw
                xs = x_ref[:, pl.ds(row0 + dh, TR), pl.ds(dw, W), :]
                patch_ref[:, t * Cin:(t + 1) * Cin] = xs.reshape(m, Cin)

        # One fat MXU contraction over all taps and input channels (f32 accumulation).
        acc = jnp.dot(patch_ref[...], w_ref[...], preferred_element_type=jnp.float32)

        # f32 epilogue: BN affine + ReLU; cast to bf16 only on store.
        y = jnp.maximum(acc * scale_ref[...] + bias_ref[...], 0.0)
        o_ref[...] = y.reshape(o_ref.shape).astype(o_ref.dtype)

    return kernel


def basic_conv2d_nhwc(x_nhwc, w, b, gamma, beta, running_mean, running_var, eps=1e-5):
    """Conv2d(KHxKW, stride=1, 'same' pad, bias=True) + BatchNorm2d(eval) + ReLU.

    x_nhwc: (N, H, W, Cin). Returns (N, H, W, Cout) in bfloat16.
    """
    N, H, W, Cin = x_nhwc.shape
    Cout, _, KH, KW = w.shape
    ph, pw = KH // 2, KW // 2

    LANES = 128
    Cout_p = -(-Cout // LANES) * LANES                      # lane-dense output channels

    # ---- generation-aware knobs (VMEM cap, row-tile size) ----
    try:
        vmem_cap = int(getattr(pltpu.get_tpu_info(), "vmem_capacity_bytes", 64 * 2**20))
    except Exception:
        vmem_cap = 64 * 2**20
    px_target = 2048 if vmem_cap >= 96 * 2**20 else 1024    # bigger tiles on 128 MiB parts

    # Row tile: pick n_rt first, then TR = ceil(H / n_rt) so row padding is minimal.
    TR_target = max(1, min(H, px_target // max(W, 1)))
    n_rt = -(-H // TR_target)
    TR = -(-H // n_rt)
    Hr = n_rt * TR                                          # <= H + TR - 1 wasted rows
    Hp, Wp = Hr + 2 * ph, W + 2 * pw
    m = TR * W
    K = KH * KW * Cin

    # ---- glue: spatial zero-pad + bf16 cast (no 9x patch expansion in HBM) ----
    xp = jnp.pad(x_nhwc, ((0, 0), (ph, ph + (Hr - H)), (pw, pw), (0, 0)))
    xp = xp.astype(jnp.bfloat16)

    # ---- parameters: weights stay unscaled bf16; BN scale/bias applied in f32 epilogue ----
    inv_std = jax.lax.rsqrt(running_var.astype(jnp.float32) + eps)
    scale = gamma.astype(jnp.float32) * inv_std                              # (Cout,)
    bias = beta.astype(jnp.float32) + (
        b.astype(jnp.float32) - running_mean.astype(jnp.float32)) * scale

    wf = jnp.transpose(w, (2, 3, 1, 0)).reshape(K, Cout)                     # (KH*KW*Cin, Cout)
    wf = jnp.pad(wf, ((0, 0), (0, Cout_p - Cout))).astype(jnp.bfloat16)
    scale_p = jnp.pad(scale, (0, Cout_p - Cout)).reshape(1, Cout_p)          # f32
    bias_p = jnp.pad(bias, (0, Cout_p - Cout)).reshape(1, Cout_p)            # f32

    # ---- VMEM budget: double-buffered blocks + patch scratch + f32 dot/epilogue temps ----
    est = (2 * Hp * Wp * Cin * 2          # padded image block (bf16, double-buffered)
           + 2 * K * Cout_p * 2           # weights (bf16)
           + 2 * 2 * Cout_p * 4           # scale + bias (f32)
           + 2 * m * Cout_p * 2           # output block (bf16, double-buffered)
           + m * K * 2                    # im2col patch scratch (bf16)
           + 2 * m * Cout_p * 4)          # dot result + epilogue temporaries (f32)
    soft_cap = min(int(0.7 * vmem_cap), 96 * 2**20)         # ~45 MiB on v7x, ~90 MiB on v5e/v6e
    vmem_limit = int(min(soft_cap, max(32 * 2**20, 2 * est)))

    kernel = _make_conv_bn_relu_kernel(TR, W, KH, KW, Cin)

    out = pl.pallas_call(
        kernel,
        out_shape=jax.ShapeDtypeStruct((N, Hr, W, Cout_p), jnp.bfloat16),
        grid_spec=pltpu.PrefetchScalarGridSpec(
            num_scalar_prefetch=0,
            grid=(N, n_rt),
            in_specs=[
                # whole padded image of batch element n (re-used across its row tiles)
                pl.BlockSpec((1, Hp, Wp, Cin), lambda n, r: (n, 0, 0, 0)),
                # weights / scale / bias resident across the whole grid
                pl.BlockSpec((K, Cout_p), lambda n, r: (0, 0)),
                pl.BlockSpec((1, Cout_p), lambda n, r: (0, 0)),
                pl.BlockSpec((1, Cout_p), lambda n, r: (0, 0)),
            ],
            out_specs=pl.BlockSpec((1, TR, W, Cout_p), lambda n, r: (n, r, 0, 0)),
            scratch_shapes=[pltpu.VMEM((m, K), jnp.bfloat16)],
        ),
        compiler_params=pltpu.CompilerParams(
            dimension_semantics=("parallel", "parallel"),
            vmem_limit_bytes=vmem_limit,
        ),
    )(xp, wf, scale_p, bias_p)

    return out[:, :H, :, :Cout]                              # drop row / channel padding


@functools.partial(jax.jit, static_argnames=("eps",))
def basic_conv2d(x_nchw, w, b, gamma, beta, running_mean, running_var, eps=1e-5):
    """PyTorch-parity NCHW wrapper. Chained layers should use basic_conv2d_nhwc directly
    to avoid the NCHW<->NHWC transposes (they cost a full activation HBM round trip each)."""
    x = jnp.transpose(x_nchw, (0, 2, 3, 1))                  # NCHW -> NHWC
    y = basic_conv2d_nhwc(x, w, b, gamma, beta, running_mean, running_var, eps)
    return jnp.transpose(y, (0, 3, 1, 2)).astype(jnp.float32)


def _reference(x_nchw, w, b, gamma, beta, running_mean, running_var, eps=1e-5):
    """Plain-JAX f32 reference (lax.conv + eval-mode BN + ReLU) for validation."""
    y = jax.lax.conv_general_dilated(
        x_nchw, w, window_strides=(1, 1), padding=((1, 1), (1, 1)),
        dimension_numbers=("NCHW", "OIHW", "NCHW"))
    y = y + b[None, :, None, None]
    inv_std = 1.0 / jnp.sqrt(running_var + eps)
    y = (y - running_mean[None, :, None, None]) * (gamma * inv_std)[None, :, None, None] \
        + beta[None, :, None, None]
    return jnp.maximum(y, 0.0)


if __name__ == "__main__":
    key = jax.random.PRNGKey(0)
    k_x, k_w, k_b, k_g, k_beta, k_m, k_v = jax.random.split(key, 7)

    # BasicConv2d(in_channel=4, out_channel=8, kernel_size=3, padding=1)
    N, Cin, H, W = 2, 4, 16, 16
    Cout, KH, KW = 8, 3, 3

    x = jax.random.normal(k_x, (N, Cin, H, W), dtype=jnp.float32)

    # Deterministic synthetic parameters (shapes per nn.Conv2d / nn.BatchNorm2d).
    w = 0.1 * jax.random.normal(k_w, (Cout, Cin, KH, KW), dtype=jnp.float32)
    b = 0.1 * jax.random.normal(k_b, (Cout,), dtype=jnp.float32)
    gamma = 1.0 + 0.1 * jax.random.normal(k_g, (Cout,), dtype=jnp.float32)
    beta = 0.1 * jax.random.normal(k_beta, (Cout,), dtype=jnp.float32)
    running_mean = 0.1 * jax.random.normal(k_m, (Cout,), dtype=jnp.float32)
    running_var = 1.0 + 0.1 * jnp.abs(jax.random.normal(k_v, (Cout,), dtype=jnp.float32))

    out = basic_conv2d(x, w, b, gamma, beta, running_mean, running_var)
    out = jax.block_until_ready(out)

    ref = _reference(x, w, b, gamma, beta, running_mean, running_var)
    assert out.shape == (N, Cout, H, W)
    # bf16 MXU inputs + bf16 output store with f32 accumulation/epilogue vs. all-f32 reference.
    assert jnp.allclose(out, ref, atol=5e-2, rtol=5e-2), "Pallas kernel mismatch vs reference"

    print("KERNEL_OK")
</pallas_src>

<mosaic_0001>
module attributes {stable_mosaic.version = 11 : i64} {
  func.func @kernel(%arg0: i32, %arg1: i32, %arg2: memref<1x18x18x4xbf16, #tpu.memory_space<vmem>>, %arg3: memref<36x128xbf16, #tpu.memory_space<vmem>>, %arg4: memref<1x128xf32, #tpu.memory_space<vmem>>, %arg5: memref<1x128xf32, #tpu.memory_space<vmem>>, %arg6: memref<1x16x16x128xbf16, #tpu.memory_space<vmem>>, %arg7: memref<256x36xbf16, #tpu.memory_space<vmem>>) attributes {dimension_semantics = [#tpu.dimension_semantics<parallel>, #tpu.dimension_semantics<parallel>], iteration_bounds = array<i64: 2, 1>, scalar_prefetch = 0 : i64, scratch_operands = 1 : i64, tpu.core_type = #tpu.core_type<tc>, window_params = [{transform_indices = @transform_0, window_bounds = array<i64: 1, 18, 18, 4>}, {pipeline_mode = #tpu.pipeline_mode<synchronous>, transform_indices = @transform_1, window_bounds = array<i64: 36, 128>}, {pipeline_mode = #tpu.pipeline_mode<synchronous>, transform_indices = @transform_2, window_bounds = array<i64: 1, 128>}, {pipeline_mode = #tpu.pipeline_mode<synchronous>, transform_indices = @transform_3, window_bounds = array<i64: 1, 128>}, {transform_indices = @transform_4, window_bounds = array<i64: 1, 16, 16, 128>}]} {
    %c16_i32 = arith.constant 16 : i32
    %0 = arith.muli %arg1, %c16_i32 : i32
    %c0_i32 = arith.constant 0 : i32
    %1 = arith.addi %0, %c0_i32 : i32
    %c0 = arith.constant 0 : index
    %2 = arith.index_cast %1 : i32 to index
    %c0_0 = arith.constant 0 : index
    %c0_1 = arith.constant 0 : index
    %3 = vector.load %arg2[%c0, %2, %c0_0, %c0_1] : memref<1x18x18x4xbf16, #tpu.memory_space<vmem>>, vector<1x16x16x4xbf16>
    %4 = vector.shape_cast %3 : vector<1x16x16x4xbf16> to vector<256x4xbf16>
    %c0_2 = arith.constant 0 : index
    %c0_3 = arith.constant 0 : index
    %5 = vector.load %arg7[%c0_2, %c0_3] : memref<256x36xbf16, #tpu.memory_space<vmem>>, vector<256x4xbf16>
    tpu.vector_store %arg7[%c0_2, %c0_3], %4 {strides = array<i32>} : memref<256x36xbf16, #tpu.memory_space<vmem>>, vector<256x4xbf16>,
    %c0_i32_4 = arith.constant 0 : i32
    %6 = arith.addi %0, %c0_i32_4 : i32
    %c0_5 = arith.constant 0 : index
    %7 = arith.index_cast %6 : i32 to index
    %c1 = arith.constant 1 : index
    %c0_6 = arith.constant 0 : index
    %8 = vector.load %arg2[%c0_5, %7, %c1, %c0_6] : memref<1x18x18x4xbf16, #tpu.memory_space<vmem>>, vector<1x16x16x4xbf16>
    %9 = vector.shape_cast %8 : vector<1x16x16x4xbf16> to vector<256x4xbf16>
    %c0_7 = arith.constant 0 : index
    %c4 = arith.constant 4 : index
    %10 = vector.load %arg7[%c0_7, %c4] : memref<256x36xbf16, #tpu.memory_space<vmem>>, vector<256x4xbf16>
    tpu.vector_store %arg7[%c0_7, %c4], %9 {strides = array<i32>} : memref<256x36xbf16, #tpu.memory_space<vmem>>, vector<256x4xbf16>,
    %c0_i32_8 = arith.constant 0 : i32
    %11 = arith.addi %0, %c0_i32_8 : i32
    %c0_9 = arith.constant 0 : index
    %12 = arith.index_cast %11 : i32 to index
    %c2 = arith.constant 2 : index
    %c0_10 = arith.constant 0 : index
    %13 = vector.load %arg2[%c0_9, %12, %c2, %c0_10] : memref<1x18x18x4xbf16, #tpu.memory_space<vmem>>, vector<1x16x16x4xbf16>
    %14 = vector.shape_cast %13 : vector<1x16x16x4xbf16> to vector<256x4xbf16>
    %c0_11 = arith.constant 0 : index
    %c8 = arith.constant 8 : index
    %15 = vector.load %arg7[%c0_11, %c8] : memref<256x36xbf16, #tpu.memory_space<vmem>>, vector<256x4xbf16>
    tpu.vector_store %arg7[%c0_11, %c8], %14 {strides = array<i32>} : memref<256x36xbf16, #tpu.memory_space<vmem>>, vector<256x4xbf16>,
    %c1_i32 = arith.constant 1 : i32
    %16 = arith.addi %0, %c1_i32 : i32
    %c0_12 = arith.constant 0 : index
    %17 = arith.index_cast %16 : i32 to index
    %c0_13 = arith.constant 0 : index
    %c0_14 = arith.constant 0 : index
    %18 = vector.load %arg2[%c0_12, %17, %c0_13, %c0_14] : memref<1x18x18x4xbf16, #tpu.memory_space<vmem>>, vector<1x16x16x4xbf16>
    %19 = vector.shape_cast %18 : vector<1x16x16x4xbf16> to vector<256x4xbf16>
    %c0_15 = arith.constant 0 : index
    %c12 = arith.constant 12 : index
    %20 = vector.load %arg7[%c0_15, %c12] : memref<256x36xbf16, #tpu.memory_space<vmem>>, vector<256x4xbf16>
    tpu.vector_store %arg7[%c0_15, %c12], %19 {strides = array<i32>} : memref<256x36xbf16, #tpu.memory_space<vmem>>, vector<256x4xbf16>,
    %c1_i32_16 = arith.constant 1 : i32
    %21 = arith.addi %0, %c1_i32_16 : i32
    %c0_17 = arith.constant 0 : index
    %22 = arith.index_cast %21 : i32 to index
    %c1_18 = arith.constant 1 : index
    %c0_19 = arith.constant 0 : index
    %23 = vector.load %arg2[%c0_17, %22, %c1_18, %c0_19] : memref<1x18x18x4xbf16, #tpu.memory_space<vmem>>, vector<1x16x16x4xbf16>
    %24 = vector.shape_cast %23 : vector<1x16x16x4xbf16> to vector<256x4xbf16>
    %c0_20 = arith.constant 0 : index
    %c16 = arith.constant 16 : index
    %25 = vector.load %arg7[%c0_20, %c16] : memref<256x36xbf16, #tpu.memory_space<vmem>>, vector<256x4xbf16>
    tpu.vector_store %arg7[%c0_20, %c16], %24 {strides = array<i32>} : memref<256x36xbf16, #tpu.memory_space<vmem>>, vector<256x4xbf16>,
    %c1_i32_21 = arith.constant 1 : i32
    %26 = arith.addi %0, %c1_i32_21 : i32
    %c0_22 = arith.constant 0 : index
    %27 = arith.index_cast %26 : i32 to index
    %c2_23 = arith.constant 2 : index
    %c0_24 = arith.constant 0 : index
    %28 = vector.load %arg2[%c0_22, %27, %c2_23, %c0_24] : memref<1x18x18x4xbf16, #tpu.memory_space<vmem>>, vector<1x16x16x4xbf16>
    %29 = vector.shape_cast %28 : vector<1x16x16x4xbf16> to vector<256x4xbf16>
    %c0_25 = arith.constant 0 : index
    %c20 = arith.constant 20 : index
    %30 = vector.load %arg7[%c0_25, %c20] : memref<256x36xbf16, #tpu.memory_space<vmem>>, vector<256x4xbf16>
    tpu.vector_store %arg7[%c0_25, %c20], %29 {strides = array<i32>} : memref<256x36xbf16, #tpu.memory_space<vmem>>, vector<256x4xbf16>,
    %c2_i32 = arith.constant 2 : i32
    %31 = arith.addi %0, %c2_i32 : i32
    %c0_26 = arith.constant 0 : index
    %32 = arith.index_cast %31 : i32 to index
    %c0_27 = arith.constant 0 : index
    %c0_28 = arith.constant 0 : index
    %33 = vector.load %arg2[%c0_26, %32, %c0_27, %c0_28] : memref<1x18x18x4xbf16, #tpu.memory_space<vmem>>, vector<1x16x16x4xbf16>
    %34 = vector.shape_cast %33 : vector<1x16x16x4xbf16> to vector<256x4xbf16>
    %c0_29 = arith.constant 0 : index
    %c24 = arith.constant 24 : index
    %35 = vector.load %arg7[%c0_29, %c24] : memref<256x36xbf16, #tpu.memory_space<vmem>>, vector<256x4xbf16>
    tpu.vector_store %arg7[%c0_29, %c24], %34 {strides = array<i32>} : memref<256x36xbf16, #tpu.memory_space<vmem>>, vector<256x4xbf16>,
    %c2_i32_30 = arith.constant 2 : i32
    %36 = arith.addi %0, %c2_i32_30 : i32
    %c0_31 = arith.constant 0 : index
    %37 = arith.index_cast %36 : i32 to index
    %c1_32 = arith.constant 1 : index
    %c0_33 = arith.constant 0 : index
    %38 = vector.load %arg2[%c0_31, %37, %c1_32, %c0_33] : memref<1x18x18x4xbf16, #tpu.memory_space<vmem>>, vector<1x16x16x4xbf16>
    %39 = vector.shape_cast %38 : vector<1x16x16x4xbf16> to vector<256x4xbf16>
    %c0_34 = arith.constant 0 : index
    %c28 = arith.constant 28 : index
    %40 = vector.load %arg7[%c0_34, %c28] : memref<256x36xbf16, #tpu.memory_space<vmem>>, vector<256x4xbf16>
    tpu.vector_store %arg7[%c0_34, %c28], %39 {strides = array<i32>} : memref<256x36xbf16, #tpu.memory_space<vmem>>, vector<256x4xbf16>,
    %c2_i32_35 = arith.constant 2 : i32
    %41 = arith.addi %0, %c2_i32_35 : i32
    %c0_36 = arith.constant 0 : index
    %42 = arith.index_cast %41 : i32 to index
    %c2_37 = arith.constant 2 : index
    %c0_38 = arith.constant 0 : index
    %43 = vector.load %arg2[%c0_36, %42, %c2_37, %c0_38] : memref<1x18x18x4xbf16, #tpu.memory_space<vmem>>, vector<1x16x16x4xbf16>
    %44 = vector.shape_cast %43 : vector<1x16x16x4xbf16> to vector<256x4xbf16>
    %c0_39 = arith.constant 0 : index
    %c32 = arith.constant 32 : index
    %45 = vector.load %arg7[%c0_39, %c32] : memref<256x36xbf16, #tpu.memory_space<vmem>>, vector<256x4xbf16>
    tpu.vector_store %arg7[%c0_39, %c32], %44 {strides = array<i32>} : memref<256x36xbf16, #tpu.memory_space<vmem>>, vector<256x4xbf16>,
    %c0_40 = arith.constant 0 : index
    %c0_41 = arith.constant 0 : index
    %46 = vector.load %arg7[%c0_40, %c0_41] : memref<256x36xbf16, #tpu.memory_space<vmem>>, vector<256x36xbf16>
    %c0_42 = arith.constant 0 : index
    %c0_43 = arith.constant 0 : index
    %47 = vector.load %arg3[%c0_42, %c0_43] : memref<36x128xbf16, #tpu.memory_space<vmem>>, vector<36x128xbf16>
    %cst = arith.constant dense<0.000000e+00> : vector<256x128xf32>
    %48 = tpu.matmul %46, %47, %cst {dimension_numbers = #tpu.dot_dimension_numbers<[1], [0], [0], [1], [0, 0, 1, 1], [], []>} : vector<256x36xbf16>, vector<36x128xbf16>, vector<256x128xf32> -> vector<256x128xf32>
    %c0_44 = arith.constant 0 : index
    %c0_45 = arith.constant 0 : index
    %49 = vector.load %arg4[%c0_44, %c0_45] : memref<1x128xf32, #tpu.memory_space<vmem>>, vector<1x128xf32>
    %50 = vector.broadcast %49 : vector<1x128xf32> to vector<256x128xf32>
    %51 = arith.mulf %48, %50 : vector<256x128xf32>
    %c0_46 = arith.constant 0 : index
    %c0_47 = arith.constant 0 : index
    %52 = vector.load %arg5[%c0_46, %c0_47] : memref<1x128xf32, #tpu.memory_space<vmem>>, vector<1x128xf32>
    %53 = vector.broadcast %52 : vector<1x128xf32> to vector<256x128xf32>
    %54 = arith.addf %51, %53 : vector<256x128xf32>
    %cst_48 = arith.constant 0.000000e+00 : f32
    %55 = vector.broadcast %cst_48 : f32 to vector<256x128xf32>
    %56 = arith.maximumf %54, %55 : vector<256x128xf32>
    %57 = vector.shape_cast %56 : vector<256x128xf32> to vector<1x16x16x128xf32>
    %58 = arith.truncf %57 : vector<1x16x16x128xf32> to vector<1x16x16x128xbf16>
    %c0_49 = arith.constant 0 : index
    %c0_50 = arith.constant 0 : index
    %c0_51 = arith.constant 0 : index
    %c0_52 = arith.constant 0 : index
    %59 = vector.load %arg6[%c0_49, %c0_50, %c0_51, %c0_52] : memref<1x16x16x128xbf16, #tpu.memory_space<vmem>>, vector<1x16x16x128xbf16>
    tpu.vector_store %arg6[%c0_49, %c0_50, %c0_51, %c0_52], %58 {strides = array<i32>} : memref<1x16x16x128xbf16, #tpu.memory_space<vmem>>, vector<1x16x16x128xbf16>,
    return
  }
  func.func @transform_0(%arg0: i32, %arg1: i32) -> (i32, i32, i32, i32) {
    %c0_i32 = arith.constant 0 : i32
    %c0_i32_0 = arith.constant 0 : i32
    %c0_i32_1 = arith.constant 0 : i32
    %c0_i32_2 = arith.constant 0 : i32
    return %arg0, %c0_i32, %c0_i32_0, %c0_i32_1 : i32, i32, i32, i32
  }
  func.func @transform_1(%arg0: i32, %arg1: i32) -> (i32, i32) {
    %c0_i32 = arith.constant 0 : i32
    %c0_i32_0 = arith.constant 0 : i32
    %c0_i32_1 = arith.constant 0 : i32
    return %c0_i32, %c0_i32_0 : i32, i32
  }
  func.func @transform_2(%arg0: i32, %arg1: i32) -> (i32, i32) {
    %c0_i32 = arith.constant 0 : i32
    %c0_i32_0 = arith.constant 0 : i32
    %c0_i32_1 = arith.constant 0 : i32
    return %c0_i32, %c0_i32_0 : i32, i32
  }
  func.func @transform_3(%arg0: i32, %arg1: i32) -> (i32, i32) {
    %c0_i32 = arith.constant 0 : i32
    %c0_i32_0 = arith.constant 0 : i32
    %c0_i32_1 = arith.constant 0 : i32
    return %c0_i32, %c0_i32_0 : i32, i32
  }
  func.func @transform_4(%arg0: i32, %arg1: i32) -> (i32, i32, i32, i32) {
    %c0_i32 = arith.constant 0 : i32
    %c0_i32_0 = arith.constant 0 : i32
    %c0_i32_1 = arith.constant 0 : i32
    return %arg0, %arg1, %c0_i32, %c0_i32_0 : i32, i32, i32, i32
  }
}

</mosaic_0001>

<bundles_post_ra>
// kernel: basic_conv2d.1
= control target key start
LH: loop header
LB: loop body
LE: loop exit
PB: predicated region body
PF: predicated region fallthrough
CT: control target
= control target key end

     0   :  { %s4801_s15 = smov 0   ;;  %s4803_s16 = smov 0   ;;  %s6029_s0 = inlined_call_operand.vmem [shape: bf16[2,18,18,4], index: 0, kind: input, shape index: {}]   ;;  %s6030_s1 = inlined_call_operand.vmem [shape: bf16[36,128], index: 1, kind: input, shape index: {}]   ;;  %s6031_s2 = inlined_call_operand.vmem [shape: f32[1,128], index: 2, kind: input, shape index: {}]   ;;  %s6032_s3 = inlined_call_operand.vmem [shape: f32[1,128], index: 3, kind: input, shape index: {}]   ;;  %s6033_s4 = inlined_call_operand.vmem [shape: bf16[2,16,16,128], index: 4, kind: output, shape index: {}]  }
   0x1   :  { %s4805_s17 = smov 0  }
   0x2 LB: > { %s26_s18 = sadd.s32 1, %s4762_s16  ;;  %p3960_p0 = scmp.ge.s32.totalorder %s4766_s17, 1  ;;  %s4766_s17 = sphi %s4805_s17, %s14_s17   ;;  %s4762_s16 = sphi %s4803_s16, %s6039_s16   ;;  %s4758_s15 = sphi %s4801_s15, %s6038_s15  }
   0x3   : > { %p28_p1 = scmp.ge.s32.totalorder %s26_s18, 2  ;;  %p176_p2 = scmp.lt.s32.totalorder %s4766_s17, 3 }
   0x5   : > { %s6041_s18 = smov (%p28_p1, %s26_s18), 0  ;;  %p177_p3 = pnand %p3960_p0, %p176_p2 }
   0x6   : > { %p207_p4 = scmp.lt.s32.totalorder (!%p177_p3), %s4758_s15, 1  ;;  %vm1017_vm0 = vcmask (!%p177_p3), 1042432   ;;  %vm1018_vm1 = vcmask (!%p177_p3), 1046532   ;;  %s4768_s23 = smov (!%p177_p3), 12   ;;  %vm421_vm3 = vsmask.f32 (!%p177_p3), 3328 }
   0x7   : > { %180 = sbr.rel (%p177_p3) target bundleno = 665 (0x299), region = 36  ;;  %vm4827_vm2 = vmor (!%p177_p3), %vm1017_vm0, %vm1018_vm1  ;;  %vm422_vm4 = vsmask.f32 (!%p177_p3), 7440  ;;  %s4769_s24 = smov (!%p177_p3), 8   ;;  %vm356_vm6 = vcmask (!%p177_p3), 31744   ;;  %vm904_vm7 = vcmask (!%p177_p3), 64544  }
   0x8   : > { %vm4877_vm5 = vmor (!%p177_p3), %vm421_vm3, %vm422_vm4  ;;  %s4770_s25 = smov (!%p177_p3), 4   ;;  %s4771_s26 = smov (!%p177_p3), 16   ;;  %vm1228_vm8 = vcmask (!%p177_p3), 97344   ;;  %vm1409_vm9 = vcmask (!%p177_p3), 130144   ;;  %vm1954_vm10 = vcmask (!%p177_p3), 162944   ;;  %vm2275_vm11 = vcmask (!%p177_p3), 195744  }
   0x9   : > { %s4772_s27 = smov (!%p177_p3), 20   ;;  %s4773_s28 = smov (!%p177_p3), 24   ;;  %vm2456_vm12 = vcmask (!%p177_p3), 228544   ;;  %vm3001_vm13 = vcmask (!%p177_p3), 261344   ;;  %vm3322_vm14 = vcmask (!%p177_p3), 294144   ;;  %vm3375_vm15 = vcmask (!%p177_p3), 293888  }
   0xa   : > { %s4774_s29 = smov (!%p177_p3), 28   ;;  %s4775_s30 = smov (!%p177_p3), 32   ;;  %vm3424_vm0 = vcmask (!%p177_p3), 1041408  }
   0xe   : > { %s6043_s15 = smov (!%p207_p4, %s4758_s15), 1 }
   0xf   : > { %s4660_s19 = smul.u32 216, %s6043_s15 }
  0x11   : > { %s4825_s22 = scalar_lea.vmem %s6029_s0, %s4660_s19  ;;  %s4467_s19 = sshll.u32 %s6043_s15, 7 }
  0x12   : > { %v4693_v1 = vld [vmem:[%s4825_s22 + $0x6c] sm:$0xff]   ;;  %v945_v3 = vld [vmem:[%s4825_s22 + $0x60] sm:$0xe]  ;;  %v946_v4 = vld [vmem:[%s4825_s22 + $0x64] sm:$0xf] }
  0x13   : > { %v4694_v2 = vld [vmem:[%s4825_s22 + $0xc] sm:$0xff]   ;;  %1377 = vrot.lane.b32.xlu1 %v4693_v1, %s4768_s23  ;;  %v947_v5 = vld [vmem:[%s4825_s22 + $0x68] sm:$0x1]  ;;  %v4004_v6 = vrot.slane %v945_v3, 9  ;;  %v1078_v7 = vrot.slane %v946_v4, 5 }
  0x14   : > { %1361 = vrot.lane.b32.xlu0 %v4694_v2, %s4768_s23  ;;  %v1081_v8 = vrot.slane %v947_v5, 5  ;;  %v921_v9 = vld [vmem:[%s4825_s22] sm:$0xe]  ;;  %v922_v10 = vld [vmem:[%s4825_s22 + $0x4] sm:$0xf] }
  0x15   : > { %v923_v11 = vld [vmem:[%s4825_s22 + $0x8] sm:$0x1]  ;;  %v3996_v12 = vrot.slane %v921_v9, 9  ;;  %v1079_v13 = vsel %vm4827_vm2, %v4004_v6, %v1078_v7  ;;  %v1080_v14 = vrot.slane %v1078_v7, 4  ;;  %v1022_v15 = vrot.slane %v922_v10, 5 }
  0x16   : > { %v1025_v16 = vrot.slane %v923_v11, 5  ;;  %v948_v17 = vld [vmem:[%s4825_s22 + $0x6c] sm:$0xe]  ;;  %v949_v18 = vld [vmem:[%s4825_s22 + $0x70] sm:$0xf] }
  0x17   : > { %v950_v19 = vld [vmem:[%s4825_s22 + $0x74] sm:$0x1]  ;;  %v4005_v20 = vrot.slane %v948_v17, 9  ;;  %v1082_v21 = vsel %vm4827_vm2, %v1080_v14, %v1081_v8  ;;  %v1023_v22 = vsel %vm4827_vm2, %v3996_v12, %v1022_v15  ;;  %v1024_v23 = vrot.slane %v1022_v15, 4  ;;  %v924_v25 = vld [vmem:[%s4825_s22 + $0xc] sm:$0xe] }
  0x18   : > { %v1085_v24 = vrot.slane %v949_v18, 5  ;;  %v925_v26 = vld [vmem:[%s4825_s22 + $0x10] sm:$0xf]  ;;  %v4020_v27 = vcombine.low %v1079_v13, %v1082_v21  ;;  %v1088_v28 = vrot.slane %v950_v19, 5  ;;  %v926_v29 = vld [vmem:[%s4825_s22 + $0x14] sm:$0x1] }
  0x19   : > { %v3997_v30 = vrot.slane %v924_v25, 9  ;;  %v1029_v31 = vrot.slane %v925_v26, 5  ;;  %v1026_v32 = vsel %vm4827_vm2, %v1024_v23, %v1025_v16  ;;  %v1032_v35 = vrot.slane %v926_v29, 5  ;;  %v376_v36 = vld [vmem:[%s4825_s22 + $0xc] sm:$0xf] }
  0x1a   : > { %v1086_v33 = vsel %vm4827_vm2, %v4005_v20, %v1085_v24  ;;  %v1087_v34 = vrot.slane %v1085_v24, 4  ;;  %v377_v37 = vld [vmem:[%s4825_s22 + $0x10] sm:$0xf]  ;;  %1196 = vrot.lane.b32.xlu1 %v4020_v27, %s4769_s24  ;;  %v4012_v38 = vcombine.low %v1023_v22, %v1026_v32  ;;  %v378_v41 = vld [vmem:[%s4825_s22 + $0x14] sm:$0x1]  ;;  %v449_v42 = vshrl.u32 %v376_v36, 16 }
  0x1b   : > { %v1030_v39 = vsel %vm4827_vm2, %v3997_v30, %v1029_v31  ;;  %v1031_v40 = vrot.slane %v1029_v31, 4  ;;  %v373_v43 = vld [vmem:[%s4825_s22] sm:$0xf]  ;;  %v452_v45 = vshll.u32 %v376_v36, 16  ;;  %v458_v46 = vshll.u32 %v377_v37, 16 }
  0x1c   : > { %v1089_v44 = vsel %vm4827_vm2, %v1087_v34, %v1088_v28  ;;  %v462_v47 = vshrl.u32 %v377_v37, 16  ;;  %v374_v48 = vld [vmem:[%s4825_s22 + $0x4] sm:$0xf]  ;;  %1180 = vrot.lane.b32.xlu0 %v4012_v38, %s4769_s24  ;;  %v451_v51 = vrot.slane %v449_v42, 4  ;;  %v468_v52 = vshll.u32 %v378_v41, 16 }
  0x1d   : > { %v4021_v49 = vcombine.low %v1086_v33, %v1089_v44  ;;  %v1033_v50 = vsel %vm4827_vm2, %v1031_v40, %v1032_v35  ;;  %v375_v53 = vld [vmem:[%s4825_s22 + $0x8] sm:$0x1]  ;;  %v454_v55 = vrot.slane %v452_v45, 5  ;;  %v460_v56 = vrot.slane %v458_v46, 5  ;;  %v400_v58 = vld [vmem:[%s4825_s22 + $0x6c] sm:$0xf] }
  0x1e   : > { %v4013_v54 = vcombine.low %v1030_v39, %v1033_v50  ;;  %v464_v57 = vrot.slane %v462_v47, 4  ;;  %v470_v59 = vrot.slane %v468_v52, 5  ;;  %v425_v60 = vshrl.u32 %v373_v43, 16  ;;  %v401_v4 = vld [vmem:[%s4825_s22 + $0x70] sm:$0xf] }
  0x1f   : > { %1198 = vrot.lane.b32.xlu1 %v4021_v49, %s4769_s24  ;;  %v428_v61 = vshll.u32 %v373_v43, 16  ;;  %v434_v62 = vshll.u32 %v374_v48, 16  ;;  %v455_v63 = vor.u32 %v454_v55, %v451_v51  ;;  %v438_v2 = vshrl.u32 %v374_v48, 16  ;;  %v402_v9 = vld [vmem:[%s4825_s22 + $0x74] sm:$0x1] }
  0x20   : > { %v465_v1 = vor.u32 %v464_v57, %v460_v56  ;;  %v444_v3 = vshll.u32 %v375_v53, 16  ;;  %1182 = vrot.lane.b32.xlu0 %v4013_v54, %s4769_s24  ;;  %v427_v6 = vrot.slane %v425_v60, 4  ;;  %v641_v10 = vshrl.u32 %v400_v58, 16  ;;  %v397_v11 = vld [vmem:[%s4825_s22 + $0x60] sm:$0xf] }
  0x21   : > { %v430_v7 = vrot.slane %v428_v61, 5  ;;  %v436_v8 = vrot.slane %v434_v62, 5  ;;  %v456_v12 = vrot.slane %v455_v63, 4  ;;  %v440_v14 = vrot.slane %v438_v2, 4  ;;  %v398_v16 = vld [vmem:[%s4825_s22 + $0x64] sm:$0xf] }
  0x22   : > { %v466_v13 = vrot.slane %v465_v1, 4  ;;  %v446_v15 = vrot.slane %v444_v3, 5  ;;  %v643_v18 = vrot.slane %v641_v10, 4  ;;  %v644_v19 = vshll.u32 %v400_v58, 16  ;;  %v399_v35 = vld [vmem:[%s4825_s22 + $0x68] sm:$0x1] }
  0x23   : > { %v431_v17 = vor.u32 %v430_v7, %v427_v6  ;;  %v650_v20 = vshll.u32 %v401_v4, 16  ;;  %v461_v21 = vsel %vm4877_vm5, %v456_v12, %v460_v56  ;;  %v441_v23 = vor.u32 %v440_v14, %v436_v8  ;;  %v4100_v38 = vld [vmem:[%s4825_s22 + $0x6c] sm:$0xf]  ;;  %v4101_v43 = vld [vmem:[%s4825_s22 + $0x70] sm:$0xf]  ;;  %v4695_v6 = vld [vmem:[%s4825_s22 + $0x78] sm:$0xff]  }
  0x24   : > { %v471_v22 = vsel %vm4877_vm5, %v466_v13, %v470_v59  ;;  %v654_v24 = vshrl.u32 %v401_v4, 16  ;;  %v646_v27 = vrot.slane %v644_v19, 5  ;;  %v660_v31 = vshll.u32 %v402_v9, 16  ;;  %v4102_v54 = vld [vmem:[%s4825_s22 + $0x74] sm:$0x1] }
  0x25   : > { %v3981_v25 = vcombine.low %v461_v21, %v471_v22  ;;  %v432_v26 = vrot.slane %v431_v17, 4  ;;  %v652_v28 = vrot.slane %v650_v20, 5  ;;  %v442_v29 = vrot.slane %v441_v23, 4  ;;  %v4076_v57 = vld [vmem:[%s4825_s22 + $0xc] sm:$0xf] }
  0x26   : > { %v656_v30 = vrot.slane %v654_v24, 4  ;;  %v617_v32 = vshrl.u32 %v397_v11, 16  ;;  %v647_v34 = vor.u32 %v646_v27, %v643_v18  ;;  %v620_v36 = vshll.u32 %v397_v11, 16  ;;  %v4077_v62 = vld [vmem:[%s4825_s22 + $0x10] sm:$0xf] }
  0x27   : > { %858 = vrot.lane.b32.xlu1 %v3981_v25, %s4770_s25  ;;  %v437_v33 = vsel %vm4877_vm5, %v432_v26, %v436_v8  ;;  %v626_v37 = vshll.u32 %v398_v16, 16  ;;  %v447_v39 = vsel %vm4877_vm5, %v442_v29, %v446_v15  ;;  %v662_v41 = vrot.slane %v660_v31, 5  ;;  %v4078_v12 = vld [vmem:[%s4825_s22 + $0x14] sm:$0x1]  ;;  %v4103_v15 = vld [vmem:[%s4825_s22 + $0x78] sm:$0xf] }
  0x28   : > { %v657_v40 = vor.u32 %v656_v30, %v652_v28  ;;  %v619_v42 = vrot.slane %v617_v32, 4  ;;  %v3980_v44 = vcombine.low %v437_v33, %v447_v39  ;;  %v648_v45 = vrot.slane %v647_v34, 4  ;;  %v4104_v27 = vld [vmem:[%s4825_s22 + $0x7c] sm:$0xf]  ;;  %v4105_v33 = vld [vmem:[%s4825_s22 + $0x80] sm:$0x1] }
  0x29   : > { %v622_v46 = vrot.slane %v620_v36, 5  ;;  %v628_v47 = vrot.slane %v626_v37, 5  ;;  %v630_v49 = vshrl.u32 %v398_v16, 16  ;;  %v636_v50 = vshll.u32 %v399_v35, 16  ;;  %v4079_v34 = vld [vmem:[%s4825_s22 + $0x18] sm:$0xf] }
  0x2a   : > { %v658_v48 = vrot.slane %v657_v40, 4  ;;  %v1667_v51 = vshrl.u32 %v4100_v38, 16  ;;  %856 = vrot.lane.b32.xlu0 %v3980_v44, %s4770_s25  ;;  %v653_v52 = vsel %vm4877_vm5, %v648_v45, %v652_v28  ;;  %v1670_v55 = vshll.u32 %v4100_v38, 16  ;;  %v4080_v39 = vld [vmem:[%s4825_s22 + $0x1c] sm:$0xf] }
  0x2b   : > { %v623_v53 = vor.u32 %v622_v46, %v619_v42  ;;  %v1676_v56 = vshll.u32 %v4101_v43, 16  ;;  %v632_v59 = vrot.slane %v630_v49, 4  ;;  %v638_v60 = vrot.slane %v636_v50, 5  ;;  %v4696_v40 = vld [vmem:[%s4825_s22 + $0x18] sm:$0xff]   ;;  %v4081_v45 = vld [vmem:[%s4825_s22 + $0x20] sm:$0x1] }
  0x2c   : > { %v663_v58 = vsel %vm4877_vm5, %v658_v48, %v662_v41  ;;  %v1669_v61 = vrot.slane %v1667_v51, 4  ;;  %v1672_v2 = vrot.slane %v1670_v55, 5  ;;  %v1680_v7 = vshrl.u32 %v4101_v43, 16  ;;  %v4164_v50 = vld [vmem:[%s4825_s22 + $0x6c] sm:$0xe] }
  0x2d   : > { %v3989_v63 = vcombine.low %v653_v52, %v663_v58  ;;  %v624_v1 = vrot.slane %v623_v53, 4  ;;  %v1678_v3 = vrot.slane %v1676_v56, 5  ;;  %v633_v4 = vor.u32 %v632_v59, %v628_v47  ;;  %v4165_v55 = vld [vmem:[%s4825_s22 + $0x70] sm:$0xf] }
  0x2e   : > { %v1686_v8 = vshll.u32 %v4102_v54, 16  ;;  %v1475_v9 = vshrl.u32 %v4076_v57, 16  ;;  %v1673_v11 = vor.u32 %v1672_v2, %v1669_v61  ;;  %v1478_v13 = vshll.u32 %v4076_v57, 16  ;;  %v4140_v61 = vld [vmem:[%s4825_s22 + $0xc] sm:$0xe] }
  0x2f   : > { %874 = vrot.lane.b32.xlu1 %v3989_v63, %s4770_s25  ;;  %v629_v10 = vsel %vm4877_vm5, %v624_v1, %v628_v47  ;;  %v1484_v14 = vshll.u32 %v4077_v62, 16  ;;  %v634_v16 = vrot.slane %v633_v4, 4  ;;  %v1682_v17 = vrot.slane %v1680_v7, 4 }
  0x30   : > { %v1688_v18 = vrot.slane %v1686_v8, 5  ;;  %v1477_v19 = vrot.slane %v1475_v9, 4  ;;  %v1674_v20 = vrot.slane %v1673_v11, 4  ;;  %v1480_v21 = vrot.slane %v1478_v13, 5  ;;  %v4142_v9 = vld [vmem:[%s4825_s22 + $0x14] sm:$0x1] }
  0x31   : > { %v1486_v22 = vrot.slane %v1484_v14, 5  ;;  %v1488_v23 = vshrl.u32 %v4077_v62, 16  ;;  %v639_v24 = vsel %vm4877_vm5, %v634_v16, %v638_v60  ;;  %v1683_v25 = vor.u32 %v1682_v17, %v1678_v3  ;;  %v4166_v60 = vld [vmem:[%s4825_s22 + $0x74] sm:$0x1] }
  0x32   : > { %v1494_v26 = vshll.u32 %v4078_v12, 16  ;;  %v1691_v28 = vshrl.u32 %v4103_v15, 16  ;;  %v3988_v29 = vcombine.low %v629_v10, %v639_v24  ;;  %v1679_v30 = vsel %vm4877_vm5, %v1674_v20, %v1678_v3  ;;  %v4141_v3 = vld [vmem:[%s4825_s22 + $0x10] sm:$0xf] }
  0x33   : > { %1379 = vrot.lane.b32.xlu1 %v4695_v6, %s4768_s23  ;;  %v1481_v31 = vor.u32 %v1480_v21, %v1477_v19  ;;  %v1490_v32 = vrot.slane %v1488_v23, 4  ;;  %v1684_v35 = vrot.slane %v1683_v25, 4  ;;  %v1694_v38 = vshll.u32 %v4103_v15, 16 }
  0x34   : > { %v1496_v36 = vrot.slane %v1494_v26, 5  ;;  %v1693_v37 = vrot.slane %v1691_v28, 4  ;;  %872 = vrot.lane.b32.xlu0 %v3988_v29, %s4770_s25  ;;  %v1700_v43 = vshll.u32 %v4104_v27, 16  ;;  %v1704_v44 = vshrl.u32 %v4104_v27, 16  ;;  %v4168_v27 = vld [vmem:[%s4825_s22 + $0x7c] sm:$0xf] }
  0x35   : > { %v1482_v41 = vrot.slane %v1481_v31, 4  ;;  %v1491_v42 = vor.u32 %v1490_v32, %v1486_v22  ;;  %v1689_v46 = vsel %vm4877_vm5, %v1684_v35, %v1688_v18  ;;  %v1696_v47 = vrot.slane %v1694_v38, 5  ;;  %v4169_v28 = vld [vmem:[%s4825_s22 + $0x80] sm:$0x1]  ;;  %v4144_v38 = vld [vmem:[%s4825_s22 + $0x1c] sm:$0xf] }
  0x36   : > { %v1710_v48 = vshll.u32 %v4105_v33, 16  ;;  %v1499_v49 = vshrl.u32 %v4079_v34, 16  ;;  %v4132_v51 = vcombine.low %v1679_v30, %v1689_v46  ;;  %v1702_v54 = vrot.slane %v1700_v43, 5  ;;  %v4143_v33 = vld [vmem:[%s4825_s22 + $0x18] sm:$0xe] }
  0x37   : > { %v1487_v52 = vsel %vm4877_vm5, %v1482_v41, %v1486_v22  ;;  %v1492_v53 = vrot.slane %v1491_v42, 4  ;;  %v1697_v56 = vor.u32 %v1696_v47, %v1693_v37  ;;  %v1706_v57 = vrot.slane %v1704_v44, 4  ;;  %v4167_v22 = vld [vmem:[%s4825_s22 + $0x78] sm:$0xe] }
  0x38   : > { %v1712_v58 = vrot.slane %v1710_v48, 5  ;;  %v1501_v59 = vrot.slane %v1499_v49, 4  ;;  %1363 = vrot.lane.b32.xlu0 %v4696_v40, %s4768_s23  ;;  %1922 = vrot.lane.b32.xlu1 %v4132_v51, %s4771_s26  ;;  %v1502_v63 = vshll.u32 %v4079_v34, 16  ;;  %v1508_v1 = vshll.u32 %v4080_v39, 16  ;;  %v4292_v44 = vld [vmem:[%s4825_s22 + $0x78] sm:$0xf] }
  0x39   : > { %v1497_v62 = vsel %vm4877_vm5, %v1492_v53, %v1496_v36  ;;  %v1512_v2 = vshrl.u32 %v4080_v39, 16  ;;  %v1698_v6 = vrot.slane %v1697_v56, 4  ;;  %v1707_v7 = vor.u32 %v1706_v57, %v1702_v54  ;;  %v4145_v39 = vld [vmem:[%s4825_s22 + $0x20] sm:$0x1] }
  0x3a   : > { %v4124_v4 = vcombine.low %v1487_v52, %v1497_v62  ;;  %v1518_v8 = vshll.u32 %v4081_v45, 16  ;;  %v1504_v10 = vrot.slane %v1502_v63, 5  ;;  %v1510_v11 = vrot.slane %v1508_v1, 5  ;;  %v4293_v45 = vld [vmem:[%s4825_s22 + $0x7c] sm:$0xf] }
  0x3b   : > { %v1514_v12 = vrot.slane %v1512_v2, 4  ;;  %v4196_v13 = vrot.slane %v4164_v50, 9  ;;  %v1703_v14 = vsel %vm4877_vm5, %v1698_v6, %v1702_v54  ;;  %v1708_v15 = vrot.slane %v1707_v7, 4  ;;  %v4294_v54 = vld [vmem:[%s4825_s22 + $0x80] sm:$0x1] }
  0x3c   : > { %v1520_v16 = vrot.slane %v1518_v8, 5  ;;  %v2125_v17 = vrot.slane %v4165_v55, 5  ;;  %1906 = vrot.lane.b32.xlu0 %v4124_v4, %s4771_s26  ;;  %v1505_v18 = vor.u32 %v1504_v10, %v1501_v59  ;;  %v2128_v20 = vrot.slane %v4166_v60, 5  ;;  %v4268_v59 = vld [vmem:[%s4825_s22 + $0x18] sm:$0xf] }
  0x3d   : > { %v1515_v19 = vor.u32 %v1514_v12, %v1510_v11  ;;  %v4188_v21 = vrot.slane %v4140_v61, 9  ;;  %v1713_v23 = vsel %vm4877_vm5, %v1708_v15, %v1712_v58  ;;  %v2069_v26 = vrot.slane %v4141_v3, 5  ;;  %v4269_v1 = vld [vmem:[%s4825_s22 + $0x1c] sm:$0xf]  ;;  %v4270_v10 = vld [vmem:[%s4825_s22 + $0x20] sm:$0x1] }
  0x3e   : > { %v2126_v24 = vsel %vm4827_vm2, %v4196_v13, %v2125_v17  ;;  %v2127_v25 = vrot.slane %v2125_v17, 4  ;;  %v4133_v29 = vcombine.low %v1703_v14, %v1713_v23  ;;  %v1506_v30 = vrot.slane %v1505_v18, 4  ;;  %v4697_v17 = vld [vmem:[%s4825_s22 + $0x78] sm:$0xff]  }
  0x3f   : > { %v1516_v31 = vrot.slane %v1515_v19, 4  ;;  %v2072_v32 = vrot.slane %v4142_v9, 5  ;;  %v2070_v35 = vsel %vm4827_vm2, %v4188_v21, %v2069_v26  ;;  %v2071_v36 = vrot.slane %v2069_v26, 4 }
  0x40   : > { %v2129_v34 = vsel %vm4827_vm2, %v2127_v25, %v2128_v20  ;;  %v4197_v37 = vrot.slane %v4167_v22, 9  ;;  %1924 = vrot.lane.b32.xlu1 %v4133_v29, %s4771_s26  ;;  %v1511_v40 = vsel %vm4877_vm5, %v1506_v30, %v1510_v11  ;;  %v2132_v43 = vrot.slane %v4168_v27, 5  ;;  %v4296_v22 = vld [vmem:[%s4825_s22 + $0x88] sm:$0xf]  ;;  %v4698_v27 = vld [vmem:[%s4825_s22 + $0x18] sm:$0xff]  }
  0x41   : > { %v1521_v41 = vsel %vm4877_vm5, %v1516_v31, %v1520_v16  ;;  %v4212_v42 = vcombine.low %v2126_v24, %v2129_v34  ;;  %v2073_v47 = vsel %vm4827_vm2, %v2071_v36, %v2072_v32  ;;  %v2135_v48 = vrot.slane %v4169_v28, 5  ;;  %v4295_v16 = vld [vmem:[%s4825_s22 + $0x84] sm:$0xf] }
  0x42   : > { %v4125_v46 = vcombine.low %v1511_v40, %v1521_v41  ;;  %v4189_v49 = vrot.slane %v4143_v33, 9  ;;  %v4204_v50 = vcombine.low %v2070_v35, %v2073_v47  ;;  %v2133_v51 = vsel %vm4827_vm2, %v4197_v37, %v2132_v43  ;;  %v4297_v35 = vld [vmem:[%s4825_s22 + $0x8c] sm:$0x1]  ;;  %v4271_v37 = vld [vmem:[%s4825_s22 + $0x24] sm:$0xf] }
  0x43   : > { %v2134_v52 = vrot.slane %v2132_v43, 4  ;;  %v2076_v53 = vrot.slane %v4144_v38, 5  ;;  %v2079_v55 = vrot.slane %v4145_v39, 5  ;;  %v2714_v56 = vshrl.u32 %v4292_v44, 16  ;;  %v4699_v38 = vld [vmem:[%s4825_s22 + $0x84] sm:$0xff]  }
  0x44   : > { %1908 = vrot.lane.b32.xlu0 %v4125_v46, %s4771_s26  ;;  %v2717_v57 = vshll.u32 %v4292_v44, 16  ;;  %v2723_v58 = vshll.u32 %v4293_v45, 16  ;;  %2243 = vrot.lane.b32.xlu1 %v4212_v42, %s4772_s27  ;;  %v2727_v63 = vshrl.u32 %v4293_v45, 16  ;;  %v2733_v9 = vshll.u32 %v4294_v54, 16  ;;  %v4272_v43 = vld [vmem:[%s4825_s22 + $0x28] sm:$0xf] }
  0x45   : > { %v2136_v60 = vsel %vm4827_vm2, %v2134_v52, %v2135_v48  ;;  %v2077_v61 = vsel %vm4827_vm2, %v4189_v49, %v2076_v53  ;;  %v2078_v62 = vrot.slane %v2076_v53, 4  ;;  %v2716_v3 = vrot.slane %v2714_v56, 4  ;;  %v4273_v48 = vld [vmem:[%s4825_s22 + $0x2c] sm:$0x1]  ;;  %v4356_v53 = vld [vmem:[%s4825_s22 + $0x78] sm:$0xe] }
  0x46   : > { %v4213_v2 = vcombine.low %v2133_v51, %v2136_v60  ;;  %v2719_v4 = vrot.slane %v2717_v57, 5  ;;  %v2725_v6 = vrot.slane %v2723_v58, 5  ;;  %v2729_v8 = vrot.slane %v2727_v63, 4  ;;  %v4700_v54 = vld [vmem:[%s4825_s22 + $0x24] sm:$0xff]  }
  0x47   : > { %v2080_v7 = vsel %vm4827_vm2, %v2078_v62, %v2079_v55  ;;  %v2522_v11 = vshrl.u32 %v4268_v59, 16  ;;  %v2525_v14 = vshll.u32 %v4268_v59, 16  ;;  %v2531_v15 = vshll.u32 %v4269_v1, 16  ;;  %v4357_v59 = vld [vmem:[%s4825_s22 + $0x7c] sm:$0xf] }
  0x48   : > { %2227 = vrot.lane.b32.xlu0 %v4204_v50, %s4772_s27  ;;  %v4205_v12 = vcombine.low %v2077_v61, %v2080_v7  ;;  %v2720_v13 = vor.u32 %v2719_v4, %v2716_v3  ;;  %2245 = vrot.lane.b32.xlu1 %v4213_v2, %s4772_s27  ;;  %v2730_v18 = vor.u32 %v2729_v8, %v2725_v6  ;;  %v2735_v19 = vrot.slane %v2733_v9, 5  ;;  %v4332_v7 = vld [vmem:[%s4825_s22 + $0x18] sm:$0xe]  ;;  %v4333_v8 = vld [vmem:[%s4825_s22 + $0x1c] sm:$0xf] }
  0x49   : > { %v2524_v20 = vrot.slane %v2522_v11, 4  ;;  %v2535_v21 = vshrl.u32 %v4269_v1, 16  ;;  %v2527_v24 = vrot.slane %v2525_v14, 5  ;;  %v2533_v25 = vrot.slane %v2531_v15, 5  ;;  %v4358_v1 = vld [vmem:[%s4825_s22 + $0x80] sm:$0x1] }
  0x4a   : > { %v2721_v23 = vrot.slane %v2720_v13, 4  ;;  %v2541_v26 = vshll.u32 %v4270_v10, 16  ;;  %v2731_v28 = vrot.slane %v2730_v18, 4  ;;  %v2738_v30 = vshrl.u32 %v4295_v16, 16 }
  0x4b   : > { %v2537_v29 = vrot.slane %v2535_v21, 4  ;;  %v2741_v31 = vshll.u32 %v4295_v16, 16  ;;  %v2528_v33 = vor.u32 %v2527_v24, %v2524_v20  ;;  %v2747_v36 = vshll.u32 %v4296_v22, 16 }
  0x4c   : > { %2229 = vrot.lane.b32.xlu0 %v4205_v12, %s4772_s27  ;;  %v2726_v32 = vsel %vm4877_vm5, %v2721_v23, %v2725_v6  ;;  %v2543_v34 = vrot.slane %v2541_v26, 5  ;;  %2424 = vrot.lane.b32.xlu1 %v4697_v17, %s4773_s28  ;;  %v2736_v39 = vsel %vm4877_vm5, %v2731_v28, %v2735_v19  ;;  %v2740_v41 = vrot.slane %v2738_v30, 4  ;;  %v4334_v17 = vld [vmem:[%s4825_s22 + $0x20] sm:$0x1] }
  0x4d   : > { %v2538_v40 = vor.u32 %v2537_v29, %v2533_v25  ;;  %v2743_v42 = vrot.slane %v2741_v31, 5  ;;  %v4324_v44 = vcombine.low %v2726_v32, %v2736_v39  ;;  %v2529_v45 = vrot.slane %v2528_v33, 4  ;;  %v405_v32 = vld [vmem:[%s4825_s22 + $0x80] sm:$0x1] }
  0x4e   : > { %v2749_v46 = vrot.slane %v2747_v36, 5  ;;  %v2751_v47 = vshrl.u32 %v4296_v22, 16  ;;  %v2757_v51 = vshll.u32 %v4297_v35, 16  ;;  %v2546_v52 = vshrl.u32 %v4271_v37, 16  ;;  %v403_v22 = vld [vmem:[%s4825_s22 + $0x78] sm:$0xf] }
  0x4f   : > { %v2539_v49 = vrot.slane %v2538_v40, 4  ;;  %v2744_v50 = vor.u32 %v2743_v42, %v2740_v41  ;;  %v2534_v55 = vsel %vm4877_vm5, %v2529_v45, %v2533_v25  ;;  %v2549_v57 = vshll.u32 %v4271_v37, 16  ;;  %v379_v37 = vld [vmem:[%s4825_s22 + $0x18] sm:$0xf] }
  0x50   : > { %2408 = vrot.lane.b32.xlu0 %v4698_v27, %s4773_s28  ;;  %v2753_v56 = vrot.slane %v2751_v47, 4  ;;  %v2555_v58 = vshll.u32 %v4272_v43, 16  ;;  %2426 = vrot.lane.b32.xlu1 %v4699_v38, %s4773_s28  ;;  %v2759_v62 = vrot.slane %v2757_v51, 5  ;;  %v2548_v63 = vrot.slane %v2546_v52, 4  ;;  %v404_v27 = vld [vmem:[%s4825_s22 + $0x7c] sm:$0xf] }
  0x51   : > { %v2544_v60 = vsel %vm4877_vm5, %v2539_v49, %v2543_v34  ;;  %v2745_v61 = vrot.slane %v2744_v50, 4  ;;  %v2551_v4 = vrot.slane %v2549_v57, 5  ;;  %v2559_v10 = vshrl.u32 %v4272_v43, 16  ;;  %v380_v38 = vld [vmem:[%s4825_s22 + $0x1c] sm:$0xf] }
  0x52   : > { %v4316_v2 = vcombine.low %v2534_v55, %v2544_v60  ;;  %v2754_v3 = vor.u32 %v2753_v56, %v2749_v46  ;;  %v2557_v6 = vrot.slane %v2555_v58, 5  ;;  %v2565_v11 = vshll.u32 %v4273_v48, 16  ;;  %v381_v43 = vld [vmem:[%s4825_s22 + $0x20] sm:$0x1]  ;;  %v4359_v48 = vld [vmem:[%s4825_s22 + $0x84] sm:$0xe] }
  0x53   : > { %v2750_v9 = vsel %vm4877_vm5, %v2745_v61, %v2749_v46  ;;  %v4388_v12 = vrot.slane %v4356_v53, 9  ;;  %v2552_v14 = vor.u32 %v2551_v4, %v2548_v63  ;;  %v3172_v15 = vrot.slane %v4357_v59, 5  ;;  %v4360_v53 = vld [vmem:[%s4825_s22 + $0x88] sm:$0xf]  ;;  %v4335_v59 = vld [vmem:[%s4825_s22 + $0x24] sm:$0xe] }
  0x54   : > { %2410 = vrot.lane.b32.xlu0 %v4700_v54, %s4773_s28  ;;  %v2755_v13 = vrot.slane %v2754_v3, 4  ;;  %v3175_v16 = vrot.slane %v4358_v1, 5  ;;  %2969 = vrot.lane.b32.xlu1 %v4324_v44, %s4774_s29  ;;  %v2561_v18 = vrot.slane %v2559_v10, 4  ;;  %v2567_v19 = vrot.slane %v2565_v11, 5  ;;  %v4361_v54 = vld [vmem:[%s4825_s22 + $0x8c] sm:$0x1] }
  0x55   : > { %v4380_v20 = vrot.slane %v4332_v7, 9  ;;  %v3116_v21 = vrot.slane %v4333_v8, 5  ;;  %v2553_v24 = vrot.slane %v2552_v14, 4  ;;  %v3173_v25 = vsel %vm4827_vm2, %v4388_v12, %v3172_v15  ;;  %v4336_v1 = vld [vmem:[%s4825_s22 + $0x28] sm:$0xf] }
  0x56   : > { %v2760_v23 = vsel %vm4877_vm5, %v2755_v13, %v2759_v62  ;;  %v3174_v26 = vrot.slane %v3172_v15, 4  ;;  %v2562_v29 = vor.u32 %v2561_v18, %v2557_v6  ;;  %v3119_v35 = vrot.slane %v4334_v17, 5  ;;  %v4337_v7 = vld [vmem:[%s4825_s22 + $0x2c] sm:$0x1]  ;;  %v406_v12 = vld [vmem:[%s4825_s22 + $0x84] sm:$0xf] }
  0x57   : > { %v4325_v28 = vcombine.low %v2750_v9, %v2760_v23  ;;  %v3117_v30 = vsel %vm4827_vm2, %v4380_v20, %v3116_v21  ;;  %v3118_v31 = vrot.slane %v3116_v21, 4  ;;  %v2558_v33 = vsel %vm4877_vm5, %v2553_v24, %v2557_v6  ;;  %v407_v21 = vld [vmem:[%s4825_s22 + $0x88] sm:$0xf] }
  0x58   : > { %2953 = vrot.lane.b32.xlu0 %v4316_v2, %s4774_s29  ;;  %v3176_v34 = vsel %vm4827_vm2, %v3174_v26, %v3175_v16  ;;  %v665_v36 = vshrl.u32 %v403_v22, 16  ;;  %v2563_v39 = vrot.slane %v2562_v29, 4  ;;  %v668_v41 = vshll.u32 %v403_v22, 16 }
  0x59   : > { %2971 = vrot.lane.b32.xlu1 %v4325_v28, %s4774_s29  ;;  %v4404_v40 = vcombine.low %v3173_v25, %v3176_v34  ;;  %v674_v42 = vshll.u32 %v404_v27, 16  ;;  %v3120_v44 = vsel %vm4827_vm2, %v3118_v31, %v3119_v35  ;;  %v678_v46 = vshrl.u32 %v404_v27, 16 }
  0x5a   : > { %v667_v45 = vrot.slane %v665_v36, 4  ;;  %v684_v47 = vshll.u32 %v405_v32, 16  ;;  %v2568_v49 = vsel %vm4877_vm5, %v2563_v39, %v2567_v19  ;;  %v4396_v50 = vcombine.low %v3117_v30, %v3120_v44  ;;  %v382_v39 = vld [vmem:[%s4825_s22 + $0x24] sm:$0xf] }
  0x5b   : > { %v670_v51 = vrot.slane %v668_v41, 5  ;;  %v676_v52 = vrot.slane %v674_v42, 5  ;;  %v4317_v55 = vcombine.low %v2558_v33, %v2568_v49  ;;  %v680_v56 = vrot.slane %v678_v46, 4  ;;  %v408_v33 = vld [vmem:[%s4825_s22 + $0x8c] sm:$0x1] }
  0x5c   : > { %v686_v57 = vrot.slane %v684_v47, 5  ;;  %v473_v58 = vshrl.u32 %v379_v37, 16  ;;  %v476_v61 = vshll.u32 %v379_v37, 16  ;;  %v482_v62 = vshll.u32 %v380_v38, 16  ;;  %v951_v46 = vld [vmem:[%s4825_s22 + $0x78] sm:$0xe] }
  0x5d   : > { %3290 = vrot.lane.b32.xlu1 %v4404_v40, %s4775_s30  ;;  %v671_v60 = vor.u32 %v670_v51, %v667_v45  ;;  %v486_v63 = vshrl.u32 %v380_v38, 16  ;;  %2955 = vrot.lane.b32.xlu0 %v4317_v55, %s4774_s29  ;;  %v681_v2 = vor.u32 %v680_v56, %v676_v52  ;;  %v492_v4 = vshll.u32 %v381_v43, 16  ;;  %v383_v40 = vld [vmem:[%s4825_s22 + $0x28] sm:$0xf]  ;;  %v384_v45 = vld [vmem:[%s4825_s22 + $0x2c] sm:$0x1] }
  0x5e   : > { %v475_v3 = vrot.slane %v473_v58, 4  ;;  %v4389_v6 = vrot.slane %v4359_v48, 9  ;;  %v478_v9 = vrot.slane %v476_v61, 5  ;;  %v484_v10 = vrot.slane %v482_v62, 5  ;;  %v952_v51 = vld [vmem:[%s4825_s22 + $0x7c] sm:$0xf] }
  0x5f   : > { %v672_v8 = vrot.slane %v671_v60, 4  ;;  %v488_v11 = vrot.slane %v486_v63, 4  ;;  %v682_v13 = vrot.slane %v681_v2, 4  ;;  %v494_v14 = vrot.slane %v492_v4, 5  ;;  %v953_v56 = vld [vmem:[%s4825_s22 + $0x80] sm:$0x1] }
  0x60   : > { %v3179_v15 = vrot.slane %v4360_v53, 5  ;;  %v3182_v16 = vrot.slane %v4361_v54, 5  ;;  %v479_v18 = vor.u32 %v478_v9, %v475_v3  ;;  %v4381_v20 = vrot.slane %v4335_v59, 9  ;;  %v927_v61 = vld [vmem:[%s4825_s22 + $0x18] sm:$0xe] }
  0x61   : > { %v677_v17 = vsel %vm4877_vm5, %v672_v8, %v676_v52  ;;  %v489_v19 = vor.u32 %v488_v11, %v484_v10  ;;  %3274 = vrot.lane.b32.xlu0 %v4396_v50, %s4775_s30  ;;  %v687_v22 = vsel %vm4877_vm5, %v682_v13, %v686_v57  ;;  %v3123_v25 = vrot.slane %v4336_v1, 5  ;;  %v928_v3 = vld [vmem:[%s4825_s22 + $0x1c] sm:$0xf]  ;;  %v929_v9 = vld [vmem:[%s4825_s22 + $0x20] sm:$0x1] }
  0x62   : > { %v3180_v23 = vsel %vm4827_vm2, %v4389_v6, %v3179_v15  ;;  %v3181_v24 = vrot.slane %v3179_v15, 4  ;;  %v3990_v26 = vcombine.low %v677_v17, %v687_v22  ;;  %v480_v27 = vrot.slane %v479_v18, 4  ;;  %v4723_v15 = vld [vmem:[%s6030_s1] sm:$0xff]  }
  0x63   : > { %v490_v28 = vrot.slane %v489_v19, 4  ;;  %v3126_v29 = vrot.slane %v4337_v7, 5  ;;  %v3124_v31 = vsel %vm4827_vm2, %v4381_v20, %v3123_v25  ;;  %v3125_v32 = vrot.slane %v3123_v25, 4  ;;  %v955_v20 = vld [vmem:[%s4825_s22 + $0x88] sm:$0xf]  ;;  %4614 = vmatprep.subr.bf16.mxu0 %v4723_v15  ;;  %4652 = vmatprep.subr.bf16.mxu1 %v4723_v15 }
  0x64   : > { %v3183_v30 = vsel %vm4827_vm2, %v3181_v24, %v3182_v16  ;;  %v689_v34 = vshrl.u32 %v406_v12, 16  ;;  %876 = vrot.lane.b32.xlu1 %v3990_v26, %s4770_s25  ;;  %v485_v35 = vsel %vm4877_vm5, %v480_v27, %v484_v10  ;;  %v692_v38 = vshll.u32 %v406_v12, 16  ;;  %v930_v26 = vld [vmem:[%s4825_s22 + $0x24] sm:$0xe]  ;;  %v4724_v27 = vld [vmem:[%s6030_s1 + $0x8] sm:$0xff]   ;;  %4615 = vmatpush3.bf16.msra.mxu0 %v4723_v15 }
  0x65   : > { %v495_v36 = vsel %vm4877_vm5, %v490_v28, %v494_v14  ;;  %v4405_v37 = vcombine.low %v3180_v23, %v3183_v30  ;;  %v3127_v42 = vsel %vm4827_vm2, %v3125_v32, %v3126_v29  ;;  %v698_v44 = vshll.u32 %v407_v21, 16  ;;  %v954_v14 = vld [vmem:[%s4825_s22 + $0x84] sm:$0xe]  ;;  %v931_v32 = vld [vmem:[%s4825_s22 + $0x28] sm:$0xf]  ;;  %4655 = vmatpush3.bf16.msra.mxu1 %v4723_v15  ;;  %4616 = vmatprep.subr.bf16.mxu0 %v4724_v27 }
  0x66   : > { %v3982_v41 = vcombine.low %v485_v35, %v495_v36  ;;  %v691_v43 = vrot.slane %v689_v34, 4  ;;  %v4397_v47 = vcombine.low %v3124_v31, %v3127_v42  ;;  %v694_v48 = vrot.slane %v692_v38, 5  ;;  %v4106_v42 = vld [vmem:[%s4825_s22 + $0x84] sm:$0xf]  ;;  %4653 = vmatprep.subr.bf16.mxu1 %v4724_v27 }
  0x67   : > { %v702_v49 = vshrl.u32 %v407_v21, 16  ;;  %v708_v50 = vshll.u32 %v408_v33, 16  ;;  %v700_v52 = vrot.slane %v698_v44, 5  ;;  %v497_v53 = vshrl.u32 %v382_v39, 16  ;;  %v956_v21 = vld [vmem:[%s4825_s22 + $0x8c] sm:$0x1] }
  0x68   : > { %860 = vrot.lane.b32.xlu0 %v3982_v41, %s4770_s25  ;;  %v500_v54 = vshll.u32 %v382_v39, 16  ;;  %v506_v55 = vshll.u32 %v383_v40, 16  ;;  %3292 = vrot.lane.b32.xlu1 %v4405_v37, %s4775_s30  ;;  %v695_v57 = vor.u32 %v694_v48, %v691_v43  ;;  %v510_v60 = vshrl.u32 %v383_v40, 16  ;;  %v932_v37 = vld [vmem:[%s4825_s22 + $0x2c] sm:$0x1] }
  0x69   : > { %v704_v58 = vrot.slane %v702_v49, 4  ;;  %v710_v59 = vrot.slane %v708_v50, 5  ;;  %v499_v62 = vrot.slane %v497_v53, 4  ;;  %v516_v2 = vshll.u32 %v384_v45, 16  ;;  %v4107_v43 = vld [vmem:[%s4825_s22 + $0x88] sm:$0xf]  ;;  %4617 = vmatpush3.bf16.msra.mxu0 %v4724_v27  ;;  %4656 = vmatpush3.bf16.msra.mxu1 %v4724_v27 }
  0x6a   : > { %v502_v63 = vrot.slane %v500_v54, 5  ;;  %v508_v1 = vrot.slane %v506_v55, 5  ;;  %v696_v4 = vrot.slane %v695_v57, 4  ;;  %v512_v7 = vrot.slane %v510_v60, 4  ;;  %v4108_v48 = vld [vmem:[%s4825_s22 + $0x8c] sm:$0x1] }
  0x6b   : > { %v705_v6 = vor.u32 %v704_v58, %v700_v52  ;;  %v4006_v8 = vrot.slane %v951_v46, 9  ;;  %v518_v11 = vrot.slane %v516_v2, 5  ;;  %v1092_v12 = vrot.slane %v952_v51, 5  ;;  %v4082_v53 = vld [vmem:[%s4825_s22 + $0x24] sm:$0xf] }
  0x6c   : > { %3276 = vrot.lane.b32.xlu0 %v4397_v47, %s4775_s30  ;;  %v503_v10 = vor.u32 %v502_v63, %v499_v62  ;;  %v1095_v13 = vrot.slane %v953_v56, 5  ;;  %v701_v16 = vsel %vm4877_vm5, %v696_v4, %v700_v52  ;;  %v513_v18 = vor.u32 %v512_v7, %v508_v1  ;;  %v4083_v54 = vld [vmem:[%s4825_s22 + $0x28] sm:$0xf] }
  0x6d   : > { %v706_v17 = vrot.slane %v705_v6, 4  ;;  %v3998_v19 = vrot.slane %v927_v61, 9  ;;  %v1093_v23 = vsel %vm4827_vm2, %v4006_v8, %v1092_v12  ;;  %v1094_v24 = vrot.slane %v1092_v12, 4 }
  0x6e   : > { %v504_v22 = vrot.slane %v503_v10, 4  ;;  %v1036_v25 = vrot.slane %v928_v3, 5  ;;  %v514_v29 = vrot.slane %v513_v18, 4  ;;  %v1039_v30 = vrot.slane %v929_v9, 5 }
  0x6f   : > { %v711_v28 = vsel %vm4877_vm5, %v706_v17, %v710_v59  ;;  %v4007_v31 = vrot.slane %v954_v14, 9  ;;  %v1096_v35 = vsel %vm4827_vm2, %v1094_v24, %v1095_v13  ;;  %v1099_v41 = vrot.slane %v955_v20, 5  ;;  %v4084_v59 = vld [vmem:[%s4825_s22 + $0x2c] sm:$0x1]  ;;  %v4701_v20 = vld [vmem:[%s4825_s22 + $0x84] sm:$0xff]  }
  0x70   : > { %v3991_v33 = vcombine.low %v701_v16, %v711_v28  ;;  %v509_v34 = vsel %vm4877_vm5, %v504_v22, %v508_v1  ;;  %v1037_v36 = vsel %vm4827_vm2, %v3998_v19, %v1036_v25  ;;  %v519_v38 = vsel %vm4877_vm5, %v514_v29, %v518_v11  ;;  %v4109_v1 = vld [vmem:[%s4825_s22 + $0x90] sm:$0xf]  ;;  %v4110_v19 = vld [vmem:[%s4825_s22 + $0x94] sm:$0xf]  ;;  %v4111_v29 = vld [vmem:[%s4825_s22 + $0x98] sm:$0x1] }
  0x71   : > { %v4022_v39 = vcombine.low %v1093_v23, %v1096_v35  ;;  %v1038_v40 = vrot.slane %v1036_v25, 4  ;;  %v3983_v44 = vcombine.low %v509_v34, %v519_v38  ;;  %v1102_v45 = vrot.slane %v956_v21, 5  ;;  %v4085_v35 = vld [vmem:[%s4825_s22 + $0x30] sm:$0xf] }
  0x72   : > { %878 = vrot.lane.b32.xlu1 %v3991_v33, %s4770_s25  ;;  %v3999_v46 = vrot.slane %v930_v26, 9  ;;  %v1043_v47 = vrot.slane %v931_v32, 5  ;;  %v1100_v50 = vsel %vm4827_vm2, %v4007_v31, %v1099_v41  ;;  %v1101_v51 = vrot.slane %v1099_v41, 4  ;;  %v4703_v41 = vld [vmem:[%s4825_s22 + $0x90] sm:$0xff]  }
  0x73   : > { %v1040_v49 = vsel %vm4827_vm2, %v1038_v40, %v1039_v30  ;;  %v1046_v52 = vrot.slane %v932_v37, 5  ;;  %862 = vrot.lane.b32.xlu0 %v3983_v44, %s4770_s25  ;;  %v1715_v58 = vshrl.u32 %v4106_v42, 16  ;;  %v1718_v61 = vshll.u32 %v4106_v42, 16  ;;  %v4702_v30 = vld [vmem:[%s4825_s22 + $0x24] sm:$0xff]   ;;  %v4086_v40 = vld [vmem:[%s4825_s22 + $0x34] sm:$0xf] }
  0x74   : > { %v4014_v55 = vcombine.low %v1037_v36, %v1040_v49  ;;  %v1044_v56 = vsel %vm4827_vm2, %v3999_v46, %v1043_v47  ;;  %v1045_v57 = vrot.slane %v1043_v47, 4  ;;  %v1103_v60 = vsel %vm4827_vm2, %v1101_v51, %v1102_v45  ;;  %v4704_v42 = vld [vmem:[%s4825_s22 + $0x30] sm:$0xff]  }
  0x75   : > { %v1724_v62 = vshll.u32 %v4107_v43, 16  ;;  %v1728_v63 = vshrl.u32 %v4107_v43, 16  ;;  %v4023_v2 = vcombine.low %v1100_v50, %v1103_v60  ;;  %v1717_v4 = vrot.slane %v1715_v58, 4  ;;  %v4087_v50 = vld [vmem:[%s4825_s22 + $0x38] sm:$0x1] }
  0x76   : > { %1200 = vrot.lane.b32.xlu1 %v4022_v39, %s4769_s24  ;;  %v1047_v3 = vsel %vm4827_vm2, %v1045_v57, %v1046_v52  ;;  %v1734_v6 = vshll.u32 %v4108_v48, 16  ;;  %v1720_v8 = vrot.slane %v1718_v61, 5  ;;  %v1523_v12 = vshrl.u32 %v4082_v53, 16  ;;  %v4171_v57 = vld [vmem:[%s4825_s22 + $0x88] sm:$0xf] }
  0x77   : > { %v4015_v7 = vcombine.low %v1044_v56, %v1047_v3  ;;  %v1726_v9 = vrot.slane %v1724_v62, 5  ;;  %v1730_v10 = vrot.slane %v1728_v63, 4  ;;  %1184 = vrot.lane.b32.xlu0 %v4014_v55, %s4769_s24  ;;  %v1526_v13 = vshll.u32 %v4082_v53, 16  ;;  %v4170_v56 = vld [vmem:[%s4825_s22 + $0x84] sm:$0xe] }
  0x78   : > { %v1736_v11 = vrot.slane %v1734_v6, 5  ;;  %v1532_v14 = vshll.u32 %v4083_v54, 16  ;;  %v1721_v15 = vor.u32 %v1720_v8, %v1717_v4  ;;  %v1536_v17 = vshrl.u32 %v4083_v54, 16  ;;  %v4172_v62 = vld [vmem:[%s4825_s22 + $0x8c] sm:$0x1] }
  0x79   : > { %v1731_v16 = vor.u32 %v1730_v10, %v1726_v9  ;;  %v1542_v18 = vshll.u32 %v4084_v59, 16  ;;  %v1525_v21 = vrot.slane %v1523_v12, 4  ;;  %v1528_v22 = vrot.slane %v1526_v13, 5  ;;  %v4146_v63 = vld [vmem:[%s4825_s22 + $0x24] sm:$0xe] }
  0x7a   : > { %1202 = vrot.lane.b32.xlu1 %v4023_v2, %s4769_s24  ;;  %v1534_v23 = vrot.slane %v1532_v14, 5  ;;  %v1739_v24 = vshrl.u32 %v4109_v1, 16  ;;  %v1722_v25 = vrot.slane %v1721_v15, 4  ;;  %v1538_v27 = vrot.slane %v1536_v17, 4  ;;  %v4147_v6 = vld [vmem:[%s4825_s22 + $0x28] sm:$0xf] }
  0x7b   : > { %v1732_v26 = vrot.slane %v1731_v16, 4  ;;  %v1544_v28 = vrot.slane %v1542_v18, 5  ;;  %1186 = vrot.lane.b32.xlu0 %v4015_v7, %s4769_s24  ;;  %v1529_v31 = vor.u32 %v1528_v22, %v1525_v21  ;;  %v1742_v33 = vshll.u32 %v4109_v1, 16  ;;  %v4173_v16 = vld [vmem:[%s4825_s22 + $0x90] sm:$0xe] }
  0x7c   : > { %v1741_v32 = vrot.slane %v1739_v24, 4  ;;  %v1748_v34 = vshll.u32 %v4110_v19, 16  ;;  %v1727_v36 = vsel %vm4877_vm5, %v1722_v25, %v1726_v9  ;;  %v1539_v38 = vor.u32 %v1538_v27, %v1534_v23  ;;  %v4174_v17 = vld [vmem:[%s4825_s22 + $0x94] sm:$0xf]  ;;  %v4175_v22 = vld [vmem:[%s4825_s22 + $0x98] sm:$0x1] }
  0x7d   : > { %v1737_v37 = vsel %vm4877_vm5, %v1732_v26, %v1736_v11  ;;  %v1752_v39 = vshrl.u32 %v4110_v19, 16  ;;  %v1530_v44 = vrot.slane %v1529_v31, 4  ;;  %v1744_v45 = vrot.slane %v1742_v33, 5  ;;  %v4148_v11 = vld [vmem:[%s4825_s22 + $0x2c] sm:$0x1] }
  0x7e   : > { %1381 = vrot.lane.b32.xlu1 %v4701_v20, %s4768_s23  ;;  %v4134_v43 = vcombine.low %v1727_v36, %v1737_v37  ;;  %v1750_v46 = vrot.slane %v1748_v34, 5  ;;  %v1540_v47 = vrot.slane %v1539_v38, 4  ;;  %v1758_v49 = vshll.u32 %v4111_v29, 16  ;;  %v4149_v27 = vld [vmem:[%s4825_s22 + $0x30] sm:$0xe] }
  0x7f   : > { %v1754_v48 = vrot.slane %v1752_v39, 4  ;;  %v1547_v51 = vshrl.u32 %v4085_v35, 16  ;;  %1365 = vrot.lane.b32.xlu0 %v4702_v30, %s4768_s23  ;;  %v1535_v52 = vsel %vm4877_vm5, %v1530_v44, %v1534_v23  ;;  %v1745_v53 = vor.u32 %v1744_v45, %v1741_v32  ;;  %v4150_v32 = vld [vmem:[%s4825_s22 + $0x34] sm:$0xf]  ;;  %v4151_v37 = vld [vmem:[%s4825_s22 + $0x38] sm:$0x1] }
  0x80   : > { %v1550_v54 = vshll.u32 %v4085_v35, 16  ;;  %v1556_v55 = vshll.u32 %v4086_v40, 16  ;;  %v1545_v58 = vsel %vm4877_vm5, %v1540_v47, %v1544_v28  ;;  %v1760_v60 = vrot.slane %v1758_v49, 5  ;;  %v4298_v38 = vld [vmem:[%s4825_s22 + $0x90] sm:$0xf] }
  0x81   : > { %v1755_v59 = vor.u32 %v1754_v48, %v1750_v46  ;;  %v1549_v61 = vrot.slane %v1547_v51, 4  ;;  %v4126_v1 = vcombine.low %v1535_v52, %v1545_v58  ;;  %v1746_v2 = vrot.slane %v1745_v53, 4  ;;  %v4300_v44 = vld [vmem:[%s4825_s22 + $0x98] sm:$0x1]  ;;  %v4274_v45 = vld [vmem:[%s4825_s22 + $0x30] sm:$0xf] }
  0x82   : > { %1383 = vrot.lane.b32.xlu1 %v4703_v41, %s4768_s23  ;;  %v1552_v3 = vrot.slane %v1550_v54, 5  ;;  %v1558_v4 = vrot.slane %v1556_v55, 5  ;;  %v1560_v8 = vshrl.u32 %v4086_v40, 16  ;;  %v1566_v9 = vshll.u32 %v4087_v50, 16 }
  0x83   : > { %v1756_v7 = vrot.slane %v1755_v59, 4  ;;  %v4198_v10 = vrot.slane %v4170_v56, 9  ;;  %1367 = vrot.lane.b32.xlu0 %v4704_v42, %s4768_s23  ;;  %v1751_v12 = vsel %vm4877_vm5, %v1746_v2, %v1750_v46  ;;  %v2139_v14 = vrot.slane %v4171_v57, 5  ;;  %v4275_v59 = vld [vmem:[%s4825_s22 + $0x34] sm:$0xf] }
  0x84   : > { %v1553_v13 = vor.u32 %v1552_v3, %v1549_v61  ;;  %v2142_v15 = vrot.slane %v4172_v62, 5  ;;  %v1562_v19 = vrot.slane %v1560_v8, 4  ;;  %v1568_v20 = vrot.slane %v1566_v9, 5 }
  0x85   : > { %v1761_v18 = vsel %vm4877_vm5, %v1756_v7, %v1760_v60  ;;  %v4190_v21 = vrot.slane %v4146_v63, 9  ;;  %v2140_v25 = vsel %vm4827_vm2, %v4198_v10, %v2139_v14  ;;  %v2141_v26 = vrot.slane %v2139_v14, 4  ;;  %v5173_v46 = vpop.permute.xlu1 %1377 }
  0x86   : > { %1926 = vrot.lane.b32.xlu1 %v4134_v43, %s4771_s26  ;;  %v4135_v23 = vcombine.low %v1751_v12, %v1761_v18  ;;  %v1554_v24 = vrot.slane %v1553_v13, 4  ;;  %v1563_v28 = vor.u32 %v1562_v19, %v1558_v4  ;;  %v2083_v29 = vrot.slane %v4147_v6, 5  ;;  %v4299_v43 = vld [vmem:[%s4825_s22 + $0x94] sm:$0xf]  ;;  %v4301_v12 = vld [vmem:[%s4825_s22 + $0x9c] sm:$0xf] }
  0x87   : > { %v2086_v30 = vrot.slane %v4148_v11, 5  ;;  %v4199_v31 = vrot.slane %v4173_v16, 9  ;;  %1910 = vrot.lane.b32.xlu0 %v4126_v1, %s4771_s26  ;;  %v2143_v34 = vsel %vm4827_vm2, %v2141_v26, %v2142_v15  ;;  %v2146_v35 = vrot.slane %v4174_v17, 5  ;;  %v5192_v11 = vpop.permute.xlu0 %1361  ;;  %v4302_v18 = vld [vmem:[%s4825_s22 + $0xa0] sm:$0xf] }
  0x88   : > { %v1559_v33 = vsel %vm4877_vm5, %v1554_v24, %v1558_v4  ;;  %v2149_v36 = vrot.slane %v4175_v22, 5  ;;  %v1564_v39 = vrot.slane %v1563_v28, 4  ;;  %v4214_v40 = vcombine.low %v2140_v25, %v2143_v34  ;;  %v4276_v4 = vld [vmem:[%s4825_s22 + $0x38] sm:$0x1]  ;;  %v4705_v24 = vld [vmem:[%s4825_s22 + $0x90] sm:$0xff]  }
  0x89   : > { %v2084_v41 = vsel %vm4827_vm2, %v4190_v21, %v2083_v29  ;;  %v2085_v42 = vrot.slane %v2083_v29, 4  ;;  %v2147_v47 = vsel %vm4827_vm2, %v4199_v31, %v2146_v35  ;;  %v2148_v48 = vrot.slane %v2146_v35, 4  ;;  %v4277_v29 = vld [vmem:[%s4825_s22 + $0x3c] sm:$0xf] }
  0x8a   : > { %1928 = vrot.lane.b32.xlu1 %v4135_v23, %s4771_s26  ;;  %v4191_v49 = vrot.slane %v4149_v27, 9  ;;  %v2090_v50 = vrot.slane %v4150_v32, 5  ;;  %v1569_v51 = vsel %vm4877_vm5, %v1564_v39, %v1568_v20  ;;  %v2093_v53 = vrot.slane %v4151_v37, 5  ;;  %v4303_v23 = vld [vmem:[%s4825_s22 + $0xa4] sm:$0x1] }
  0x8b   : > { %v2087_v52 = vsel %vm4827_vm2, %v2085_v42, %v2086_v30  ;;  %v2762_v54 = vshrl.u32 %v4298_v38, 16  ;;  %v4127_v55 = vcombine.low %v1559_v33, %v1569_v51  ;;  %v2150_v57 = vsel %vm4827_vm2, %v2148_v48, %v2149_v36  ;;  %v4278_v51 = vld [vmem:[%s4825_s22 + $0x40] sm:$0xf] }
  0x8c   : > { %v4206_v56 = vcombine.low %v2084_v41, %v2087_v52  ;;  %v2091_v58 = vsel %vm4827_vm2, %v4191_v49, %v2090_v50  ;;  %v4215_v60 = vcombine.low %v2147_v47, %v2150_v57  ;;  %v2092_v61 = vrot.slane %v2090_v50, 4  ;;  %v5195_v13 = vpop.permute.xlu1 %1196  ;;  %v4708_v57 = vld [vmem:[%s4825_s22 + $0x3c] sm:$0xff]  }
  0x8d   : > { %v2764_v62 = vrot.slane %v2762_v54, 4  ;;  %v2765_v63 = vshll.u32 %v4298_v38, 16  ;;  %1912 = vrot.lane.b32.xlu0 %v4127_v55, %s4771_s26  ;;  %v2771_v1 = vshll.u32 %v4299_v43, 16  ;;  %v2775_v2 = vshrl.u32 %v4299_v43, 16  ;;  %v4706_v38 = vld [vmem:[%s4825_s22 + $0x30] sm:$0xff]  }
  0x8e   : > { %2247 = vrot.lane.b32.xlu1 %v4214_v40, %s4772_s27  ;;  %v2781_v3 = vshll.u32 %v4300_v44, 16  ;;  %v2570_v6 = vshrl.u32 %v4274_v45, 16  ;;  %v2094_v7 = vsel %vm4827_vm2, %v2092_v61, %v2093_v53  ;;  %v2573_v9 = vshll.u32 %v4274_v45, 16  ;;  %v5206_v43 = vpop.permute.xlu0 %1180  ;;  %v4707_v45 = vld [vmem:[%s4825_s22 + $0x9c] sm:$0xff]   ;;  %v4279_v55 = vld [vmem:[%s4825_s22 + $0x44] sm:$0x1] }
  0x8f   : > { %v2767_v8 = vrot.slane %v2765_v63, 5  ;;  %v2579_v10 = vshll.u32 %v4275_v59, 16  ;;  %v4207_v14 = vcombine.low %v2091_v58, %v2094_v7  ;;  %v2773_v15 = vrot.slane %v2771_v1, 5 }
  0x90   : > { %v2777_v16 = vrot.slane %v2775_v2, 4  ;;  %v2783_v17 = vrot.slane %v2781_v3, 5  ;;  %v2572_v20 = vrot.slane %v2570_v6, 4  ;;  %v2575_v21 = vrot.slane %v2573_v9, 5 }
  0x91   : > { %v2768_v19 = vor.u32 %v2767_v8, %v2764_v62  ;;  %v2581_v22 = vrot.slane %v2579_v10, 5  ;;  %2231 = vrot.lane.b32.xlu0 %v4206_v56, %s4772_s27  ;;  %v2583_v26 = vshrl.u32 %v4275_v59, 16  ;;  %v2589_v27 = vshll.u32 %v4276_v4, 16  ;;  %v5208_v44 = vpop.permute.xlu1 %1198  ;;  %v4362_v62 = vld [vmem:[%s4825_s22 + $0x90] sm:$0xe] }
  0x92   : > { %2249 = vrot.lane.b32.xlu1 %v4215_v60, %s4772_s27  ;;  %v2778_v25 = vor.u32 %v2777_v16, %v2773_v15  ;;  %v2786_v28 = vshrl.u32 %v4301_v12, 16  ;;  %v2576_v31 = vor.u32 %v2575_v21, %v2572_v20  ;;  %v2789_v32 = vshll.u32 %v4301_v12, 16  ;;  %v4363_v4 = vld [vmem:[%s4825_s22 + $0x94] sm:$0xf]  ;;  %v4364_v10 = vld [vmem:[%s4825_s22 + $0x98] sm:$0x1]  ;;  %v5232_v20 = vpop.permute.xlu0 %1182 }
  0x93   : > { %v2769_v30 = vrot.slane %v2768_v19, 4  ;;  %v2795_v33 = vshll.u32 %v4302_v18, 16  ;;  %v2585_v35 = vrot.slane %v2583_v26, 4  ;;  %v2591_v36 = vrot.slane %v2589_v27, 5  ;;  %v4338_v12 = vld [vmem:[%s4825_s22 + $0x30] sm:$0xe] }
  0x94   : > { %v2779_v34 = vrot.slane %v2778_v25, 4  ;;  %v2788_v37 = vrot.slane %v2786_v28, 4  ;;  %v2577_v40 = vrot.slane %v2576_v31, 4  ;;  %v2791_v41 = vrot.slane %v2789_v32, 5  ;;  %v4340_v19 = vld [vmem:[%s4825_s22 + $0x38] sm:$0x1] }
  0x95   : > { %v2774_v39 = vsel %vm4877_vm5, %v2769_v30, %v2773_v15  ;;  %v2797_v42 = vrot.slane %v2795_v33, 5  ;;  %2233 = vrot.lane.b32.xlu0 %v4207_v14, %s4772_s27  ;;  %v2586_v48 = vor.u32 %v2585_v35, %v2581_v22  ;;  %v2799_v49 = vshrl.u32 %v4302_v18, 16  ;;  %v4339_v18 = vld [vmem:[%s4825_s22 + $0x34] sm:$0xf]  ;;  %v409_v30 = vld [vmem:[%s4825_s22 + $0x90] sm:$0xf] }
  0x96   : > { %2428 = vrot.lane.b32.xlu1 %v4705_v24, %s4773_s28  ;;  %v2784_v47 = vsel %vm4877_vm5, %v2779_v34, %v2783_v17  ;;  %v2805_v50 = vshll.u32 %v4303_v23, 16  ;;  %v2582_v53 = vsel %vm4877_vm5, %v2577_v40, %v2581_v22  ;;  %v2792_v54 = vor.u32 %v2791_v41, %v2788_v37  ;;  %v410_v35 = vld [vmem:[%s4825_s22 + $0x94] sm:$0xf]  ;;  %v411_v40 = vld [vmem:[%s4825_s22 + $0x98] sm:$0x1] }
  0x97   : > { %v4326_v52 = vcombine.low %v2774_v39, %v2784_v47  ;;  %v2594_v56 = vshrl.u32 %v4277_v29, 16  ;;  %v2587_v58 = vrot.slane %v2586_v48, 4  ;;  %v2801_v59 = vrot.slane %v2799_v49, 4  ;;  %v385_v41 = vld [vmem:[%s4825_s22 + $0x30] sm:$0xf] }
  0x98   : > { %v2807_v60 = vrot.slane %v2805_v50, 5  ;;  %v2597_v61 = vshll.u32 %v4277_v29, 16  ;;  %v2793_v63 = vrot.slane %v2792_v54, 4  ;;  %v2603_v2 = vshll.u32 %v4278_v51, 16  ;;  %v386_v49 = vld [vmem:[%s4825_s22 + $0x34] sm:$0xf] }
  0x99   : > { %v2596_v1 = vrot.slane %v2594_v56, 4  ;;  %v2607_v3 = vshrl.u32 %v4278_v51, 16  ;;  %2412 = vrot.lane.b32.xlu0 %v4706_v38, %s4773_s28  ;;  %v2592_v6 = vsel %vm4877_vm5, %v2587_v58, %v2591_v36  ;;  %v2802_v7 = vor.u32 %v2801_v59, %v2797_v42  ;;  %v5234_v21 = vpop.permute.xlu1 %858  ;;  %v387_v50 = vld [vmem:[%s4825_s22 + $0x38] sm:$0x1] }
  0x9a   : > { %2430 = vrot.lane.b32.xlu1 %v4707_v45, %s4773_s28  ;;  %v2599_v8 = vrot.slane %v2597_v61, 5  ;;  %v2613_v9 = vshll.u32 %v4279_v55, 16  ;;  %v4318_v14 = vcombine.low %v2582_v53, %v2592_v6  ;;  %v2798_v15 = vsel %vm4877_vm5, %v2793_v63, %v2797_v42  ;;  %v4712_v6 = vld [vmem:[%s4825_s22 + $0x60] sm:$0xff]  }
  0x9b   : > { %v2605_v16 = vrot.slane %v2603_v2, 5  ;;  %v2609_v17 = vrot.slane %v2607_v3, 4  ;;  %v2803_v22 = vrot.slane %v2802_v7, 4  ;;  %v4390_v25 = vrot.slane %v4362_v62, 9  ;;  %v4709_v2 = vld [vmem:[%s4825_s22 + $0xc] sm:$0xff]   ;;  %v4710_v3 = vld [vmem:[%s4825_s22] sm:$0xff]  }
  0x9c   : > { %v2600_v23 = vor.u32 %v2599_v8, %v2596_v1  ;;  %v2615_v24 = vrot.slane %v2613_v9, 5  ;;  %v3186_v27 = vrot.slane %v4363_v4, 5  ;;  %v3189_v28 = vrot.slane %v4364_v10, 5  ;;  %v5258_v55 = vpop.permute.xlu0 %856  ;;  %v4711_v4 = vld [vmem:[%s4825_s22 + $0x6c] sm:$0xff]   ;;  %v4721_v7 = vld [vmem:[%s4825_s22 + $0x78] sm:$0xff]   ;;  %v4725_v9 = vld [vmem:[%s4825_s22 + $0x84] sm:$0xff]  }
  0x9d   : > { %v2610_v26 = vor.u32 %v2609_v17, %v2605_v16  ;;  %v4382_v29 = vrot.slane %v4338_v12, 9  ;;  %2414 = vrot.lane.b32.xlu0 %v4708_v57, %s4773_s28  ;;  %v2808_v31 = vsel %vm4877_vm5, %v2803_v22, %v2807_v60  ;;  %v3130_v33 = vrot.slane %v4339_v18, 5  ;;  %v4722_v8 = vld [vmem:[%s4825_s22 + $0x18] sm:$0xff]   ;;  %358 = vst.msk [vmem:[#allocation2 + $0x8] sm:$0xff] %vm356_vm6, %v4709_v2  ;;  %357 = vst.msk [vmem:[#allocation2] sm:$0xff] %vm356_vm6, %v4710_v3 }
  0x9e   : > { %2973 = vrot.lane.b32.xlu1 %v4326_v52, %s4774_s29  ;;  %v2601_v32 = vrot.slane %v2600_v23, 4  ;;  %v3133_v34 = vrot.slane %v4340_v19, 5  ;;  %v4327_v36 = vcombine.low %v2798_v15, %v2808_v31  ;;  %v3187_v38 = vsel %vm4827_vm2, %v4390_v25, %v3186_v27  ;;  %v4366_v23 = vld [vmem:[%s4825_s22 + $0xa0] sm:$0xf]  ;;  %v4341_v25 = vld [vmem:[%s4825_s22 + $0x3c] sm:$0xe] }
  0x9f   : > { %v2611_v37 = vrot.slane %v2610_v26, 4  ;;  %v3188_v39 = vrot.slane %v3186_v27, 4  ;;  %v5250_v45 = vsel %vm4827_vm2, %v4382_v29, %v3130_v33  ;;  %v3132_v47 = vrot.slane %v3130_v33, 4  ;;  %v4726_v26 = vld [vmem:[%s4825_s22 + $0x24] sm:$0xff]   ;;  %366 = vst.msk [vmem:[#allocation2 + $0x48] sm:$0xff] %vm356_vm6, %v4711_v4  ;;  %365 = vst.msk [vmem:[#allocation2 + $0x40] sm:$0xff] %vm356_vm6, %v4712_v6 }
  0xa0   : > { %v2606_v42 = vsel %vm4877_vm5, %v2601_v32, %v2605_v16  ;;  %v713_v48 = vshrl.u32 %v409_v30, 16  ;;  %v716_v53 = vshll.u32 %v409_v30, 16  ;;  %v722_v54 = vshll.u32 %v410_v35, 16  ;;  %v5277_v16 = vld [vmem:[%s4825_s22 + $0x9c] sm:$0xe]  ;;  %367 = vst.msk [vmem:[#allocation2 + $0x50] sm:$0xff] %vm356_vm6, %v4721_v7 }
  0xa1   : > { %v2616_v51 = vsel %vm4877_vm5, %v2611_v37, %v2615_v24  ;;  %v3190_v52 = vsel %vm4827_vm2, %v3188_v39, %v3189_v28  ;;  %v5260_v56 = vpop.permute.xlu1 %874  ;;  %2957 = vrot.lane.b32.xlu0 %v4318_v14, %s4774_s29  ;;  %v3134_v59 = vsel %vm4827_vm2, %v3132_v47, %v3133_v34  ;;  %v726_v1 = vshrl.u32 %v410_v35, 16  ;;  %v5281_v24 = vld [vmem:[%s4825_s22 + $0xa4] sm:$0x1]  ;;  %v4342_v35 = vld [vmem:[%s4825_s22 + $0x40] sm:$0xf]  ;;  %359 = vst.msk [vmem:[#allocation2 + $0x10] sm:$0xff] %vm356_vm6, %v4722_v8 }
  0xa2   : > { %2975 = vrot.lane.b32.xlu1 %v4327_v36, %s4774_s29  ;;  %v4319_v57 = vcombine.low %v2606_v42, %v2616_v51  ;;  %v4406_v58 = vcombine.low %v3187_v38, %v3190_v52  ;;  %v715_v60 = vrot.slane %v713_v48, 4  ;;  %v4398_v61 = vcombine.low %v5250_v45, %v3134_v59  ;;  %v4343_v39 = vld [vmem:[%s4825_s22 + $0x44] sm:$0x1]  ;;  %368 = vst.msk [vmem:[#allocation2 + $0x58] sm:$0xff] %vm356_vm6, %v4725_v9  ;;  %v412_v51 = vld [vmem:[%s4825_s22 + $0x9c] sm:$0xf] }
  0xa3   : > { %v718_v62 = vrot.slane %v716_v53, 5  ;;  %v5267_v63 = vrot.slane %v722_v54, 5  ;;  %v732_v10 = vshll.u32 %v411_v40, 16  ;;  %v521_v12 = vshrl.u32 %v385_v41, 16  ;;  %360 = vst.msk [vmem:[#allocation2 + $0x18] sm:$0xff] %vm356_vm6, %v4726_v26 }
  0xa4   : > { %v524_v14 = vshll.u32 %v385_v41, 16  ;;  %v530_v15 = vshll.u32 %v386_v49, 16  ;;  %v728_v18 = vrot.slane %v726_v1, 4  ;;  %v534_v19 = vshrl.u32 %v386_v49, 16  ;;  %906 = vst.msk [vmem:[#allocation2 + $0x8] sm:$0xff] %vm904_vm7, %v5234_v21  ;;  %905 = vst.msk [vmem:[#allocation2] sm:$0xff] %vm904_vm7, %v5258_v55 }
  0xa5   : > { %v719_v17 = vor.u32 %v718_v62, %v715_v60  ;;  %v540_v22 = vshll.u32 %v387_v50, 16  ;;  %2959 = vrot.lane.b32.xlu0 %v4319_v57, %s4774_s29  ;;  %v734_v27 = vrot.slane %v732_v10, 5  ;;  %v523_v28 = vrot.slane %v521_v12, 4  ;;  %v5289_v37 = vpop.permute.xlu1 %1379  ;;  %914 = vst.msk [vmem:[#allocation2 + $0x48] sm:$0xff] %vm904_vm7, %v5260_v56  ;;  %v413_v55 = vld [vmem:[%s4825_s22 + $0xa0] sm:$0xf] }
  0xa6   : > { %3294 = vrot.lane.b32.xlu1 %v4406_v58, %s4775_s30  ;;  %v526_v29 = vrot.slane %v524_v14, 5  ;;  %v532_v30 = vrot.slane %v530_v15, 5  ;;  %v729_v32 = vor.u32 %v728_v18, %v5267_v63  ;;  %v536_v33 = vrot.slane %v534_v19, 4  ;;  %v873_v36 = vpop.permute.xlu0 %872  ;;  %1229 = vst.msk [vmem:[#allocation2] sm:$0xff] %vm1228_vm8, %v5206_v43  ;;  %1230 = vst.msk [vmem:[#allocation2 + $0x8] sm:$0xff] %vm1228_vm8, %v5232_v20 }
  0xa7   : > { %v720_v31 = vrot.slane %v719_v17, 4  ;;  %v542_v34 = vrot.slane %v540_v22, 5  ;;  %v4391_v45 = vrot.slane %v5277_v16, 9  ;;  %v3193_v48 = vrot.slane %v4366_v23, 5  ;;  %913 = vst.msk [vmem:[#allocation2 + $0x40] sm:$0xff] %vm904_vm7, %v873_v36 }
  0xa8   : > { %v527_v38 = vor.u32 %v526_v29, %v523_v28  ;;  %v730_v41 = vrot.slane %v729_v32, 4  ;;  %v537_v42 = vor.u32 %v536_v33, %v532_v30  ;;  %v3196_v49 = vrot.slane %v5281_v24, 5  ;;  %1238 = vst.msk [vmem:[#allocation2 + $0x48] sm:$0xff] %vm1228_vm8, %v5208_v44  ;;  %1237 = vst.msk [vmem:[#allocation2 + $0x40] sm:$0xff] %vm1228_vm8, %v5195_v13  ;;  %v414_v60 = vld [vmem:[%s4825_s22 + $0xa4] sm:$0x1] }
  0xa9   : > { %v725_v40 = vsel %vm4877_vm5, %v720_v31, %v5267_v63  ;;  %3278 = vrot.lane.b32.xlu0 %v4398_v61, %s4775_s30  ;;  %v4383_v50 = vrot.slane %v4341_v25, 9  ;;  %v3137_v21 = vrot.slane %v4342_v35, 5  ;;  %v3140_v54 = vrot.slane %v4343_v39, 5  ;;  %v388_v4 = vld [vmem:[%s4825_s22 + $0x3c] sm:$0xf]  ;;  %1419 = vst.msk [vmem:[#allocation2 + $0x48] sm:$0xff] %vm1409_vm9, %v5289_v37 }
  0xaa   : > { %v528_v47 = vrot.slane %v527_v38, 4  ;;  %v735_v52 = vsel %vm4877_vm5, %v730_v41, %v734_v27  ;;  %v538_v53 = vrot.slane %v537_v42, 4  ;;  %v1364_v56 = vpop.permute.xlu0 %1363  ;;  %v3194_v43 = vsel %vm4827_vm2, %v4391_v45, %v3193_v48  ;;  %v5334_v62 = vpop.permute.xlu1 %1922  ;;  %v389_v6 = vld [vmem:[%s4825_s22 + $0x40] sm:$0xf]  ;;  %v390_v12 = vld [vmem:[%s4825_s22 + $0x44] sm:$0x1] }
  0xab   : > { %v3992_v57 = vcombine.low %v725_v40, %v735_v52  ;;  %v3195_v20 = vrot.slane %v3193_v48, 4  ;;  %v3138_v44 = vsel %vm4827_vm2, %v4383_v50, %v3137_v21  ;;  %v3139_v13 = vrot.slane %v3137_v21, 4  ;;  %v957_v18 = vld [vmem:[%s4825_s22 + $0x90] sm:$0xe]  ;;  %v958_v19 = vld [vmem:[%s4825_s22 + $0x94] sm:$0xf] }
  0xac   : > { %v533_v58 = vsel %vm4877_vm5, %v528_v47, %v532_v30  ;;  %v543_v59 = vsel %vm4877_vm5, %v538_v53, %v542_v34  ;;  %v737_v61 = vshrl.u32 %v412_v51, 16  ;;  %v740_v2 = vshll.u32 %v412_v51, 16  ;;  %v959_v27 = vld [vmem:[%s4825_s22 + $0x98] sm:$0x1]  ;;  %v933_v32 = vld [vmem:[%s4825_s22 + $0x30] sm:$0xe] }
  0xad   : > { %880 = vrot.lane.b32.xlu1 %v3992_v57, %s4770_s25  ;;  %v3984_v63 = vcombine.low %v533_v58, %v543_v59  ;;  %v3197_v1 = vsel %vm4827_vm2, %v3195_v20, %v3196_v49  ;;  %v746_v3 = vshll.u32 %v413_v55, 16  ;;  %v3141_v8 = vsel %vm4827_vm2, %v3139_v13, %v3140_v54  ;;  %v934_v38 = vld [vmem:[%s4825_s22 + $0x34] sm:$0xf]  ;;  %v935_v47 = vld [vmem:[%s4825_s22 + $0x38] sm:$0x1]  ;;  %1410 = vst.msk [vmem:[#allocation2] sm:$0xff] %vm1409_vm9, %v5192_v11 }
  0xae   : > { %v4407_v7 = vcombine.low %v3194_v43, %v3197_v1  ;;  %v739_v9 = vrot.slane %v737_v61, 4  ;;  %v750_v10 = vshrl.u32 %v413_v55, 16  ;;  %v4399_v14 = vcombine.low %v3138_v44, %v3141_v8  ;;  %v5347_v22 = vpop.permute.xlu0 %1906  ;;  %v4736_v40 = vld [vmem:[%s4825_s22 + $0x90] sm:$0xff]   ;;  %1418 = vst.msk [vmem:[#allocation2 + $0x40] sm:$0xff] %vm1409_vm9, %v5173_v46  ;;  %1411 = vst.msk [vmem:[#allocation2 + $0x8] sm:$0xff] %vm1409_vm9, %v1364_v56 }
  0xaf   : > { %864 = vrot.lane.b32.xlu0 %v3984_v63, %s4770_s25  ;;  %v742_v15 = vrot.slane %v740_v2, 5  ;;  %v748_v16 = vrot.slane %v746_v3, 5  ;;  %v756_v17 = vshll.u32 %v414_v60, 16  ;;  %v545_v24 = vshrl.u32 %v388_v4, 16  ;;  %v960_v52 = vld [vmem:[%s4825_s22 + $0x9c] sm:$0xe] }
  0xb0   : > { %v752_v23 = vrot.slane %v750_v10, 4  ;;  %v548_v25 = vshll.u32 %v388_v4, 16  ;;  %v554_v26 = vshll.u32 %v389_v6, 16  ;;  %v558_v30 = vshrl.u32 %v389_v6, 16  ;;  %369 = vst.msk [vmem:[#allocation2 + $0x60] sm:$0xff] %vm356_vm6, %v4736_v40  ;;  %v4737_v53 = vld [vmem:[%s4825_s22 + $0x30] sm:$0xff]  }
  0xb1   : > { %3296 = vrot.lane.b32.xlu1 %v4407_v7, %s4775_s30  ;;  %v743_v28 = vor.u32 %v742_v15, %v739_v9  ;;  %v758_v29 = vrot.slane %v756_v17, 5  ;;  %v564_v31 = vshll.u32 %v390_v12, 16  ;;  %v547_v34 = vrot.slane %v545_v24, 4  ;;  %v961_v11 = vld [vmem:[%s4825_s22 + $0xa0] sm:$0xf]  ;;  %361 = vst.msk [vmem:[#allocation2 + $0x20] sm:$0xff] %vm356_vm6, %v4737_v53 }
  0xb2   : > { %v753_v33 = vor.u32 %v752_v23, %v748_v16  ;;  %v550_v35 = vrot.slane %v548_v25, 5  ;;  %v556_v36 = vrot.slane %v554_v26, 5  ;;  %v1925_v39 = vpop.permute.xlu1 %1924  ;;  %v560_v42 = vrot.slane %v558_v30, 4  ;;  %v5370_v57 = vld [vmem:[%s4825_s22 + $0xa4] sm:$0x1]  ;;  %1963 = vst.msk [vmem:[#allocation2 + $0x40] sm:$0xff] %vm1954_vm10, %v5334_v62 }
  0xb3   : > { %3280 = vrot.lane.b32.xlu0 %v4399_v14, %s4775_s30  ;;  %v744_v41 = vrot.slane %v743_v28, 4  ;;  %v566_v45 = vrot.slane %v564_v31, 5  ;;  %v4008_v50 = vrot.slane %v957_v18, 9  ;;  %v1106_v51 = vrot.slane %v958_v19, 5  ;;  %v936_v46 = vld [vmem:[%s4825_s22 + $0x3c] sm:$0xe] }
  0xb4   : > { %v754_v48 = vrot.slane %v753_v33, 4  ;;  %v551_v49 = vor.u32 %v550_v35, %v547_v34  ;;  %v561_v37 = vor.u32 %v560_v42, %v556_v36  ;;  %v1109_v54 = vrot.slane %v959_v27, 5  ;;  %v937_v44 = vld [vmem:[%s4825_s22 + $0x40] sm:$0xf]  ;;  %v938_v13 = vld [vmem:[%s4825_s22 + $0x44] sm:$0x1] }
  0xb5   : > { %v749_v21 = vsel %vm4877_vm5, %v744_v41, %v748_v16  ;;  %v4000_v55 = vrot.slane %v933_v32, 9  ;;  %v1107_v20 = vsel %vm4827_vm2, %v4008_v50, %v1106_v51  ;;  %v1108_v59 = vrot.slane %v1106_v51, 4  ;;  %v4112_v3 = vld [vmem:[%s4825_s22 + $0x9c] sm:$0xf]  ;;  %v4113_v8 = vld [vmem:[%s4825_s22 + $0xa0] sm:$0xf] }
  0xb6   : > { %v1909_v56 = vpop.permute.xlu0 %1908  ;;  %v759_v58 = vsel %vm4877_vm5, %v754_v48, %v758_v29  ;;  %v552_v43 = vrot.slane %v551_v49, 4  ;;  %v2244_v60 = vpop.permute.xlu1 %2243  ;;  %v562_v63 = vrot.slane %v561_v37, 4  ;;  %v1050_v1 = vrot.slane %v934_v38, 5  ;;  %1955 = vst.msk [vmem:[#allocation2] sm:$0xff] %vm1954_vm10, %v5347_v22  ;;  %1964 = vst.msk [vmem:[#allocation2 + $0x48] sm:$0xff] %vm1954_vm10, %v1925_v39  ;;  %v4738_v17 = vld [vmem:[%s4825_s22 + $0x9c] sm:$0xff]  }
  0xb7   : > { %v3993_v61 = vcombine.low %v749_v21, %v759_v58  ;;  %v1053_v2 = vrot.slane %v935_v47, 5  ;;  %v1110_v6 = vsel %vm4827_vm2, %v1108_v59, %v1109_v54  ;;  %v4009_v7 = vrot.slane %v960_v52, 9  ;;  %1956 = vst.msk [vmem:[#allocation2 + $0x8] sm:$0xff] %vm1954_vm10, %v1909_v56  ;;  %v4114_v16 = vld [vmem:[%s4825_s22 + $0xa4] sm:$0x1]  ;;  %v4739_v26 = vld [vmem:[%s4825_s22 + $0x3c] sm:$0xff]  }
  0xb8   : > { %v557_v4 = vsel %vm4877_vm5, %v552_v43, %v556_v36  ;;  %v567_v9 = vsel %vm4877_vm5, %v562_v63, %v566_v45  ;;  %v4024_v10 = vcombine.low %v1107_v20, %v1110_v6  ;;  %v1051_v12 = vsel %vm4827_vm2, %v4000_v55, %v1050_v1  ;;  %v4088_v28 = vld [vmem:[%s4825_s22 + $0x3c] sm:$0xf]  ;;  %370 = vst.msk [vmem:[#allocation2 + $0x68] sm:$0xff] %vm356_vm6, %v4738_v17  ;;  %v4089_v33 = vld [vmem:[%s4825_s22 + $0x40] sm:$0xf] }
  0xb9   : > { %882 = vrot.lane.b32.xlu1 %v3993_v61, %s4770_s25  ;;  %v1052_v14 = vrot.slane %v1050_v1, 4  ;;  %v3985_v18 = vcombine.low %v557_v4, %v567_v9  ;;  %v1113_v19 = vrot.slane %v961_v11, 5  ;;  %v1116_v23 = vrot.slane %v5370_v57, 5  ;;  %2284 = vst.msk [vmem:[#allocation2 + $0x40] sm:$0xff] %vm2275_vm11, %v2244_v60  ;;  %v4090_v52 = vld [vmem:[%s4825_s22 + $0x44] sm:$0x1] }
  0xba   : > { %v2228_v15 = vpop.permute.xlu0 %2227  ;;  %v4001_v24 = vrot.slane %v936_v46, 9  ;;  %v2246_v25 = vpop.permute.xlu1 %2245  ;;  %v1057_v22 = vrot.slane %v937_v44, 5  ;;  %v1060_v27 = vrot.slane %v938_v13, 5  ;;  %v1763_v32 = vshrl.u32 %v4112_v3, 16  ;;  %362 = vst.msk [vmem:[#allocation2 + $0x28] sm:$0xff] %vm356_vm6, %v4739_v26  ;;  %v4713_v55 = vld [vmem:[%s4825_s22 + $0x9c] sm:$0xff]  }
  0xbb   : > { %v1054_v62 = vsel %vm4827_vm2, %v1052_v14, %v1053_v2  ;;  %866 = vrot.lane.b32.xlu0 %v3985_v18, %s4770_s25  ;;  %v1114_v30 = vsel %vm4827_vm2, %v4009_v7, %v1113_v19  ;;  %v1115_v31 = vrot.slane %v1113_v19, 4  ;;  %2276 = vst.msk [vmem:[#allocation2] sm:$0xff] %vm2275_vm11, %v2228_v15  ;;  %2285 = vst.msk [vmem:[#allocation2 + $0x48] sm:$0xff] %vm2275_vm11, %v2246_v25  ;;  %v1766_v38 = vshll.u32 %v4112_v3, 16  ;;  %v4115_v43 = vld [vmem:[%s4825_s22 + $0xa8] sm:$0xf] }
  0xbc   : > { %v4016_v29 = vcombine.low %v1051_v12, %v1054_v62  ;;  %v1058_v34 = vsel %vm4827_vm2, %v4001_v24, %v1057_v22  ;;  %v1059_v35 = vrot.slane %v1057_v22, 4  ;;  %v1772_v39 = vshll.u32 %v4113_v8, 16  ;;  %v4116_v13 = vld [vmem:[%s4825_s22 + $0xac] sm:$0xf]  ;;  %v4714_v3 = vld [vmem:[%s4825_s22 + $0x3c] sm:$0xff]  }
  0xbd   : > { %1204 = vrot.lane.b32.xlu1 %v4024_v10, %s4769_s24  ;;  %v1117_v40 = vsel %vm4827_vm2, %v1115_v31, %v1116_v23  ;;  %v1765_v41 = vrot.slane %v1763_v32, 4  ;;  %v1776_v42 = vshrl.u32 %v4113_v8, 16  ;;  %v1782_v45 = vshll.u32 %v4114_v16, 16  ;;  %v4715_v9 = vld [vmem:[%s4825_s22 + $0xa8] sm:$0xff]   ;;  %v4117_v15 = vld [vmem:[%s4825_s22 + $0xb0] sm:$0x1] }
  0xbe   : > { %v2230_v36 = vpop.permute.xlu0 %2229  ;;  %v2425_v47 = vpop.permute.xlu1 %2424  ;;  %v4025_v48 = vcombine.low %v1114_v30, %v1117_v40  ;;  %v1061_v49 = vsel %vm4827_vm2, %v1059_v35, %v1060_v27  ;;  %v1768_v50 = vrot.slane %v1766_v38, 5  ;;  %v1774_v51 = vrot.slane %v1772_v39, 5  ;;  %v4091_v17 = vld [vmem:[%s4825_s22 + $0x48] sm:$0xf]  ;;  %v4092_v26 = vld [vmem:[%s4825_s22 + $0x4c] sm:$0xf] }
  0xbf   : > { %2277 = vst.msk [vmem:[#allocation2 + $0x8] sm:$0xff] %vm2275_vm11, %v2230_v36  ;;  %1188 = vrot.lane.b32.xlu0 %v4016_v29, %s4769_s24  ;;  %v4017_v53 = vcombine.low %v1058_v34, %v1061_v49  ;;  %v1778_v21 = vrot.slane %v1776_v42, 4  ;;  %v1784_v37 = vrot.slane %v1782_v45, 5  ;;  %v1571_v54 = vshrl.u32 %v4088_v28, 16  ;;  %v4093_v30 = vld [vmem:[%s4825_s22 + $0x50] sm:$0x1] }
  0xc0   : > { %v1769_v11 = vor.u32 %v1768_v50, %v1765_v41  ;;  %v1574_v57 = vshll.u32 %v4088_v28, 16  ;;  %v1580_v46 = vshll.u32 %v4089_v33, 16  ;;  %v1584_v56 = vshrl.u32 %v4089_v33, 16  ;;  %2465 = vst.msk [vmem:[#allocation2 + $0x40] sm:$0xff] %vm2456_vm12, %v2425_v47  ;;  %v4176_v31 = vld [vmem:[%s4825_s22 + $0x9c] sm:$0xe] }
  0xc1   : > { %1206 = vrot.lane.b32.xlu1 %v4025_v48, %s4769_s24  ;;  %v1779_v20 = vor.u32 %v1778_v21, %v1774_v51  ;;  %v1573_v59 = vrot.slane %v1571_v54, 4  ;;  %v1590_v44 = vshll.u32 %v4090_v52, 16  ;;  %v1787_v7 = vshrl.u32 %v4115_v43, 16  ;;  %v4716_v32 = vld [vmem:[%s4825_s22 + $0x48] sm:$0xff]   ;;  %v4177_v38 = vld [vmem:[%s4825_s22 + $0xa0] sm:$0xf] }
  0xc2   : > { %v2409_v58 = vpop.permute.xlu0 %2408  ;;  %v2427_v60 = vpop.permute.xlu1 %2426  ;;  %v1770_v61 = vrot.slane %v1769_v11, 4  ;;  %v1576_v63 = vrot.slane %v1574_v57, 5  ;;  %v1582_v1 = vrot.slane %v1580_v46, 5  ;;  %v1586_v2 = vrot.slane %v1584_v56, 4  ;;  %v4178_v39 = vld [vmem:[%s4825_s22 + $0xa4] sm:$0x1] }
  0xc3   : > { %2457 = vst.msk [vmem:[#allocation2] sm:$0xff] %vm2456_vm12, %v2409_v58  ;;  %2466 = vst.msk [vmem:[#allocation2 + $0x48] sm:$0xff] %vm2456_vm12, %v2427_v60  ;;  %1190 = vrot.lane.b32.xlu0 %v4017_v53, %s4769_s24  ;;  %v1780_v4 = vrot.slane %v1779_v20, 4  ;;  %v1592_v6 = vrot.slane %v1590_v44, 5  ;;  %v1790_v8 = vshll.u32 %v4115_v43, 16  ;;  %v1796_v16 = vshll.u32 %v4116_v13, 16 }
  0xc4   : > { %v1775_v10 = vsel %vm4877_vm5, %v1770_v61, %v1774_v51  ;;  %v1577_v12 = vor.u32 %v1576_v63, %v1573_v59  ;;  %v1587_v14 = vor.u32 %v1586_v2, %v1582_v1  ;;  %v1789_v23 = vrot.slane %v1787_v7, 4  ;;  %v4152_v47 = vld [vmem:[%s4825_s22 + $0x3c] sm:$0xe]  ;;  %v4153_v48 = vld [vmem:[%s4825_s22 + $0x40] sm:$0xf] }
  0xc5   : > { %1385 = vrot.lane.b32.xlu1 %v4713_v55, %s4768_s23  ;;  %v1785_v19 = vsel %vm4877_vm5, %v1780_v4, %v1784_v37  ;;  %v1792_v24 = vrot.slane %v1790_v8, 5  ;;  %v1800_v25 = vshrl.u32 %v4116_v13, 16  ;;  %v1798_v29 = vrot.slane %v1796_v16, 5  ;;  %v4154_v13 = vld [vmem:[%s4825_s22 + $0x44] sm:$0x1] }
  0xc6   : > { %v2411_v18 = vpop.permute.xlu0 %2410  ;;  %v5442_v62 = vpop.permute.xlu1 %2969  ;;  %v4136_v22 = vcombine.low %v1775_v10, %v1785_v19  ;;  %v1578_v27 = vrot.slane %v1577_v12, 4  ;;  %v1588_v28 = vrot.slane %v1587_v14, 4  ;;  %v1806_v35 = vshll.u32 %v4117_v15, 16  ;;  %v4179_v2 = vld [vmem:[%s4825_s22 + $0xa8] sm:$0xe] }
  0xc7   : > { %2458 = vst.msk [vmem:[#allocation2 + $0x8] sm:$0xff] %vm2456_vm12, %v2411_v18  ;;  %1369 = vrot.lane.b32.xlu0 %v4714_v3, %s4768_s23  ;;  %v1793_v33 = vor.u32 %v1792_v24, %v1789_v23  ;;  %v1802_v34 = vrot.slane %v1800_v25, 4  ;;  %v1595_v36 = vshrl.u32 %v4091_v17, 16  ;;  %v1598_v42 = vshll.u32 %v4091_v17, 16  ;;  %v4180_v8 = vld [vmem:[%s4825_s22 + $0xac] sm:$0xf] }
  0xc8   : > { %v1583_v40 = vsel %vm4877_vm5, %v1578_v27, %v1582_v1  ;;  %v1593_v41 = vsel %vm4877_vm5, %v1588_v28, %v1592_v6  ;;  %v1604_v45 = vshll.u32 %v4092_v26, 16  ;;  %v1808_v53 = vrot.slane %v1806_v35, 5  ;;  %v4155_v17 = vld [vmem:[%s4825_s22 + $0x48] sm:$0xe]  ;;  %v4156_v25 = vld [vmem:[%s4825_s22 + $0x4c] sm:$0xf] }
  0xc9   : > { %1387 = vrot.lane.b32.xlu1 %v4715_v9, %s4768_s23  ;;  %v4128_v50 = vcombine.low %v1583_v40, %v1593_v41  ;;  %v1794_v51 = vrot.slane %v1793_v33, 4  ;;  %v1803_v52 = vor.u32 %v1802_v34, %v1798_v29  ;;  %v1597_v37 = vrot.slane %v1595_v36, 4  ;;  %v4181_v9 = vld [vmem:[%s4825_s22 + $0xb0] sm:$0x1]  ;;  %3010 = vst.msk [vmem:[#allocation2 + $0x40] sm:$0xff] %vm3001_vm13, %v5442_v62 }
  0xca   : > { %v2954_v49 = vpop.permute.xlu0 %2953  ;;  %v1600_v54 = vrot.slane %v1598_v42, 5  ;;  %v1606_v55 = vrot.slane %v1604_v45, 5  ;;  %v1608_v11 = vshrl.u32 %v4092_v26, 16  ;;  %v1614_v56 = vshll.u32 %v4093_v30, 16  ;;  %v4304_v30 = vld [vmem:[%s4825_s22 + $0xa8] sm:$0xf] }
  0xcb   : > { %v2972_v21 = vpop.permute.xlu1 %2971  ;;  %1371 = vrot.lane.b32.xlu0 %v4716_v32, %s4768_s23  ;;  %v1799_v57 = vsel %vm4877_vm5, %v1794_v51, %v1798_v29  ;;  %v1804_v46 = vrot.slane %v1803_v52, 4  ;;  %v4200_v58 = vrot.slane %v4176_v31, 9  ;;  %v2153_v59 = vrot.slane %v4177_v38, 5  ;;  %3002 = vst.msk [vmem:[#allocation2] sm:$0xff] %vm3001_vm13, %v2954_v49  ;;  %v4157_v29 = vld [vmem:[%s4825_s22 + $0x50] sm:$0x1] }
  0xcc   : > { %v1601_v43 = vor.u32 %v1600_v54, %v1597_v37  ;;  %v1610_v20 = vrot.slane %v1608_v11, 4  ;;  %v2156_v44 = vrot.slane %v4178_v39, 5  ;;  %v1616_v61 = vrot.slane %v1614_v56, 5  ;;  %3011 = vst.msk [vmem:[#allocation2 + $0x48] sm:$0xff] %vm3001_vm13, %v2972_v21  ;;  %v4305_v35 = vld [vmem:[%s4825_s22 + $0xac] sm:$0xf] }
  0xcd   : > { %1930 = vrot.lane.b32.xlu1 %v4136_v22, %s4771_s26  ;;  %v1809_v60 = vsel %vm4877_vm5, %v1804_v46, %v1808_v53  ;;  %v4192_v63 = vrot.slane %v4152_v47, 9  ;;  %v2097_v1 = vrot.slane %v4153_v48, 5  ;;  %v2154_v7 = vsel %vm4827_vm2, %v4200_v58, %v2153_v59  ;;  %v4306_v41 = vld [vmem:[%s4825_s22 + $0xb0] sm:$0x1]  ;;  %v4280_v48 = vld [vmem:[%s4825_s22 + $0x48] sm:$0xf] }
  0xce   : > { %v4137_v3 = vcombine.low %v1799_v57, %v1809_v60  ;;  %v1602_v4 = vrot.slane %v1601_v43, 4  ;;  %v1611_v6 = vor.u32 %v1610_v20, %v1606_v55  ;;  %v2155_v12 = vrot.slane %v2153_v59, 4  ;;  %v4281_v11 = vld [vmem:[%s4825_s22 + $0x4c] sm:$0xf]  ;;  %v4282_v58 = vld [vmem:[%s4825_s22 + $0x50] sm:$0x1] }
  0xcf   : > { %v2956_v10 = vpop.permute.xlu0 %2955  ;;  %1914 = vrot.lane.b32.xlu0 %v4128_v50, %s4771_s26  ;;  %v5472_v14 = vsel %vm4827_vm2, %v4192_v63, %v2097_v1  ;;  %v2099_v15 = vrot.slane %v2097_v1, 4  ;;  %v2100_v16 = vrot.slane %v4154_v13, 5  ;;  %v3291_v18 = vpop.permute.xlu1 %3290  ;;  %v4201_v24 = vrot.slane %v4179_v2, 9  ;;  %v4717_v59 = vld [vmem:[%s4825_s22 + $0xa8] sm:$0xff]   ;;  %v4307_v63 = vld [vmem:[%s4825_s22 + $0xb4] sm:$0xf] }
  0xd0   : > { %v1607_v19 = vsel %vm4877_vm5, %v1602_v4, %v1606_v55  ;;  %v1612_v23 = vrot.slane %v1611_v6, 4  ;;  %v2157_v26 = vsel %vm4827_vm2, %v2155_v12, %v2156_v44  ;;  %v2160_v27 = vrot.slane %v4180_v8, 5  ;;  %3003 = vst.msk [vmem:[#allocation2 + $0x8] sm:$0xff] %vm3001_vm13, %v2956_v10  ;;  %v4308_v12 = vld [vmem:[%s4825_s22 + $0xb8] sm:$0xf] }
  0xd1   : > { %1932 = vrot.lane.b32.xlu1 %v4137_v3, %s4771_s26  ;;  %v2101_v22 = vsel %vm4827_vm2, %v2099_v15, %v2100_v16  ;;  %v2163_v28 = vrot.slane %v4181_v9, 5  ;;  %v4216_v32 = vcombine.low %v2154_v7, %v2157_v26  ;;  %v4193_v34 = vrot.slane %v4155_v17, 9  ;;  %3331 = vst.msk [vmem:[#allocation2 + $0x40] sm:$0xff] %vm3322_vm14, %v3291_v18  ;;  %v4309_v16 = vld [vmem:[%s4825_s22 + $0xbc] sm:$0x1]  ;;  %v4719_v18 = vld [vmem:[%s4825_s22 + $0xb4] sm:$0xff]  }
  0xd2   : > { %v1617_v31 = vsel %vm4877_vm5, %v1612_v23, %v1616_v61  ;;  %v4208_v33 = vcombine.low %v5472_v14, %v2101_v22  ;;  %v2161_v38 = vsel %vm4827_vm2, %v4201_v24, %v2160_v27  ;;  %v2162_v39 = vrot.slane %v2160_v27, 4 }
  0xd3   : > { %v3275_v62 = vpop.permute.xlu0 %3274  ;;  %v4129_v36 = vcombine.low %v1607_v19, %v1617_v31  ;;  %v2104_v40 = vrot.slane %v4156_v25, 5  ;;  %v2107_v42 = vrot.slane %v4157_v29, 5  ;;  %v2810_v45 = vshrl.u32 %v4304_v30, 16 }
  0xd4   : > { %v2813_v47 = vshll.u32 %v4304_v30, 16  ;;  %v2164_v49 = vsel %vm4827_vm2, %v2162_v39, %v2163_v28  ;;  %3323 = vst.msk [vmem:[#allocation2] sm:$0xff] %vm3322_vm14, %v3275_v62  ;;  %v2819_v53 = vshll.u32 %v4305_v35, 16  ;;  %v2823_v55 = vshrl.u32 %v4305_v35, 16  ;;  %v4718_v28 = vld [vmem:[%s4825_s22 + $0x48] sm:$0xff]  }
  0xd5   : > { %2251 = vrot.lane.b32.xlu1 %v4216_v32, %s4772_s27  ;;  %1916 = vrot.lane.b32.xlu0 %v4129_v36, %s4771_s26  ;;  %v2105_v50 = vsel %vm4827_vm2, %v4193_v34, %v2104_v40  ;;  %v2106_v51 = vrot.slane %v2104_v40, 4  ;;  %v4217_v21 = vcombine.low %v2161_v38, %v2164_v49  ;;  %v2812_v37 = vrot.slane %v2810_v45, 4  ;;  %v4284_v38 = vld [vmem:[%s4825_s22 + $0x58] sm:$0xf]  ;;  %v4285_v45 = vld [vmem:[%s4825_s22 + $0x5c] sm:$0x1] }
  0xd6   : > { %v877_v52 = vpop.permute.xlu1 %876  ;;  %v2815_v54 = vrot.slane %v2813_v47, 5  ;;  %v2821_v46 = vrot.slane %v2819_v53, 5  ;;  %v2829_v56 = vshll.u32 %v4306_v41, 16  ;;  %v2618_v43 = vshrl.u32 %v4280_v48, 16 }
  0xd7   : > { %915 = vst.msk [vmem:[#allocation2 + $0x50] sm:$0xff] %vm904_vm7, %v877_v52  ;;  %v2108_v57 = vsel %vm4827_vm2, %v2106_v51, %v2107_v42  ;;  %v2825_v60 = vrot.slane %v2823_v55, 4  ;;  %v2621_v61 = vshll.u32 %v4280_v48, 16  ;;  %v2627_v3 = vshll.u32 %v4281_v11, 16  ;;  %v4720_v52 = vld [vmem:[%s4825_s22 + $0x54] sm:$0xff]  }
  0xd8   : > { %v4209_v20 = vcombine.low %v2105_v50, %v2108_v57  ;;  %v2816_v13 = vor.u32 %v2815_v54, %v2812_v37  ;;  %v2831_v1 = vrot.slane %v2829_v56, 5  ;;  %v2620_v2 = vrot.slane %v2618_v43, 4  ;;  %v3347_v27 = vld [vmem:[#allocation2 + $0x40] sm:$0xff]  ;;  %v4727_v51 = vld [vmem:[%s6030_s1 + $0x10] ss:$0 sps:$4 sm:$0x33]  }
  0xd9   : > { %2253 = vrot.lane.b32.xlu1 %v4217_v21, %s4772_s27  ;;  %2235 = vrot.lane.b32.xlu0 %v4208_v33, %s4772_s27  ;;  %v2631_v4 = vshrl.u32 %v4281_v11, 16  ;;  %v2826_v8 = vor.u32 %v2825_v60, %v2821_v46  ;;  %v2623_v9 = vrot.slane %v2621_v61, 5  ;;  %v2637_v10 = vshll.u32 %v4282_v58, 16  ;;  %v4283_v33 = vld [vmem:[%s4825_s22 + $0x54] sm:$0xf] }
  0xda   : > { %v861_v44 = vpop.permute.xlu0 %860  ;;  %v3293_v6 = vpop.permute.xlu1 %3292  ;;  %v2817_v7 = vrot.slane %v2816_v13, 4  ;;  %v2629_v14 = vrot.slane %v2627_v3, 5  ;;  %v2834_v17 = vshrl.u32 %v4307_v63, 16  ;;  %v2837_v31 = vshll.u32 %v4307_v63, 16  ;;  %4636 = vmatprep.mubr.msk.bf16.mxu1 %vm3375_vm15, %v3347_v27  ;;  %v4368_v55 = vld [vmem:[%s4825_s22 + $0xa8] sm:$0xe]  ;;  %4658 = vmatprep.subr.msk.bf16.mxu0 %vm3424_vm0, %v4727_v51 }
  0xdb   : > { %907 = vst.msk [vmem:[#allocation2 + $0x10] sm:$0xff] %vm904_vm7, %v861_v44  ;;  %v2633_v15 = vrot.slane %v2631_v4, 4  ;;  %v2827_v23 = vrot.slane %v2826_v8, 4  ;;  %v2624_v24 = vor.u32 %v2623_v9, %v2620_v2  ;;  %v2639_v25 = vrot.slane %v2637_v10, 5  ;;  %v3339_v22 = vld [vmem:[#allocation2] sm:$0xff]  ;;  %4659 = vmatprep.subr.msk.bf16.mxu1 %vm3424_vm0, %v4727_v51 }
  0xdc   : > { %3332 = vst.msk [vmem:[#allocation2 + $0x48] sm:$0xff] %vm3322_vm14, %v3293_v6  ;;  %v2822_v19 = vsel %vm4877_vm5, %v2817_v7, %v2821_v46  ;;  %4620 = vmatprep.mubr.msk.bf16.mxu0 %vm3375_vm15, %v3339_v22  ;;  %v2836_v30 = vrot.slane %v2834_v17, 4  ;;  %v2843_v32 = vshll.u32 %v4308_v12, 16  ;;  %v2847_v35 = vshrl.u32 %v4308_v12, 16  ;;  %v4369_v43 = vld [vmem:[%s4825_s22 + $0xac] sm:$0xf] }
  0xdd   : > { %2432 = vrot.lane.b32.xlu1 %v4717_v59, %s4773_s28  ;;  %2237 = vrot.lane.b32.xlu0 %v4209_v20, %s4772_s27  ;;  %v2634_v29 = vor.u32 %v2633_v15, %v2629_v14  ;;  %v2832_v34 = vsel %vm4877_vm5, %v2827_v23, %v2831_v1  ;;  %v2625_v62 = vrot.slane %v2624_v24, 4  ;;  %v2853_v36 = vshll.u32 %v4309_v16, 16  ;;  %v4370_v20 = vld [vmem:[%s4825_s22 + $0xb0] sm:$0x1]  ;;  %v4344_v61 = vld [vmem:[%s4825_s22 + $0x48] sm:$0xe] }
  0xde   : > { %v3277_v26 = vpop.permute.xlu0 %3276  ;;  %v4328_v39 = vcombine.low %v2822_v19, %v2832_v34  ;;  %v2839_v41 = vrot.slane %v2837_v31, 5  ;;  %v2845_v42 = vrot.slane %v2843_v32, 5  ;;  %v2849_v48 = vrot.slane %v2847_v35, 4  ;;  %v4345_v4 = vld [vmem:[%s4825_s22 + $0x4c] sm:$0xf] }
  0xdf   : > { %3324 = vst.msk [vmem:[#allocation2 + $0x8] sm:$0xff] %vm3322_vm14, %v3277_v26  ;;  %v2635_v40 = vrot.slane %v2634_v29, 4  ;;  %v2630_v47 = vsel %vm4877_vm5, %v2625_v62, %v2629_v14  ;;  %v2855_v49 = vrot.slane %v2853_v36, 5  ;;  %v2642_v50 = vshrl.u32 %v4283_v33, 16  ;;  %v4346_v10 = vld [vmem:[%s4825_s22 + $0x50] sm:$0x1] }
  0xe0   : > { %v2840_v21 = vor.u32 %v2839_v41, %v2836_v30  ;;  %v2645_v37 = vshll.u32 %v4283_v33, 16  ;;  %v2651_v54 = vshll.u32 %v4284_v38, 16  ;;  %v2850_v57 = vor.u32 %v2849_v48, %v2845_v42  ;;  %v416_v19 = vld [vmem:[%s4825_s22 + $0xac] sm:$0xf]  ;;  %v417_v33 = vld [vmem:[%s4825_s22 + $0xb0] sm:$0x1] }
  0xe1   : > { %2434 = vrot.lane.b32.xlu1 %v4719_v18, %s4773_s28  ;;  %2416 = vrot.lane.b32.xlu0 %v4718_v28, %s4773_s28  ;;  %v2640_v53 = vsel %vm4877_vm5, %v2635_v40, %v2639_v25  ;;  %v2644_v46 = vrot.slane %v2642_v50, 4  ;;  %v2655_v56 = vshrl.u32 %v4284_v38, 16  ;;  %v2661_v60 = vshll.u32 %v4285_v45, 16  ;;  %v415_v18 = vld [vmem:[%s4825_s22 + $0xa8] sm:$0xf] }
  0xe2   : > { %v4320_v11 = vcombine.low %v2630_v47, %v2640_v53  ;;  %v2841_v59 = vrot.slane %v2840_v21, 4  ;;  %v2647_v44 = vrot.slane %v2645_v37, 5  ;;  %v2653_v13 = vrot.slane %v2651_v54, 5  ;;  %v391_v34 = vld [vmem:[%s4825_s22 + $0x48] sm:$0xf] }
  0xe3   : > { %v2851_v63 = vrot.slane %v2850_v57, 4  ;;  %v2657_v1 = vrot.slane %v2655_v56, 4  ;;  %v4392_v3 = vrot.slane %v4368_v55, 9  ;;  %v2663_v8 = vrot.slane %v2661_v60, 5  ;;  %v3348_v27 = vld [vmem:[#allocation2 + $0x48] sm:$0xff] }
  0xe4   : > { %v879_v58 = vpop.permute.xlu1 %878  ;;  %v2846_v6 = vsel %vm4877_vm5, %v2841_v59, %v2845_v42  ;;  %v2648_v7 = vor.u32 %v2647_v44, %v2644_v46  ;;  %v3426_v9 = vsel %vm3424_vm0, %v4727_v51, 0  ;;  %v3200_v15 = vrot.slane %v4369_v43, 5  ;;  %v392_v62 = vld [vmem:[%s4825_s22 + $0x4c] sm:$0xf]  ;;  %v393_v40 = vld [vmem:[%s4825_s22 + $0x50] sm:$0x1] }
  0xe5   : > { %916 = vst.msk [vmem:[#allocation2 + $0x58] sm:$0xff] %vm904_vm7, %v879_v58  ;;  %2977 = vrot.lane.b32.xlu1 %v4328_v39, %s4774_s29  ;;  %v863_v2 = vpop.permute.xlu0 %862  ;;  %2418 = vrot.lane.b32.xlu0 %v4720_v52, %s4773_s28  ;;  %v2856_v12 = vsel %vm4877_vm5, %v2851_v63, %v2855_v49  ;;  %v2658_v14 = vor.u32 %v2657_v1, %v2653_v13  ;;  %v3203_v16 = vrot.slane %v4370_v20, 5  ;;  %v4384_v25 = vrot.slane %v4344_v61, 9  ;;  %v4740_v53 = vld [vmem:[%s4825_s22 + $0xa8] sm:$0xff]   ;;  %v4371_v57 = vld [vmem:[%s4825_s22 + $0xb4] sm:$0xe] }
  0xe6   : > { %908 = vst.msk [vmem:[#allocation2 + $0x18] sm:$0xff] %vm904_vm7, %v863_v2  ;;  %4619 = vmatpush3.bf16.msra.mxu0 %v3426_v9  ;;  %v4329_v23 = vcombine.low %v2846_v6, %v2856_v12  ;;  %v2649_v24 = vrot.slane %v2648_v7, 4  ;;  %4657 = vmatpush3.bf16.msra.mxu1 %v3426_v9  ;;  %v3144_v26 = vrot.slane %v4345_v4, 5  ;;  %v3340_v22 = vld [vmem:[#allocation2 + $0x8] sm:$0xff]  ;;  %v3201_v29 = vsel %vm4827_vm2, %v4392_v3, %v3200_v15  ;;  %v4372_v46 = vld [vmem:[%s4825_s22 + $0xb8] sm:$0xf] }
  0xe7   : > { %v2659_v28 = vrot.slane %v2658_v14, 4  ;;  %v3202_v30 = vrot.slane %v3200_v15, 4  ;;  %v3147_v31 = vrot.slane %v4346_v10, 5  ;;  %v761_v39 = vshrl.u32 %v415_v18, 16  ;;  %v4741_v56 = vld [vmem:[%s4825_s22 + $0x48] sm:$0xff]   ;;  %371 = vst.msk [vmem:[#allocation2 + $0x70] sm:$0xff] %vm356_vm6, %v4740_v53 }
  0xe8   : > { %v1201_v17 = vpop.permute.xlu1 %1200  ;;  %v2654_v35 = vsel %vm4877_vm5, %v2649_v24, %v2653_v13  ;;  %v3145_v36 = vsel %vm4827_vm2, %v4384_v25, %v3144_v26  ;;  %v3146_v38 = vrot.slane %v3144_v26, 4  ;;  %v764_v45 = vshll.u32 %v415_v18, 16  ;;  %v4373_v44 = vld [vmem:[%s4825_s22 + $0xbc] sm:$0x1]  ;;  %v4347_v1 = vld [vmem:[%s4825_s22 + $0x54] sm:$0xe] }
  0xe9   : > { %1239 = vst.msk [vmem:[#allocation2 + $0x50] sm:$0xff] %vm1228_vm8, %v1201_v17  ;;  %v1185_v32 = vpop.permute.xlu0 %1184  ;;  %2961 = vrot.lane.b32.xlu0 %v4320_v11, %s4774_s29  ;;  %2979 = vrot.lane.b32.xlu1 %v4329_v23, %s4774_s29  ;;  %v2664_v41 = vsel %vm4877_vm5, %v2659_v28, %v2663_v8  ;;  %v3204_v42 = vsel %vm4827_vm2, %v3202_v30, %v3203_v16  ;;  %v770_v47 = vshll.u32 %v416_v19, 16  ;;  %v763_v52 = vrot.slane %v761_v39, 4  ;;  %v4348_v8 = vld [vmem:[%s4825_s22 + $0x58] sm:$0xf] }
  0xea   : > { %1231 = vst.msk [vmem:[#allocation2 + $0x10] sm:$0xff] %vm1228_vm8, %v1185_v32  ;;  %4621 = vmatmul.mubr.msk.bf16.vlgmr.msra.gmra.mrb[0].mxu0 %vm3375_vm15, %v3340_v22  ;;  %4637 = vmatmul.mubr.msk.bf16.vlgmr.msra.gmra.mrb[0].mxu1 %vm3375_vm15, %v3348_v27  ;;  %v4321_v49 = vcombine.low %v2654_v35, %v2664_v41  ;;  %v4408_v50 = vcombine.low %v3201_v29, %v3204_v42  ;;  %v766_v37 = vrot.slane %v764_v45, 5  ;;  %v774_v55 = vshrl.u32 %v416_v19, 16  ;;  %v4349_v15 = vld [vmem:[%s4825_s22 + $0x5c] sm:$0x1]  ;;  %v4742_v39 = vld [vmem:[%s4825_s22 + $0xb4] sm:$0xff]  }
  0xeb   : > { %v3148_v51 = vsel %vm4827_vm2, %v3146_v38, %v3147_v31  ;;  %v772_v54 = vrot.slane %v770_v47, 5  ;;  %v780_v58 = vshll.u32 %v417_v33, 16  ;;  %v569_v43 = vshrl.u32 %v391_v34, 16  ;;  %363 = vst.msk [vmem:[#allocation2 + $0x30] sm:$0xff] %vm356_vm6, %v4741_v56  ;;  %v418_v24 = vld [vmem:[%s4825_s22 + $0xb4] sm:$0xf] }
  0xec   : > { %v1203_v48 = vpop.permute.xlu1 %1202  ;;  %v4400_v21 = vcombine.low %v3145_v36, %v3148_v51  ;;  %v572_v20 = vshll.u32 %v391_v34, 16  ;;  %v578_v59 = vshll.u32 %v392_v62, 16  ;;  %v767_v13 = vor.u32 %v766_v37, %v763_v52  ;;  %v419_v35 = vld [vmem:[%s4825_s22 + $0xb8] sm:$0xf]  ;;  %v420_v47 = vld [vmem:[%s4825_s22 + $0xbc] sm:$0x1] }
  0xed   : > { %1240 = vst.msk [vmem:[#allocation2 + $0x58] sm:$0xff] %vm1228_vm8, %v1203_v48  ;;  %v1187_v11 = vpop.permute.xlu0 %1186  ;;  %2963 = vrot.lane.b32.xlu0 %v4321_v49, %s4774_s29  ;;  %3298 = vrot.lane.b32.xlu1 %v4408_v50, %s4775_s30  ;;  %v776_v60 = vrot.slane %v774_v55, 4  ;;  %v582_v61 = vshrl.u32 %v392_v62, 16  ;;  %v588_v63 = vshll.u32 %v393_v40, 16  ;;  %v782_v3 = vrot.slane %v780_v58, 5 }
  0xee   : > { %1232 = vst.msk [vmem:[#allocation2 + $0x18] sm:$0xff] %vm1228_vm8, %v1187_v11  ;;  %v571_v4 = vrot.slane %v569_v43, 4  ;;  %v574_v6 = vrot.slane %v572_v20, 5  ;;  %v580_v7 = vrot.slane %v578_v59, 5  ;;  %v768_v9 = vrot.slane %v767_v13, 4 }
  0xef   : > { %v777_v10 = vor.u32 %v776_v60, %v772_v54  ;;  %v584_v12 = vrot.slane %v582_v61, 4  ;;  %v590_v14 = vrot.slane %v588_v63, 5  ;;  %v4393_v18 = vrot.slane %v4371_v57, 9  ;;  %v394_v48 = vld [vmem:[%s4825_s22 + $0x54] sm:$0xf]  ;;  %372 = vst.msk [vmem:[#allocation2 + $0x78] sm:$0xff] %vm356_vm6, %v4742_v39 }
  0xf0   : > { %v1382_v2 = vpop.permute.xlu1 %1381  ;;  %v575_v17 = vor.u32 %v574_v6, %v571_v4  ;;  %v3207_v19 = vrot.slane %v4372_v46, 5  ;;  %v3210_v23 = vrot.slane %v4373_v44, 5  ;;  %v773_v25 = vsel %vm4877_vm5, %v768_v9, %v772_v54  ;;  %v395_v53 = vld [vmem:[%s4825_s22 + $0x58] sm:$0xf]  ;;  %v396_v57 = vld [vmem:[%s4825_s22 + $0x5c] sm:$0x1] }
  0xf1   : > { %1420 = vst.msk [vmem:[#allocation2 + $0x50] sm:$0xff] %vm1409_vm9, %v1382_v2  ;;  %v1366_v16 = vpop.permute.xlu0 %1365  ;;  %3282 = vrot.lane.b32.xlu0 %v4400_v21, %s4775_s30  ;;  %v778_v26 = vrot.slane %v777_v10, 4  ;;  %v585_v22 = vor.u32 %v584_v12, %v580_v7  ;;  %v4385_v27 = vrot.slane %v4347_v1, 9  ;;  %v3151_v32 = vrot.slane %v4348_v8, 5  ;;  %v4743_v46 = vld [vmem:[%s4825_s22 + $0x54] sm:$0xff]  }
  0xf2   : > { %1412 = vst.msk [vmem:[#allocation2 + $0x10] sm:$0xff] %vm1409_vm9, %v1366_v16  ;;  %v576_v29 = vrot.slane %v575_v17, 4  ;;  %v3208_v30 = vsel %vm4827_vm2, %v4393_v18, %v3207_v19  ;;  %v3209_v31 = vrot.slane %v3207_v19, 4  ;;  %v3154_v62 = vrot.slane %v4349_v15, 5  ;;  %v963_v59 = vld [vmem:[%s4825_s22 + $0xa8] sm:$0xe] }
  0xf3   : > { %v783_v33 = vsel %vm4877_vm5, %v778_v26, %v782_v3  ;;  %v586_v34 = vrot.slane %v585_v22, 4  ;;  %v785_v36 = vshrl.u32 %v418_v24, 16  ;;  %v3152_v45 = vsel %vm4827_vm2, %v4385_v27, %v3151_v32  ;;  %v964_v1 = vld [vmem:[%s4825_s22 + $0xac] sm:$0xf]  ;;  %364 = vst.msk [vmem:[#allocation2 + $0x38] sm:$0xff] %vm356_vm6, %v4743_v46 }
  0xf4   : > { %v1384_v28 = vpop.permute.xlu1 %1383  ;;  %v3994_v40 = vcombine.low %v773_v25, %v783_v33  ;;  %v581_v41 = vsel %vm4877_vm5, %v576_v29, %v580_v7  ;;  %v3211_v42 = vsel %vm4827_vm2, %v3209_v31, %v3210_v23  ;;  %v3153_v51 = vrot.slane %v3151_v32, 4  ;;  %v965_v7 = vld [vmem:[%s4825_s22 + $0xb0] sm:$0x1]  ;;  %v939_v15 = vld [vmem:[%s4825_s22 + $0x48] sm:$0xe] }
  0xf5   : > { %1421 = vst.msk [vmem:[#allocation2 + $0x58] sm:$0xff] %vm1409_vm9, %v1384_v28  ;;  %v1368_v38 = vpop.permute.xlu0 %1367  ;;  %v591_v49 = vsel %vm4877_vm5, %v586_v34, %v590_v14  ;;  %v4409_v50 = vcombine.low %v3208_v30, %v3211_v42  ;;  %v787_v52 = vrot.slane %v785_v36, 4  ;;  %v788_v54 = vshll.u32 %v418_v24, 16  ;;  %v940_v16 = vld [vmem:[%s4825_s22 + $0x4c] sm:$0xf] }
  0xf6   : > { %1413 = vst.msk [vmem:[#allocation2 + $0x18] sm:$0xff] %vm1409_vm9, %v1368_v38  ;;  %884 = vrot.lane.b32.xlu1 %v3994_v40, %s4770_s25  ;;  %v3986_v37 = vcombine.low %v581_v41, %v591_v49  ;;  %v794_v55 = vshll.u32 %v419_v35, 16  ;;  %v798_v11 = vshrl.u32 %v419_v35, 16  ;;  %v3155_v56 = vsel %vm4827_vm2, %v3153_v51, %v3154_v62  ;;  %v941_v24 = vld [vmem:[%s4825_s22 + $0x50] sm:$0x1] }
  0xf7   : > { %v804_v58 = vshll.u32 %v420_v47, 16  ;;  %v593_v43 = vshrl.u32 %v394_v48, 16  ;;  %v596_v20 = vshll.u32 %v394_v48, 16  ;;  %v4401_v13 = vcombine.low %v3152_v45, %v3155_v56  ;;  %v966_v25 = vld [vmem:[%s4825_s22 + $0xb4] sm:$0xe] }
  0xf8   : > { %v1927_v21 = vpop.permute.xlu1 %1926  ;;  %868 = vrot.lane.b32.xlu0 %v3986_v37, %s4770_s25  ;;  %v790_v60 = vrot.slane %v788_v54, 5  ;;  %v796_v61 = vrot.slane %v794_v55, 5  ;;  %v800_v63 = vrot.slane %v798_v11, 4  ;;  %v602_v6 = vshll.u32 %v395_v53, 16  ;;  %v967_v29 = vld [vmem:[%s4825_s22 + $0xb8] sm:$0xf] }
  0xf9   : > { %1965 = vst.msk [vmem:[#allocation2 + $0x50] sm:$0xff] %vm1954_vm10, %v1927_v21  ;;  %v1911_v44 = vpop.permute.xlu0 %1910  ;;  %v806_v2 = vrot.slane %v804_v58, 5  ;;  %v595_v3 = vrot.slane %v593_v43, 4  ;;  %v598_v4 = vrot.slane %v596_v20, 5  ;;  %v606_v12 = vshrl.u32 %v395_v53, 16 }
  0xfa   : > { %1957 = vst.msk [vmem:[#allocation2 + $0x10] sm:$0xff] %vm1954_vm10, %v1911_v44  ;;  %3300 = vrot.lane.b32.xlu1 %v4409_v50, %s4775_s30  ;;  %v791_v9 = vor.u32 %v790_v60, %v787_v52  ;;  %v801_v10 = vor.u32 %v800_v63, %v796_v61  ;;  %v612_v14 = vshll.u32 %v396_v57, 16  ;;  %v604_v18 = vrot.slane %v602_v6, 5  ;;  %v968_v30 = vld [vmem:[%s4825_s22 + $0xbc] sm:$0x1] }
  0xfb   : > { %v599_v17 = vor.u32 %v598_v4, %v595_v3  ;;  %v4010_v19 = vrot.slane %v963_v59, 9  ;;  %v1120_v23 = vrot.slane %v964_v1, 5  ;;  %v608_v27 = vrot.slane %v606_v12, 4  ;;  %v942_v62 = vld [vmem:[%s4825_s22 + $0x54] sm:$0xe] }
  0xfc   : > { %v1929_v8 = vpop.permute.xlu1 %1928  ;;  %3284 = vrot.lane.b32.xlu0 %v4401_v13, %s4775_s30  ;;  %v792_v26 = vrot.slane %v791_v9, 4  ;;  %v802_v22 = vrot.slane %v801_v10, 4  ;;  %v614_v28 = vrot.slane %v612_v14, 5  ;;  %v1123_v34 = vrot.slane %v965_v7, 5  ;;  %v943_v35 = vld [vmem:[%s4825_s22 + $0x58] sm:$0xf] }
  0xfd   : > { %1966 = vst.msk [vmem:[#allocation2 + $0x58] sm:$0xff] %vm1954_vm10, %v1929_v8  ;;  %v600_v31 = vrot.slane %v599_v17, 4  ;;  %v1121_v32 = vsel %vm4827_vm2, %v4010_v19, %v1120_v23  ;;  %v1122_v33 = vrot.slane %v1120_v23, 4  ;;  %v609_v41 = vor.u32 %v608_v27, %v604_v18  ;;  %v944_v45 = vld [vmem:[%s4825_s22 + $0x5c] sm:$0x1] }
  0xfe   : > { %v797_v39 = vsel %vm4877_vm5, %v792_v26, %v796_v61  ;;  %v807_v40 = vsel %vm4877_vm5, %v802_v22, %v806_v2  ;;  %v4002_v42 = vrot.slane %v939_v15, 9  ;;  %v1064_v50 = vrot.slane %v940_v16, 5  ;;  %v4118_v51 = vld [vmem:[%s4825_s22 + $0xb4] sm:$0xf]  ;;  %v4119_v54 = vld [vmem:[%s4825_s22 + $0xb8] sm:$0xf] }
  0xff   : > { %v1913_v36 = vpop.permute.xlu0 %1912  ;;  %v3995_v47 = vcombine.low %v797_v39, %v807_v40  ;;  %v605_v48 = vsel %vm4877_vm5, %v600_v31, %v604_v18  ;;  %v1124_v49 = vsel %vm4827_vm2, %v1122_v33, %v1123_v34  ;;  %v610_v52 = vrot.slane %v609_v41, 4  ;;  %v4120_v43 = vld [vmem:[%s4825_s22 + $0xbc] sm:$0x1]  ;;  %v4094_v2 = vld [vmem:[%s4825_s22 + $0x54] sm:$0xf] }
 0x100   : > { %v2248_v38 = vpop.permute.xlu1 %2247  ;;  %1958 = vst.msk [vmem:[#allocation2 + $0x18] sm:$0xff] %vm1954_vm10, %v1913_v36  ;;  %v4026_v53 = vcombine.low %v1121_v32, %v1124_v49  ;;  %v1067_v21 = vrot.slane %v941_v24, 5  ;;  %v4011_v37 = vrot.slane %v966_v25, 9  ;;  %v1065_v55 = vsel %vm4827_vm2, %v4002_v42, %v1064_v50  ;;  %v4095_v3 = vld [vmem:[%s4825_s22 + $0x58] sm:$0xf] }
 0x101   : > { %2286 = vst.msk [vmem:[#allocation2 + $0x50] sm:$0xff] %vm2275_vm11, %v2248_v38  ;;  %886 = vrot.lane.b32.xlu1 %v3995_v47, %s4770_s25  ;;  %v1066_v11 = vrot.slane %v1064_v50, 4  ;;  %v1127_v57 = vrot.slane %v967_v29, 5  ;;  %v1130_v46 = vrot.slane %v968_v30, 5  ;;  %v615_v20 = vsel %vm4877_vm5, %v610_v52, %v614_v28  ;;  %v4096_v24 = vld [vmem:[%s4825_s22 + $0x5c] sm:$0x1] }
 0x102   : > { %v4003_v59 = vrot.slane %v942_v62, 9  ;;  %v1071_v44 = vrot.slane %v943_v35, 5  ;;  %v1074_v13 = vrot.slane %v944_v45, 5  ;;  %v3987_v60 = vcombine.low %v605_v48, %v615_v20  ;;  %v4121_v28 = vld [vmem:[%s4825_s22 + $0xc0] sm:$0xf]  ;;  %v4728_v33 = vld [vmem:[%s4825_s22 + $0xb4] sm:$0xff]  }
 0x103   : > { %v2232_v56 = vpop.permute.xlu0 %2231  ;;  %v1068_v61 = vsel %vm4827_vm2, %v1066_v11, %v1067_v21  ;;  %v1128_v63 = vsel %vm4827_vm2, %v4011_v37, %v1127_v57  ;;  %v1129_v1 = vrot.slane %v1127_v57, 4  ;;  %v1811_v8 = vshrl.u32 %v4118_v51, 16  ;;  %v4122_v39 = vld [vmem:[%s4825_s22 + $0xc4] sm:$0xf]  ;;  %v4123_v52 = vld [vmem:[%s4825_s22 + $0xc8] sm:$0x1] }
 0x104   : > { %v2250_v58 = vpop.permute.xlu1 %2249  ;;  %2278 = vst.msk [vmem:[#allocation2 + $0x10] sm:$0xff] %vm2275_vm11, %v2232_v56  ;;  %v4018_v4 = vcombine.low %v1065_v55, %v1068_v61  ;;  %v1072_v6 = vsel %vm4827_vm2, %v4003_v59, %v1071_v44  ;;  %v1073_v7 = vrot.slane %v1071_v44, 4  ;;  %870 = vrot.lane.b32.xlu0 %v3987_v60, %s4770_s25  ;;  %v1814_v12 = vshll.u32 %v4118_v51, 16  ;;  %v4097_v11 = vld [vmem:[%s4825_s22 + $0x60] sm:$0xf] }
 0x105   : > { %2287 = vst.msk [vmem:[#allocation2 + $0x58] sm:$0xff] %vm2275_vm11, %v2250_v58  ;;  %1208 = vrot.lane.b32.xlu1 %v4026_v53, %s4769_s24  ;;  %v1131_v9 = vsel %vm4827_vm2, %v1129_v1, %v1130_v46  ;;  %v1820_v14 = vshll.u32 %v4119_v54, 16  ;;  %v1824_v15 = vshrl.u32 %v4119_v54, 16  ;;  %v1813_v19 = vrot.slane %v1811_v8, 4  ;;  %v4729_v53 = vld [vmem:[%s4825_s22 + $0x54] sm:$0xff]   ;;  %v4730_v57 = vld [vmem:[%s4825_s22 + $0xc0] sm:$0xff]  }
 0x106   : > { %v4027_v17 = vcombine.low %v1128_v63, %v1131_v9  ;;  %v1075_v18 = vsel %vm4827_vm2, %v1073_v7, %v1074_v13  ;;  %v1830_v23 = vshll.u32 %v4120_v43, 16  ;;  %v1816_v26 = vrot.slane %v1814_v12, 5  ;;  %v4098_v20 = vld [vmem:[%s4825_s22 + $0x64] sm:$0xf]  ;;  %v4099_v1 = vld [vmem:[%s4825_s22 + $0x68] sm:$0x1] }
 0x107   : > { %v2234_v10 = vpop.permute.xlu0 %2233  ;;  %v4019_v25 = vcombine.low %v1072_v6, %v1075_v18  ;;  %v1822_v22 = vrot.slane %v1820_v14, 5  ;;  %v1826_v27 = vrot.slane %v1824_v15, 4  ;;  %v1619_v30 = vshrl.u32 %v4094_v2, 16  ;;  %v4183_v9 = vld [vmem:[%s4825_s22 + $0xb8] sm:$0xf] }
 0x108   : > { %v2429_v16 = vpop.permute.xlu1 %2428  ;;  %2279 = vst.msk [vmem:[#allocation2 + $0x18] sm:$0xff] %vm2275_vm11, %v2234_v10  ;;  %v1832_v29 = vrot.slane %v1830_v23, 5  ;;  %v1622_v31 = vshll.u32 %v4094_v2, 16  ;;  %v1628_v32 = vshll.u32 %v4095_v3, 16  ;;  %1192 = vrot.lane.b32.xlu0 %v4018_v4, %s4769_s24  ;;  %v1817_v34 = vor.u32 %v1816_v26, %v1813_v19  ;;  %v4182_v2 = vld [vmem:[%s4825_s22 + $0xb4] sm:$0xe] }
 0x109   : > { %2467 = vst.msk [vmem:[#allocation2 + $0x50] sm:$0xff] %vm2456_vm12, %v2429_v16  ;;  %1210 = vrot.lane.b32.xlu1 %v4027_v17, %s4769_s24  ;;  %v1827_v62 = vor.u32 %v1826_v27, %v1822_v22  ;;  %v1632_v35 = vshrl.u32 %v4095_v3, 16  ;;  %v1638_v36 = vshll.u32 %v4096_v24, 16  ;;  %v1621_v41 = vrot.slane %v1619_v30, 4  ;;  %v4731_v3 = vld [vmem:[%s4825_s22 + $0x60] sm:$0xff]  }
 0x10a   : > { %v1624_v42 = vrot.slane %v1622_v31, 5  ;;  %v1630_v45 = vrot.slane %v1628_v32, 5  ;;  %v1835_v47 = vshrl.u32 %v4121_v28, 16  ;;  %v1818_v48 = vrot.slane %v1817_v34, 4  ;;  %v4184_v10 = vld [vmem:[%s4825_s22 + $0xbc] sm:$0x1] }
 0x10b   : > { %v2413_v38 = vpop.permute.xlu0 %2412  ;;  %v1828_v49 = vrot.slane %v1827_v62, 4  ;;  %v1634_v50 = vrot.slane %v1632_v35, 4  ;;  %v1640_v51 = vrot.slane %v1638_v36, 5  ;;  %v1838_v54 = vshll.u32 %v4121_v28, 16  ;;  %v4158_v17 = vld [vmem:[%s4825_s22 + $0x54] sm:$0xe] }
 0x10c   : > { %v2431_v40 = vpop.permute.xlu1 %2430  ;;  %2459 = vst.msk [vmem:[#allocation2 + $0x10] sm:$0xff] %vm2456_vm12, %v2413_v38  ;;  %v1625_v21 = vor.u32 %v1624_v42, %v1621_v41  ;;  %v1837_v37 = vrot.slane %v1835_v47, 4  ;;  %v1844_v55 = vshll.u32 %v4122_v39, 16  ;;  %1194 = vrot.lane.b32.xlu0 %v4019_v25, %s4769_s24  ;;  %v1823_v46 = vsel %vm4877_vm5, %v1818_v48, %v1822_v22  ;;  %v4159_v30 = vld [vmem:[%s4825_s22 + $0x58] sm:$0xf] }
 0x10d   : > { %2468 = vst.msk [vmem:[#allocation2 + $0x58] sm:$0xff] %vm2456_vm12, %v2431_v40  ;;  %1389 = vrot.lane.b32.xlu1 %v4728_v33, %s4768_s23  ;;  %v1833_v56 = vsel %vm4877_vm5, %v1828_v49, %v1832_v29  ;;  %v1635_v58 = vor.u32 %v1634_v50, %v1630_v45  ;;  %v1848_v43 = vshrl.u32 %v4122_v39, 16  ;;  %v1840_v61 = vrot.slane %v1838_v54, 5  ;;  %v4160_v62 = vld [vmem:[%s4825_s22 + $0x5c] sm:$0x1] }
 0x10e   : > { %v4138_v13 = vcombine.low %v1823_v46, %v1833_v56  ;;  %v1626_v60 = vrot.slane %v1625_v21, 4  ;;  %v1846_v63 = vrot.slane %v1844_v55, 5  ;;  %v1854_v7 = vshll.u32 %v4123_v52, 16  ;;  %v4185_v40 = vld [vmem:[%s4825_s22 + $0xc0] sm:$0xe] }
 0x10f   : > { %v2415_v59 = vpop.permute.xlu0 %2414  ;;  %v1636_v4 = vrot.slane %v1635_v58, 4  ;;  %v1850_v6 = vrot.slane %v1848_v43, 4  ;;  %v1643_v8 = vshrl.u32 %v4097_v11, 16  ;;  %v1841_v14 = vor.u32 %v1840_v61, %v1837_v37  ;;  %v4186_v41 = vld [vmem:[%s4825_s22 + $0xc4] sm:$0xf] }
 0x110   : > { %v2974_v44 = vpop.permute.xlu1 %2973  ;;  %2460 = vst.msk [vmem:[#allocation2 + $0x18] sm:$0xff] %vm2456_vm12, %v2415_v59  ;;  %v1631_v12 = vsel %vm4877_vm5, %v1626_v60, %v1630_v45  ;;  %v1646_v15 = vshll.u32 %v4097_v11, 16  ;;  %v1652_v16 = vshll.u32 %v4098_v20, 16  ;;  %1373 = vrot.lane.b32.xlu0 %v4729_v53, %s4768_s23  ;;  %v1856_v23 = vrot.slane %v1854_v7, 5  ;;  %v4187_v49 = vld [vmem:[%s4825_s22 + $0xc8] sm:$0x1] }
 0x111   : > { %3012 = vst.msk [vmem:[#allocation2 + $0x50] sm:$0xff] %vm3001_vm13, %v2974_v44  ;;  %1391 = vrot.lane.b32.xlu1 %v4730_v57, %s4768_s23  ;;  %v1641_v18 = vsel %vm4877_vm5, %v1636_v4, %v1640_v51  ;;  %v1851_v19 = vor.u32 %v1850_v6, %v1846_v63  ;;  %v1645_v24 = vrot.slane %v1643_v8, 4  ;;  %v1842_v27 = vrot.slane %v1841_v14, 4  ;;  %v4161_v54 = vld [vmem:[%s4825_s22 + $0x60] sm:$0xe] }
 0x112   : > { %v4130_v22 = vcombine.low %v1631_v12, %v1641_v18  ;;  %v1648_v28 = vrot.slane %v1646_v15, 5  ;;  %v5716_v29 = vrot.slane %v1652_v16, 5  ;;  %v1656_v32 = vshrl.u32 %v4098_v20, 16  ;;  %v4162_v56 = vld [vmem:[%s4825_s22 + $0x64] sm:$0xf] }
 0x113   : > { %v2958_v25 = vpop.permute.xlu0 %2957  ;;  %v1852_v31 = vrot.slane %v1851_v19, 4  ;;  %v1662_v33 = vshll.u32 %v4099_v1, 16  ;;  %v4202_v34 = vrot.slane %v4182_v2, 9  ;;  %v1847_v35 = vsel %vm4877_vm5, %v1842_v27, %v1846_v63  ;;  %v4163_v44 = vld [vmem:[%s4825_s22 + $0x68] sm:$0x1] }
 0x114   : > { %v2976_v26 = vpop.permute.xlu1 %2975  ;;  %3004 = vst.msk [vmem:[#allocation2 + $0x10] sm:$0xff] %vm3001_vm13, %v2958_v25  ;;  %v1649_v36 = vor.u32 %v1648_v28, %v1645_v24  ;;  %v2167_v38 = vrot.slane %v4183_v9, 5  ;;  %v2170_v39 = vrot.slane %v4184_v10, 5  ;;  %1375 = vrot.lane.b32.xlu0 %v4731_v3, %s4768_s23  ;;  %v1658_v45 = vrot.slane %v1656_v32, 4  ;;  %v4311_v3 = vld [vmem:[%s4825_s22 + $0xc4] sm:$0xf] }
 0x115   : > { %3013 = vst.msk [vmem:[#allocation2 + $0x58] sm:$0xff] %vm3001_vm13, %v2976_v26  ;;  %1934 = vrot.lane.b32.xlu1 %v4138_v13, %s4771_s26  ;;  %v1857_v42 = vsel %vm4877_vm5, %v1852_v31, %v1856_v23  ;;  %v1664_v47 = vrot.slane %v1662_v33, 5  ;;  %v4194_v48 = vrot.slane %v4158_v17, 9  ;;  %v2111_v11 = vrot.slane %v4159_v30, 5  ;;  %v4310_v13 = vld [vmem:[%s4825_s22 + $0xc0] sm:$0xf] }
 0x116   : > { %v4139_v52 = vcombine.low %v1847_v35, %v1857_v42  ;;  %v1650_v53 = vrot.slane %v1649_v36, 4  ;;  %v2168_v21 = vsel %vm4827_vm2, %v4202_v34, %v2167_v38  ;;  %v2169_v37 = vrot.slane %v2167_v38, 4  ;;  %v4312_v4 = vld [vmem:[%s4825_s22 + $0xc8] sm:$0x1]  ;;  %v4286_v6 = vld [vmem:[%s4825_s22 + $0x60] sm:$0xf] }
 0x117   : > { %v2960_v50 = vpop.permute.xlu0 %2959  ;;  %v1659_v55 = vor.u32 %v1658_v45, %v5716_v29  ;;  %v2114_v57 = vrot.slane %v4160_v62, 5  ;;  %v4203_v46 = vrot.slane %v4185_v40, 9  ;;  %v2174_v20 = vrot.slane %v4186_v41, 5  ;;  %v4287_v12 = vld [vmem:[%s4825_s22 + $0x64] sm:$0xf] }
 0x118   : > { %v3295_v51 = vpop.permute.xlu1 %3294  ;;  %3005 = vst.msk [vmem:[#allocation2 + $0x18] sm:$0xff] %vm3001_vm13, %v2960_v50  ;;  %v1655_v58 = vsel %vm4877_vm5, %v1650_v53, %v5716_v29  ;;  %v2171_v43 = vsel %vm4827_vm2, %v2169_v37, %v2170_v39  ;;  %v2177_v59 = vrot.slane %v4187_v49, 5  ;;  %1918 = vrot.lane.b32.xlu0 %v4130_v22, %s4771_s26  ;;  %v2112_v63 = vsel %vm4827_vm2, %v4194_v48, %v2111_v11  ;;  %v4288_v29 = vld [vmem:[%s4825_s22 + $0x68] sm:$0x1]  ;;  %v4313_v40 = vld [vmem:[%s4825_s22 + $0xcc] sm:$0xf] }
 0x119   : > { %3333 = vst.msk [vmem:[#allocation2 + $0x50] sm:$0xff] %vm3322_vm14, %v3295_v51  ;;  %1936 = vrot.lane.b32.xlu1 %v4139_v52, %s4771_s26  ;;  %v1660_v60 = vrot.slane %v1659_v55, 4  ;;  %v4218_v61 = vcombine.low %v2168_v21, %v2171_v43  ;;  %v2113_v1 = vrot.slane %v2111_v11, 4  ;;  %v2175_v7 = vsel %vm4827_vm2, %v4203_v46, %v2174_v20  ;;  %v4314_v48 = vld [vmem:[%s4825_s22 + $0xd0] sm:$0xf]  ;;  %v4732_v49 = vld [vmem:[%s4825_s22 + $0xc0] sm:$0xff]  }
 0x11a   : > { %v2176_v8 = vrot.slane %v2174_v20, 4  ;;  %v4195_v9 = vrot.slane %v4161_v54, 9  ;;  %v2118_v10 = vrot.slane %v4162_v56, 5  ;;  %v2121_v16 = vrot.slane %v4163_v44, 5  ;;  %v4315_v43 = vld [vmem:[%s4825_s22 + $0xd4] sm:$0x1] }
 0x11b   : > { %v3279_v2 = vpop.permute.xlu0 %3278  ;;  %v1665_v14 = vsel %vm4877_vm5, %v1660_v60, %v1664_v47  ;;  %v2115_v15 = vsel %vm4827_vm2, %v2113_v1, %v2114_v57  ;;  %v2858_v17 = vshrl.u32 %v4310_v13, 16  ;;  %v2861_v28 = vshll.u32 %v4310_v13, 16  ;;  %v4734_v1 = vld [vmem:[%s4825_s22 + $0xcc] sm:$0xff]  }
 0x11c   : > { %3325 = vst.msk [vmem:[#allocation2 + $0x10] sm:$0xff] %vm3322_vm14, %v3279_v2  ;;  %v4131_v18 = vcombine.low %v1655_v58, %v1665_v14  ;;  %v4210_v19 = vcombine.low %v2112_v63, %v2115_v15  ;;  %v2178_v23 = vsel %vm4827_vm2, %v2176_v8, %v2177_v59  ;;  %v2119_v24 = vsel %vm4827_vm2, %v4195_v9, %v2118_v10  ;;  %v4289_v63 = vld [vmem:[%s4825_s22 + $0x6c] sm:$0xf]  ;;  %v4290_v14 = vld [vmem:[%s4825_s22 + $0x70] sm:$0xf] }
 0x11d   : > { %2255 = vrot.lane.b32.xlu1 %v4218_v61, %s4772_s27  ;;  %v4219_v25 = vcombine.low %v2175_v7, %v2178_v23  ;;  %v2120_v26 = vrot.slane %v2118_v10, 4  ;;  %v2860_v27 = vrot.slane %v2858_v17, 4  ;;  %v2867_v31 = vshll.u32 %v4311_v3, 16  ;;  %v4733_v7 = vld [vmem:[%s4825_s22 + $0x60] sm:$0xff]  }
 0x11e   : > { %1920 = vrot.lane.b32.xlu0 %v4131_v18, %s4771_s26  ;;  %v2871_v32 = vshrl.u32 %v4311_v3, 16  ;;  %v2877_v33 = vshll.u32 %v4312_v4, 16  ;;  %v2666_v34 = vshrl.u32 %v4286_v6, 16  ;;  %v2863_v36 = vrot.slane %v2861_v28, 5  ;;  %v4291_v18 = vld [vmem:[%s4825_s22 + $0x74] sm:$0x1] }
 0x11f   : > { %v881_v22 = vpop.permute.xlu1 %880  ;;  %v2122_v62 = vsel %vm4827_vm2, %v2120_v26, %v2121_v16  ;;  %v2669_v38 = vshll.u32 %v4286_v6, 16  ;;  %v2675_v39 = vshll.u32 %v4287_v12, 16  ;;  %v2869_v42 = vrot.slane %v2867_v31, 5  ;;  %v4374_v23 = vld [vmem:[%s4825_s22 + $0xc0] sm:$0xe] }
 0x120   : > { %v3349_v30 = vld [vmem:[#allocation2 + $0x50] sm:$0xff]  ;;  %917 = vst.msk [vmem:[#allocation2 + $0x60] sm:$0xff] %vm904_vm7, %v881_v22  ;;  %v4211_v41 = vcombine.low %v2119_v24, %v2122_v62  ;;  %v2873_v45 = vrot.slane %v2871_v32, 4  ;;  %v2879_v47 = vrot.slane %v2877_v33, 5  ;;  %v2864_v50 = vor.u32 %v2863_v36, %v2860_v27  ;;  %v4375_v27 = vld [vmem:[%s4825_s22 + $0xc4] sm:$0xf] }
 0x121   : > { %4640 = vmatprep.mubr.msk.bf16.mxu1 %vm3375_vm15, %v3349_v30  ;;  %v865_v35 = vpop.permute.xlu0 %864  ;;  %2257 = vrot.lane.b32.xlu1 %v4219_v25, %s4772_s27  ;;  %v2668_v51 = vrot.slane %v2666_v34, 4  ;;  %v2671_v52 = vrot.slane %v2669_v38, 5  ;;  %v5776_v53 = vrot.slane %v2675_v39, 5  ;;  %v2679_v55 = vshrl.u32 %v4287_v12, 16  ;;  %v4376_v28 = vld [vmem:[%s4825_s22 + $0xc8] sm:$0x1] }
 0x122   : > { %909 = vst.msk [vmem:[#allocation2 + $0x20] sm:$0xff] %vm904_vm7, %v865_v35  ;;  %2239 = vrot.lane.b32.xlu0 %v4210_v19, %s4772_s27  ;;  %v2874_v54 = vor.u32 %v2873_v45, %v2869_v42  ;;  %v2685_v11 = vshll.u32 %v4288_v29, 16  ;;  %v2882_v57 = vshrl.u32 %v4313_v40, 16  ;;  %v2865_v46 = vrot.slane %v2864_v50, 4  ;;  %v4735_v29 = vld [vmem:[%s4825_s22 + $0x6c] sm:$0xff]  }
 0x123   : > { %v3297_v21 = vpop.permute.xlu1 %3296  ;;  %v3341_v37 = vld [vmem:[#allocation2 + $0x10] sm:$0xff]  ;;  %v2672_v56 = vor.u32 %v2671_v52, %v2668_v51  ;;  %v2885_v20 = vshll.u32 %v4313_v40, 16  ;;  %v2891_v59 = vshll.u32 %v4314_v48, 16  ;;  %v2681_v13 = vrot.slane %v2679_v55, 4  ;;  %v4350_v40 = vld [vmem:[%s4825_s22 + $0x60] sm:$0xe] }
 0x124   : > { %3334 = vst.msk [vmem:[#allocation2 + $0x58] sm:$0xff] %vm3322_vm14, %v3297_v21  ;;  %4624 = vmatprep.mubr.msk.bf16.mxu0 %vm3375_vm15, %v3341_v37  ;;  %v2875_v44 = vrot.slane %v2874_v54, 4  ;;  %v2687_v60 = vrot.slane %v2685_v11, 5  ;;  %v2884_v61 = vrot.slane %v2882_v57, 4  ;;  %v2870_v2 = vsel %vm4877_vm5, %v2865_v46, %v2869_v42  ;;  %v4377_v54 = vld [vmem:[%s4825_s22 + $0xcc] sm:$0xe] }
 0x125   : > { %v3281_v58 = vpop.permute.xlu0 %3280  ;;  %2436 = vrot.lane.b32.xlu1 %v4732_v49, %s4773_s28  ;;  %v2673_v3 = vrot.slane %v2672_v56, 4  ;;  %v2887_v4 = vrot.slane %v2885_v20, 5  ;;  %v5788_v6 = vrot.slane %v2891_v59, 5  ;;  %v2682_v9 = vor.u32 %v2681_v13, %v5776_v53  ;;  %v4352_v49 = vld [vmem:[%s4825_s22 + $0x68] sm:$0x1] }
 0x126   : > { %3326 = vst.msk [vmem:[#allocation2 + $0x18] sm:$0xff] %vm3322_vm14, %v3281_v58  ;;  %2241 = vrot.lane.b32.xlu0 %v4211_v41, %s4772_s27  ;;  %v2880_v8 = vsel %vm4877_vm5, %v2875_v44, %v2879_v47  ;;  %v2895_v10 = vshrl.u32 %v4314_v48, 16  ;;  %v2901_v12 = vshll.u32 %v4315_v43, 16  ;;  %v2690_v19 = vshrl.u32 %v4289_v63, 16  ;;  %v4351_v41 = vld [vmem:[%s4825_s22 + $0x64] sm:$0xf] }
 0x127   : > { %v4330_v15 = vcombine.low %v2870_v2, %v2880_v8  ;;  %v2678_v16 = vsel %vm4877_vm5, %v2673_v3, %v5776_v53  ;;  %v2888_v17 = vor.u32 %v2887_v4, %v2884_v61  ;;  %v2683_v24 = vrot.slane %v2682_v9, 4  ;;  %v4378_v58 = vld [vmem:[%s4825_s22 + $0xd0] sm:$0xf]  ;;  %v4379_v13 = vld [vmem:[%s4825_s22 + $0xd4] sm:$0x1] }
 0x128   : > { %v2897_v25 = vrot.slane %v2895_v10, 4  ;;  %v2903_v26 = vrot.slane %v2901_v12, 5  ;;  %v2693_v22 = vshll.u32 %v4289_v63, 16  ;;  %v2692_v31 = vrot.slane %v2690_v19, 4  ;;  %v4354_v8 = vld [vmem:[%s4825_s22 + $0x70] sm:$0xf] }
 0x129   : > { %2438 = vrot.lane.b32.xlu1 %v4734_v1, %s4773_s28  ;;  %v2889_v30 = vrot.slane %v2888_v17, 4  ;;  %v2699_v32 = vshll.u32 %v4290_v14, 16  ;;  %v2703_v33 = vshrl.u32 %v4290_v14, 16  ;;  %v2688_v35 = vsel %vm4877_vm5, %v2683_v24, %v2687_v60 }
 0x12a   : > { %2420 = vrot.lane.b32.xlu0 %v4733_v7, %s4773_s28  ;;  %v2898_v36 = vor.u32 %v2897_v25, %v5788_v6  ;;  %v2695_v38 = vrot.slane %v2693_v22, 5  ;;  %v2709_v39 = vshll.u32 %v4291_v18, 16  ;;  %v4322_v42 = vcombine.low %v2678_v16, %v2688_v35  ;;  %v4353_v7 = vld [vmem:[%s4825_s22 + $0x6c] sm:$0xe] }
 0x12b   : > { %v883_v34 = vpop.permute.xlu1 %882  ;;  %v3350_v62 = vld [vmem:[#allocation2 + $0x58] sm:$0xff]  ;;  %v2894_v45 = vsel %vm4877_vm5, %v2889_v30, %v5788_v6  ;;  %v2701_v47 = vrot.slane %v2699_v32, 5  ;;  %v2705_v48 = vrot.slane %v2703_v33, 4  ;;  %v4394_v37 = vrot.slane %v4374_v23, 9 }
 0x12c   : > { %918 = vst.msk [vmem:[#allocation2 + $0x68] sm:$0xff] %vm904_vm7, %v883_v34  ;;  %4641 = vmatmul.mubr.msk.bf16.gmra.mrb[4].mxu1 %vm3375_vm15, %v3350_v62  ;;  %v2899_v51 = vrot.slane %v2898_v36, 4  ;;  %v2696_v52 = vor.u32 %v2695_v38, %v2692_v31  ;;  %v2711_v53 = vrot.slane %v2709_v39, 5  ;;  %v3214_v11 = vrot.slane %v4375_v27, 5 }
 0x12d   : > { %v3342_v50 = vld [vmem:[#allocation2 + $0x18] sm:$0xff]  ;;  %v867_v21 = vpop.permute.xlu0 %866  ;;  %2981 = vrot.lane.b32.xlu1 %v4330_v15, %s4774_s29  ;;  %v2706_v55 = vor.u32 %v2705_v48, %v2701_v47  ;;  %v3217_v57 = vrot.slane %v4376_v28, 5  ;;  %v4386_v46 = vrot.slane %v4350_v40, 9  ;;  %v3158_v59 = vrot.slane %v4351_v41, 5  ;;  %v4355_v15 = vld [vmem:[%s4825_s22 + $0x74] sm:$0x1]  ;;  %s5954_s22 = scalar_lea.vmem %s6033_s4, %s4467_s19 }
 0x12e   : > { %4625 = vmatmul.mubr.msk.bf16.gmra.mrb[4].mxu0 %vm3375_vm15, %v3342_v50  ;;  %910 = vst.msk [vmem:[#allocation2 + $0x28] sm:$0xff] %vm904_vm7, %v867_v21  ;;  %2422 = vrot.lane.b32.xlu0 %v4735_v29, %s4773_s28  ;;  %v2904_v43 = vsel %vm4877_vm5, %v2899_v51, %v2903_v26  ;;  %v2697_v20 = vrot.slane %v2696_v52, 4  ;;  %v3161_v44 = vrot.slane %v4352_v49, 5  ;;  %v3215_v63 = vsel %vm4827_vm2, %v4394_v37, %v3214_v11 }
 0x12f   : > { %v1205_v56 = vpop.permute.xlu1 %1204  ;;  %v4331_v60 = vcombine.low %v2894_v45, %v2904_v43  ;;  %v2707_v61 = vrot.slane %v2706_v55, 4  ;;  %v3216_v1 = vrot.slane %v3214_v11, 4  ;;  %v3160_v3 = vrot.slane %v3158_v59, 4 }
 0x130   : > { %1241 = vst.msk [vmem:[#allocation2 + $0x60] sm:$0xff] %vm1228_vm8, %v1205_v56  ;;  %v2702_v2 = vsel %vm4877_vm5, %v2697_v20, %v2701_v47  ;;  %v4395_v6 = vrot.slane %v4377_v54, 9  ;;  %v3221_v12 = vrot.slane %v4378_v58, 5  ;;  %v3224_v14 = vrot.slane %v4379_v13, 5 }
 0x131   : > { %v1189_v4 = vpop.permute.xlu0 %1188  ;;  %2983 = vrot.lane.b32.xlu1 %v4331_v60, %s4774_s29  ;;  %v2712_v9 = vsel %vm4877_vm5, %v2707_v61, %v2711_v53  ;;  %v3218_v10 = vsel %vm4827_vm2, %v3216_v1, %v3217_v57  ;;  %v3159_v19 = vsel %vm4827_vm2, %v4386_v46, %v3158_v59  ;;  %v3162_v5 = vsel %vm4827_vm2, %v3160_v3, %v3161_v44 }
 0x132   : > { %1233 = vst.msk [vmem:[#allocation2 + $0x20] sm:$0xff] %vm1228_vm8, %v1189_v4  ;;  %2965 = vrot.lane.b32.xlu0 %v4322_v42, %s4774_s29  ;;  %v4323_v17 = vcombine.low %v2702_v2, %v2712_v9  ;;  %v4410_v18 = vcombine.low %v3215_v63, %v3218_v10  ;;  %v3222_v23 = vsel %vm4827_vm2, %v4395_v6, %v3221_v12  ;;  %v3223_v24 = vrot.slane %v3221_v12, 4 }
 0x133   : > { %v1207_v16 = vpop.permute.xlu1 %1206  ;;  %v4387_v25 = vrot.slane %v4353_v7, 9  ;;  %v3165_v26 = vrot.slane %v4354_v8, 5  ;;  %v3168_v22 = vrot.slane %v4355_v15, 5  ;;  %v4402_v31 = vcombine.low %v3159_v19, %v3162_v5 }
 0x134   : > { %1242 = vst.msk [vmem:[#allocation2 + $0x68] sm:$0xff] %vm1228_vm8, %v1207_v16  ;;  %v3225_v28 = vsel %vm4827_vm2, %v3223_v24, %v3224_v14 }
 0x135   : > { %v1191_v27 = vpop.permute.xlu0 %1190  ;;  %3302 = vrot.lane.b32.xlu1 %v4410_v18, %s4775_s30  ;;  %v3167_v29 = vrot.slane %v3165_v26, 4  ;;  %v4411_v32 = vcombine.low %v3222_v23, %v3225_v28  ;;  %v3166_v33 = vsel %vm4827_vm2, %v4387_v25, %v3165_v26 }
 0x136   : > { %1234 = vst.msk [vmem:[#allocation2 + $0x28] sm:$0xff] %vm1228_vm8, %v1191_v27  ;;  %2967 = vrot.lane.b32.xlu0 %v4323_v17, %s4774_s29 }
 0x137   : > { %v1386_v30 = vpop.permute.xlu1 %1385  ;;  %v3169_v34 = vsel %vm4827_vm2, %v3167_v29, %v3168_v22 }
 0x138   : > { %1422 = vst.msk [vmem:[#allocation2 + $0x60] sm:$0xff] %vm1409_vm9, %v1386_v30  ;;  %v4403_v36 = vcombine.low %v3166_v33, %v3169_v34 }
 0x139   : > { %v1370_v62 = vpop.permute.xlu0 %1369  ;;  %3304 = vrot.lane.b32.xlu1 %v4411_v32, %s4775_s30 }
 0x13a   : > { %1414 = vst.msk [vmem:[#allocation2 + $0x20] sm:$0xff] %vm1409_vm9, %v1370_v62  ;;  %3286 = vrot.lane.b32.xlu0 %v4402_v31, %s4775_s30  ;;  %v5927_v62 = vld [vmem:[%s6031_s2] ss:$0 sm:$0xff] }
 0x13b   : > { %v1388_v35 = vpop.permute.xlu1 %1387 }
 0x13c   : > { %1423 = vst.msk [vmem:[#allocation2 + $0x68] sm:$0xff] %vm1409_vm9, %v1388_v35 }
 0x13d   : > { %v1372_v38 = vpop.permute.xlu0 %1371 }
 0x13e   : > { %1415 = vst.msk [vmem:[#allocation2 + $0x28] sm:$0xff] %vm1409_vm9, %v1372_v38  ;;  %3288 = vrot.lane.b32.xlu0 %v4403_v36, %s4775_s30  ;;  %v5932_v36 = vld [vmem:[%s6032_s3] ss:$0 sm:$0xff] }
 0x13f   : > { %v1931_v39 = vpop.permute.xlu1 %1930 }
 0x140   : > { %1967 = vst.msk [vmem:[#allocation2 + $0x60] sm:$0xff] %vm1954_vm10, %v1931_v39 }
 0x141   : > { %v1915_v0 = vpop.permute.xlu0 %1914 }
 0x142   : > { %1959 = vst.msk [vmem:[#allocation2 + $0x20] sm:$0xff] %vm1954_vm10, %v1915_v0 }
 0x143   : > { %v1933_v40 = vpop.permute.xlu1 %1932 }
 0x144   : > { %1968 = vst.msk [vmem:[#allocation2 + $0x68] sm:$0xff] %vm1954_vm10, %v1933_v40 }
 0x147   : > { %v2252_v41 = vpop.permute.xlu1 %2251  ;;  %v1917_v42 = vpop.permute.xlu0 %1916 }
 0x148   : > { %2288 = vst.msk [vmem:[#allocation2 + $0x60] sm:$0xff] %vm2275_vm11, %v2252_v41 }
 0x149   : > { %1960 = vst.msk [vmem:[#allocation2 + $0x28] sm:$0xff] %vm1954_vm10, %v1917_v42 }
 0x14b   : > { %v2254_v45 = vpop.permute.xlu1 %2253  ;;  %v2236_v47 = vpop.permute.xlu0 %2235 }
 0x14c   : > { %2289 = vst.msk [vmem:[#allocation2 + $0x68] sm:$0xff] %vm2275_vm11, %v2254_v45  ;;  %2280 = vst.msk [vmem:[#allocation2 + $0x20] sm:$0xff] %vm2275_vm11, %v2236_v47 }
 0x14f   : > { %v2433_v48 = vpop.permute.xlu1 %2432  ;;  %v2238_v49 = vpop.permute.xlu0 %2237 }
 0x150   : > { %2469 = vst.msk [vmem:[#allocation2 + $0x60] sm:$0xff] %vm2456_vm12, %v2433_v48 }
 0x151   : > { %2281 = vst.msk [vmem:[#allocation2 + $0x28] sm:$0xff] %vm2275_vm11, %v2238_v49 }
 0x153   : > { %v2435_v50 = vpop.permute.xlu1 %2434  ;;  %v2417_v51 = vpop.permute.xlu0 %2416 }
 0x154   : > { %2470 = vst.msk [vmem:[#allocation2 + $0x68] sm:$0xff] %vm2456_vm12, %v2435_v50  ;;  %2461 = vst.msk [vmem:[#allocation2 + $0x20] sm:$0xff] %vm2456_vm12, %v2417_v51 }
 0x157   : > { %v2978_v52 = vpop.permute.xlu1 %2977  ;;  %v2419_v53 = vpop.permute.xlu0 %2418 }
 0x158   : > { %3014 = vst.msk [vmem:[#allocation2 + $0x60] sm:$0xff] %vm3001_vm13, %v2978_v52 }
 0x159   : > { %2462 = vst.msk [vmem:[#allocation2 + $0x28] sm:$0xff] %vm2456_vm12, %v2419_v53 }
 0x15b   : > { %v2962_v21 = vpop.permute.xlu0 %2961  ;;  %v2980_v37 = vpop.permute.xlu1 %2979 }
 0x15c   : > { %3006 = vst.msk [vmem:[#allocation2 + $0x20] sm:$0xff] %vm3001_vm13, %v2962_v21  ;;  %3015 = vst.msk [vmem:[#allocation2 + $0x68] sm:$0xff] %vm3001_vm13, %v2980_v37 }
 0x15f   : > { %v2964_v54 = vpop.permute.xlu0 %2963  ;;  %v3299_v55 = vpop.permute.xlu1 %3298 }
 0x160   : > { %3007 = vst.msk [vmem:[#allocation2 + $0x28] sm:$0xff] %vm3001_vm13, %v2964_v54 }
 0x161   : > { %3335 = vst.msk [vmem:[#allocation2 + $0x60] sm:$0xff] %vm3322_vm14, %v3299_v55 }
 0x163   : > { %v3283_v11 = vpop.permute.xlu0 %3282 }
 0x164   : > { %3327 = vst.msk [vmem:[#allocation2 + $0x20] sm:$0xff] %vm3322_vm14, %v3283_v11 }
 0x168   : > { %v3351_v57 = vld [vmem:[#allocation2 + $0x60] sm:$0xff]  ;;  %v885_v46 = vpop.permute.xlu1 %884 }
 0x169   : > { %4644 = vmatprep.mubr.msk.bf16.mxu1 %vm3375_vm15, %v3351_v57  ;;  %919 = vst.msk [vmem:[#allocation2 + $0x70] sm:$0xff] %vm904_vm7, %v885_v46 }
 0x16a   : > { %v869_v56 = vpop.permute.xlu0 %868 }
 0x16b   : > { %v3343_v58 = vld [vmem:[#allocation2 + $0x20] sm:$0xff]  ;;  %911 = vst.msk [vmem:[#allocation2 + $0x30] sm:$0xff] %vm904_vm7, %v869_v56 }
 0x16c   : > { %4628 = vmatprep.mubr.msk.bf16.mxu0 %vm3375_vm15, %v3343_v58  ;;  %v3301_v43 = vpop.permute.xlu1 %3300 }
 0x16d   : > { %3336 = vst.msk [vmem:[#allocation2 + $0x68] sm:$0xff] %vm3322_vm14, %v3301_v43 }
 0x16e   : > { %v3285_v20 = vpop.permute.xlu0 %3284 }
 0x16f   : > { %3328 = vst.msk [vmem:[#allocation2 + $0x28] sm:$0xff] %vm3322_vm14, %v3285_v20 }
 0x173   : > { %v887_v59 = vpop.permute.xlu1 %886 }
 0x174   : > { %920 = vst.msk [vmem:[#allocation2 + $0x78] sm:$0xff] %vm904_vm7, %v887_v59  ;;  %v3352_v44 = vld [vmem:[#allocation2 + $0x68] sm:$0xff] }
 0x175   : > { %4645 = vmatmul.mubr.msk.bf16.gmra.mrb[8].mxu1 %vm3375_vm15, %v3352_v44 }
 0x176   : > { %v3344_v13 = vld [vmem:[#allocation2 + $0x28] sm:$0xff]  ;;  %v871_v60 = vpop.permute.xlu0 %870 }
 0x177   : > { %v1209_v61 = vpop.permute.xlu1 %1208  ;;  %4629 = vmatmul.mubr.msk.bf16.gmra.mrb[8].mxu0 %vm3375_vm15, %v3344_v13  ;;  %912 = vst.msk [vmem:[#allocation2 + $0x38] sm:$0xff] %vm904_vm7, %v871_v60 }
 0x178   : > { %1243 = vst.msk [vmem:[#allocation2 + $0x70] sm:$0xff] %vm1228_vm8, %v1209_v61 }
 0x17a   : > { %v1193_v63 = vpop.permute.xlu0 %1192 }
 0x17b   : > { %v1211_v1 = vpop.permute.xlu1 %1210  ;;  %1235 = vst.msk [vmem:[#allocation2 + $0x30] sm:$0xff] %vm1228_vm8, %v1193_v63 }
 0x17c   : > { %1244 = vst.msk [vmem:[#allocation2 + $0x78] sm:$0xff] %vm1228_vm8, %v1211_v1 }
 0x17e   : > { %v1195_v2 = vpop.permute.xlu0 %1194 }
 0x17f   : > { %v1390_v3 = vpop.permute.xlu1 %1389  ;;  %1236 = vst.msk [vmem:[#allocation2 + $0x38] sm:$0xff] %vm1228_vm8, %v1195_v2 }
 0x180   : > { %1424 = vst.msk [vmem:[#allocation2 + $0x70] sm:$0xff] %vm1409_vm9, %v1390_v3 }
 0x182   : > { %v1374_v4 = vpop.permute.xlu0 %1373 }
 0x183   : > { %v1392_v6 = vpop.permute.xlu1 %1391  ;;  %1416 = vst.msk [vmem:[#allocation2 + $0x30] sm:$0xff] %vm1409_vm9, %v1374_v4 }
 0x184   : > { %1425 = vst.msk [vmem:[#allocation2 + $0x78] sm:$0xff] %vm1409_vm9, %v1392_v6 }
 0x186   : > { %v1376_v7 = vpop.permute.xlu0 %1375 }
 0x187   : > { %v1935_v8 = vpop.permute.xlu1 %1934  ;;  %1417 = vst.msk [vmem:[#allocation2 + $0x38] sm:$0xff] %vm1409_vm9, %v1376_v7 }
 0x188   : > { %1969 = vst.msk [vmem:[#allocation2 + $0x70] sm:$0xff] %vm1954_vm10, %v1935_v8 }
 0x18a   : > { %v1919_v9 = vpop.permute.xlu0 %1918 }
 0x18b   : > { %v1937_v10 = vpop.permute.xlu1 %1936  ;;  %1961 = vst.msk [vmem:[#allocation2 + $0x30] sm:$0xff] %vm1954_vm10, %v1919_v9 }
 0x18c   : > { %1970 = vst.msk [vmem:[#allocation2 + $0x78] sm:$0xff] %vm1954_vm10, %v1937_v10 }
 0x18f   : > { %v2256_v12 = vpop.permute.xlu1 %2255 }
 0x190   : > { %v1921_v14 = vpop.permute.xlu0 %1920  ;;  %2290 = vst.msk [vmem:[#allocation2 + $0x70] sm:$0xff] %vm2275_vm11, %v2256_v12 }
 0x191   : > { %1962 = vst.msk [vmem:[#allocation2 + $0x38] sm:$0xff] %vm1954_vm10, %v1921_v14 }
 0x193   : > { %v2258_v15 = vpop.permute.xlu1 %2257 }
 0x194   : > { %v2240_v16 = vpop.permute.xlu0 %2239  ;;  %2291 = vst.msk [vmem:[#allocation2 + $0x78] sm:$0xff] %vm2275_vm11, %v2258_v15 }
 0x195   : > { %2282 = vst.msk [vmem:[#allocation2 + $0x30] sm:$0xff] %vm2275_vm11, %v2240_v16 }
 0x197   : > { %v2437_v17 = vpop.permute.xlu1 %2436 }
 0x198   : > { %v2242_v18 = vpop.permute.xlu0 %2241  ;;  %2471 = vst.msk [vmem:[#allocation2 + $0x70] sm:$0xff] %vm2456_vm12, %v2437_v17 }
 0x199   : > { %2283 = vst.msk [vmem:[#allocation2 + $0x38] sm:$0xff] %vm2275_vm11, %v2242_v18 }
 0x19b   : > { %v2439_v19 = vpop.permute.xlu1 %2438 }
 0x19c   : > { %v2421_v5 = vpop.permute.xlu0 %2420  ;;  %2472 = vst.msk [vmem:[#allocation2 + $0x78] sm:$0xff] %vm2456_vm12, %v2439_v19 }
 0x19d   : > { %2463 = vst.msk [vmem:[#allocation2 + $0x30] sm:$0xff] %vm2456_vm12, %v2421_v5 }
 0x19f   : > { %v2982_v23 = vpop.permute.xlu1 %2981 }
 0x1a0   : > { %v2423_v24 = vpop.permute.xlu0 %2422  ;;  %3016 = vst.msk [vmem:[#allocation2 + $0x70] sm:$0xff] %vm3001_vm13, %v2982_v23 }
 0x1a1   : > { %2464 = vst.msk [vmem:[#allocation2 + $0x38] sm:$0xff] %vm2456_vm12, %v2423_v24 }
 0x1a3   : > { %v2984_v25 = vpop.permute.xlu1 %2983 }
 0x1a4   : > { %v2966_v26 = vpop.permute.xlu0 %2965  ;;  %3017 = vst.msk [vmem:[#allocation2 + $0x78] sm:$0xff] %vm3001_vm13, %v2984_v25 }
 0x1a5   : > { %3008 = vst.msk [vmem:[#allocation2 + $0x30] sm:$0xff] %vm3001_vm13, %v2966_v26 }
 0x1a7   : > { %v3303_v22 = vpop.permute.xlu1 %3302 }
 0x1a8   : > { %v2968_v27 = vpop.permute.xlu0 %2967  ;;  %3337 = vst.msk [vmem:[#allocation2 + $0x70] sm:$0xff] %vm3322_vm14, %v3303_v22 }
 0x1a9   : > { %3009 = vst.msk [vmem:[#allocation2 + $0x38] sm:$0xff] %vm3001_vm13, %v2968_v27 }
 0x1ab   : > { %v3305_v28 = vpop.permute.xlu1 %3304 }
 0x1ac   : > { %v3287_v29 = vpop.permute.xlu0 %3286  ;;  %3338 = vst.msk [vmem:[#allocation2 + $0x78] sm:$0xff] %vm3322_vm14, %v3305_v28 }
 0x1ad   : > { %3329 = vst.msk [vmem:[#allocation2 + $0x30] sm:$0xff] %vm3322_vm14, %v3287_v29 }
 0x1af   : > { %v3353_v30 = vld [vmem:[#allocation2 + $0x70] sm:$0xff] }
 0x1b0   : > { %v3289_v31 = vpop.permute.xlu0 %3288  ;;  %4648 = vmatprep.mubr.msk.bf16.mxu1 %vm3375_vm15, %v3353_v30 }
 0x1b1   : > { %3330 = vst.msk [vmem:[#allocation2 + $0x38] sm:$0xff] %vm3322_vm14, %v3289_v31 }
 0x1b3   : > { %v3354_v32 = vld [vmem:[#allocation2 + $0x78] sm:$0xff] }
 0x1b4   : > { %v3345_v33 = vld [vmem:[#allocation2 + $0x30] sm:$0xff]  ;;  %4649 = vmatmul.mubr.msk.bf16.gmra.mrb[12].mxu1 %vm3375_vm15, %v3354_v32 }
 0x1b5   : > { %4632 = vmatprep.mubr.msk.bf16.mxu0 %vm3375_vm15, %v3345_v33 }
 0x1b8   : > { %v3346_v34 = vld [vmem:[#allocation2 + $0x38] sm:$0xff] }
 0x1b9   : > { %4633 = vmatmul.mubr.msk.bf16.gmra.mrb[12].mxu0 %vm3375_vm15, %v3346_v34 }
 0x1bd   : > { %v4622_v35 = vpop.f32.mrb[0].mxu0  ;;  %v4638_v38 = vpop.f32.mrb[0].mxu1 }
 0x1be   : > { %v3598_v39 = vmul.f32 %v4622_v35, %v5927_v62  ;;  %v3614_v0 = vmul.f32 %v4638_v38, %v5927_v62  ;;  %v3462_v40 = vpop.f32.mrb[1].mxu0  ;;  %v3526_v41 = vpop.f32.mrb[1].mxu1 }
 0x1bf   : > { %v3596_v42 = vmul.f32 %v5927_v62, %v3462_v40  ;;  %v3612_v45 = vmul.f32 %v5927_v62, %v3526_v41  ;;  %v4623_v47 = vpop.f32.mrb[2].mxu0  ;;  %v4639_v48 = vpop.f32.mrb[2].mxu1 }
 0x1c0   : > { %v3637_v49 = vadd.f32 %v5932_v36, %v3598_v39  ;;  %v3653_v50 = vadd.f32 %v5932_v36, %v3614_v0  ;;  %v3599_v51 = vmul.f32 %v4623_v47, %v5927_v62  ;;  %v3615_v52 = vmul.f32 %v4639_v48, %v5927_v62  ;;  %v3465_v53 = vpop.f32.mrb[3].mxu0  ;;  %v3529_v21 = vpop.f32.mrb[3].mxu1 }
 0x1c1   : > { %v3635_v37 = vadd.f32 %v5932_v36, %v3596_v42  ;;  %v3651_v54 = vadd.f32 %v5932_v36, %v3612_v45  ;;  %v3597_v55 = vmul.f32 %v5927_v62, %v3465_v53  ;;  %v3613_v11 = vmul.f32 %v5927_v62, %v3529_v21 }
 0x1c2   : > { %v3638_v57 = vadd.f32 %v5932_v36, %v3599_v51  ;;  %v3654_v46 = vadd.f32 %v5932_v36, %v3615_v52  ;;  %v3669_v43 = vmax.f32 %v3637_v49, 0.0  ;;  %v3685_v20 = vmax.f32 %v3653_v50, 0.0 }
 0x1c3   : > { %v3636_v56 = vadd.f32 %v5932_v36, %v3597_v55  ;;  %v3652_v58 = vadd.f32 %v5932_v36, %v3613_v11  ;;  %v3667_v13 = vmax.f32 %v3635_v37, 0.0  ;;  %v3683_v60 = vmax.f32 %v3651_v54, 0.0 }
 0x1c4   : > { %v3670_v59 = vmax.f32 %v3638_v57, 0.0  ;;  %v3686_v44 = vmax.f32 %v3654_v46, 0.0 }
 0x1c5   : > { %v3668_v61 = vmax.f32 %v3636_v56, 0.0  ;;  %v3684_v63 = vmax.f32 %v3652_v58, 0.0 }
 0x1c6   : > { %v4508_v1 = vpack.c.bf16 %v3670_v59, %v3669_v43  ;;  %v4548_v2 = vpack.c.bf16 %v3686_v44, %v3685_v20 }
 0x1c7   : > { %v4503_v3 = vpack.c.bf16 %v3668_v61, %v3667_v13  ;;  %v4543_v4 = vpack.c.bf16 %v3684_v63, %v3683_v60 }
 0x1c8   : > { %4580 = vst [vmem:[%s5954_s22 + $0x8] sm:$0xff] %v4508_v1   ;;  %4588 = vst [vmem:[%s5954_s22 + $0x48] sm:$0xff] %v4548_v2  }
 0x1c9   : > { %4504 = vst [vmem:[%s5954_s22] sm:$0xff] %v4503_v3   ;;  %4587 = vst [vmem:[%s5954_s22 + $0x40] sm:$0xff] %v4543_v4  }
 0x1ff   : > { %v4642_v6 = vpop.f32.mrb[4].mxu1 }
 0x200   : > { %v3618_v7 = vmul.f32 %v4642_v6, %v5927_v62  ;;  %v3542_v8 = vpop.f32.mrb[5].mxu1 }
 0x201   : > { %v4626_v9 = vpop.f32.mrb[4].mxu0  ;;  %v3616_v10 = vmul.f32 %v5927_v62, %v3542_v8  ;;  %v4643_v12 = vpop.f32.mrb[6].mxu1 }
 0x202   : > { %v3602_v14 = vmul.f32 %v4626_v9, %v5927_v62  ;;  %v3657_v15 = vadd.f32 %v5932_v36, %v3618_v7  ;;  %v3478_v16 = vpop.f32.mrb[5].mxu0  ;;  %v3619_v17 = vmul.f32 %v4643_v12, %v5927_v62  ;;  %v3545_v18 = vpop.f32.mrb[7].mxu1 }
 0x203   : > { %v3600_v19 = vmul.f32 %v5927_v62, %v3478_v16  ;;  %v3655_v5 = vadd.f32 %v5932_v36, %v3616_v10  ;;  %v4627_v23 = vpop.f32.mrb[6].mxu0  ;;  %v3617_v24 = vmul.f32 %v5927_v62, %v3545_v18 }
 0x204   : > { %v3641_v25 = vadd.f32 %v5932_v36, %v3602_v14  ;;  %v3603_v26 = vmul.f32 %v4627_v23, %v5927_v62  ;;  %v3658_v22 = vadd.f32 %v5932_v36, %v3619_v17  ;;  %v3481_v27 = vpop.f32.mrb[7].mxu0  ;;  %v3689_v31 = vmax.f32 %v3657_v15, 0.0 }
 0x205   : > { %v3639_v28 = vadd.f32 %v5932_v36, %v3600_v19  ;;  %v3601_v29 = vmul.f32 %v5927_v62, %v3481_v27  ;;  %v3656_v30 = vadd.f32 %v5932_v36, %v3617_v24  ;;  %v3687_v34 = vmax.f32 %v3655_v5, 0.0 }
 0x206   : > { %v3642_v32 = vadd.f32 %v5932_v36, %v3603_v26  ;;  %v3690_v33 = vmax.f32 %v3658_v22, 0.0  ;;  %v3673_v39 = vmax.f32 %v3641_v25, 0.0 }
 0x207   : > { %v3640_v35 = vadd.f32 %v5932_v36, %v3601_v29  ;;  %v3688_v38 = vmax.f32 %v3656_v30, 0.0  ;;  %v3671_v41 = vmax.f32 %v3639_v28, 0.0 }
 0x208   : > { %v3674_v0 = vmax.f32 %v3642_v32, 0.0  ;;  %v4558_v40 = vpack.c.bf16 %v3690_v33, %v3689_v31 }
 0x209   : > { %v3672_v42 = vmax.f32 %v3640_v35, 0.0  ;;  %v4553_v45 = vpack.c.bf16 %v3688_v38, %v3687_v34 }
 0x20a   : > { %v4518_v47 = vpack.c.bf16 %v3674_v0, %v3673_v39  ;;  %4590 = vst [vmem:[%s5954_s22 + $0x58] sm:$0xff] %v4558_v40  }
 0x20b   : > { %v4513_v48 = vpack.c.bf16 %v3672_v42, %v3671_v41  ;;  %4589 = vst [vmem:[%s5954_s22 + $0x50] sm:$0xff] %v4553_v45  }
 0x20c   : > { %4582 = vst [vmem:[%s5954_s22 + $0x18] sm:$0xff] %v4518_v47  }
 0x20d   : > { %4581 = vst [vmem:[%s5954_s22 + $0x10] sm:$0xff] %v4513_v48  }
 0x248   : > { %v4646_v49 = vpop.f32.mrb[8].mxu1 }
 0x249   : > { %v3622_v50 = vmul.f32 %v4646_v49, %v5927_v62  ;;  %v3558_v51 = vpop.f32.mrb[9].mxu1 }
 0x24a   : > { %v4630_v52 = vpop.f32.mrb[8].mxu0  ;;  %v3620_v53 = vmul.f32 %v5927_v62, %v3558_v51  ;;  %v4647_v21 = vpop.f32.mrb[10].mxu1 }
 0x24b   : > { %v3606_v37 = vmul.f32 %v4630_v52, %v5927_v62  ;;  %v3661_v54 = vadd.f32 %v5932_v36, %v3622_v50  ;;  %v3494_v55 = vpop.f32.mrb[9].mxu0  ;;  %v3623_v11 = vmul.f32 %v4647_v21, %v5927_v62  ;;  %v3561_v57 = vpop.f32.mrb[11].mxu1 }
 0x24c   : > { %v3604_v46 = vmul.f32 %v5927_v62, %v3494_v55  ;;  %v3659_v56 = vadd.f32 %v5932_v36, %v3620_v53  ;;  %v4631_v58 = vpop.f32.mrb[10].mxu0  ;;  %v3621_v43 = vmul.f32 %v5927_v62, %v3561_v57 }
 0x24d   : > { %v3645_v20 = vadd.f32 %v5932_v36, %v3606_v37  ;;  %v3607_v59 = vmul.f32 %v4631_v58, %v5927_v62  ;;  %v3662_v44 = vadd.f32 %v5932_v36, %v3623_v11  ;;  %v3497_v13 = vpop.f32.mrb[11].mxu0  ;;  %v3693_v1 = vmax.f32 %v3661_v54, 0.0 }
 0x24e   : > { %v3643_v60 = vadd.f32 %v5932_v36, %v3604_v46  ;;  %v3605_v61 = vmul.f32 %v5927_v62, %v3497_v13  ;;  %v3660_v63 = vadd.f32 %v5932_v36, %v3621_v43  ;;  %v3691_v4 = vmax.f32 %v3659_v56, 0.0 }
 0x24f   : > { %v3646_v2 = vadd.f32 %v5932_v36, %v3607_v59  ;;  %v3694_v3 = vmax.f32 %v3662_v44, 0.0  ;;  %v3677_v8 = vmax.f32 %v3645_v20, 0.0 }
 0x250   : > { %v3644_v6 = vadd.f32 %v5932_v36, %v3605_v61  ;;  %v3692_v7 = vmax.f32 %v3660_v63, 0.0  ;;  %v3675_v12 = vmax.f32 %v3643_v60, 0.0 }
 0x251   : > { %v3678_v9 = vmax.f32 %v3646_v2, 0.0  ;;  %v4568_v10 = vpack.c.bf16 %v3694_v3, %v3693_v1 }
 0x252   : > { %v3676_v14 = vmax.f32 %v3644_v6, 0.0  ;;  %v4563_v15 = vpack.c.bf16 %v3692_v7, %v3691_v4 }
 0x253   : > { %v4528_v16 = vpack.c.bf16 %v3678_v9, %v3677_v8  ;;  %4592 = vst [vmem:[%s5954_s22 + $0x68] sm:$0xff] %v4568_v10  }
 0x254   : > { %v4523_v17 = vpack.c.bf16 %v3676_v14, %v3675_v12  ;;  %4591 = vst [vmem:[%s5954_s22 + $0x60] sm:$0xff] %v4563_v15  }
 0x255   : > { %4584 = vst [vmem:[%s5954_s22 + $0x28] sm:$0xff] %v4528_v16  }
 0x256   : > { %4583 = vst [vmem:[%s5954_s22 + $0x20] sm:$0xff] %v4523_v17  }
 0x287   : > { %v4650_v18 = vpop.f32.mrb[12].mxu1 }
 0x288   : > { %v3626_v19 = vmul.f32 %v4650_v18, %v5927_v62  ;;  %v3574_v5 = vpop.f32.mrb[13].mxu1 }
 0x289   : > { %v3624_v23 = vmul.f32 %v5927_v62, %v3574_v5  ;;  %v4651_v24 = vpop.f32.mrb[14].mxu1 }
 0x28a   : > { %v3665_v25 = vadd.f32 %v5932_v36, %v3626_v19  ;;  %v3627_v26 = vmul.f32 %v4651_v24, %v5927_v62  ;;  %v3577_v22 = vpop.f32.mrb[15].mxu1 }
 0x28b   : > { %v3663_v27 = vadd.f32 %v5932_v36, %v3624_v23  ;;  %v3625_v28 = vmul.f32 %v5927_v62, %v3577_v22 }
 0x28c   : > { %v4634_v29 = vpop.f32.mrb[12].mxu0  ;;  %v3666_v30 = vadd.f32 %v5932_v36, %v3627_v26  ;;  %v3697_v34 = vmax.f32 %v3665_v25, 0.0 }
 0x28d   : > { %v3610_v31 = vmul.f32 %v4634_v29, %v5927_v62  ;;  %v3510_v32 = vpop.f32.mrb[13].mxu0  ;;  %v3664_v33 = vadd.f32 %v5932_v36, %v3625_v28  ;;  %v3695_v40 = vmax.f32 %v3663_v27, 0.0 }
 0x28e   : > { %v3608_v35 = vmul.f32 %v5927_v62, %v3510_v32  ;;  %v4635_v38 = vpop.f32.mrb[14].mxu0  ;;  %v3698_v39 = vmax.f32 %v3666_v30, 0.0 }
 0x28f   : > { %v3649_v0 = vadd.f32 %v5932_v36, %v3610_v31  ;;  %v3611_v41 = vmul.f32 %v4635_v38, %v5927_v62  ;;  %v3513_v42 = vpop.f32.mrb[15].mxu0  ;;  %v3696_v45 = vmax.f32 %v3664_v33, 0.0 }
 0x290   : > { %v3647_v47 = vadd.f32 %v5932_v36, %v3608_v35  ;;  %v4578_v48 = vpack.c.bf16 %v3698_v39, %v3697_v34  ;;  %v3609_v49 = vmul.f32 %v5927_v62, %v3513_v42 }
 0x291   : > { %v3650_v50 = vadd.f32 %v5932_v36, %v3611_v41  ;;  %v4573_v51 = vpack.c.bf16 %v3696_v45, %v3695_v40  ;;  %v3681_v53 = vmax.f32 %v3649_v0, 0.0 }
 0x292   : > { %4594 = vst [vmem:[%s5954_s22 + $0x78] sm:$0xff] %v4578_v48   ;;  %v3648_v52 = vadd.f32 %v5932_v36, %v3609_v49  ;;  %v3679_v37 = vmax.f32 %v3647_v47, 0.0 }
 0x293   : > { %v3682_v21 = vmax.f32 %v3650_v50, 0.0  ;;  %4593 = vst [vmem:[%s5954_s22 + $0x70] sm:$0xff] %v4573_v51  }
 0x294   : > { %v3680_v54 = vmax.f32 %v3648_v52, 0.0 }
 0x295   : > { %v4538_v55 = vpack.c.bf16 %v3682_v21, %v3681_v53 }
 0x296   : > { %v4533_v11 = vpack.c.bf16 %v3680_v54, %v3679_v37 }
 0x297   : > { %4586 = vst [vmem:[%s5954_s22 + $0x38] sm:$0xff] %v4538_v55  }
 0x298   : > { %4585 = vst [vmem:[%s5954_s22 + $0x30] sm:$0xff] %v4533_v11  }
 0x299 PF: > { %s14_s17 = sadd.s32 1, %s4766_s17   ;;  %s6038_s15 = smov %s4762_s16 }
 0x29a   : > { %p11_p5 = scmp.ge.s32.totalorder %s14_s17, 4   ;;  %s6039_s16 = smov %s6041_s18 }
 0x29c   :  { %13 = sbr.rel (!%p11_p5) target bundleno = 2 (0x2), region = 69 }

</bundles_post_ra>
